<compile_context>
chip_gen: v5e
topology: v5e:2x2
jax: 0.10.0
libtpu: 0.0.40
codegen_flags: <defaults>
</compile_context>

<pallas_src>
import functools

import jax
import jax.numpy as jnp
from jax import lax
from jax.experimental import pallas as pl
from jax.experimental.pallas import tpu as pltpu


def _cba_conv_silu_kernel(H, W, K, x_ref, rc_ref, w_ref, b_ref, o_ref):
    """Fused 'same'-padded KxK conv + bias + SiLU on a lane-dense flattened layout.

    x_ref  : (Cin, Nb, H*W)      VMEM  channel-major, batch chunk on sublanes, H*W on lanes
    rc_ref : (2, H*W)            VMEM  rc_ref[0]=row index, rc_ref[1]=col index per lane
    w_ref  : (Cout*Cin*K*K,)     SMEM  BN-folded conv weight, flat OIHW order
    b_ref  : (Cout,)             SMEM  BN-folded bias
    o_ref  : (Cout, Nb, H*W)     VMEM
    """
    Cin, Nb, HW = x_ref.shape
    Cout = o_ref.shape[0]
    half = K // 2

    # Row / col index planes (precomputed in the wrapper; avoids in-kernel integer div).
    row = rc_ref[0:1, :]                      # (1, HW) int32
    col = rc_ref[1:2, :]                      # (1, HW) int32

    # Load the whole block once; keep per-channel planes as lane-dense (Nb, HW) f32 slabs.
    planes = [x_ref[ci].astype(jnp.float32) for ci in range(Cin)]
    # NOTE: Cout live accumulators of tile size — fine for tiny C; tile Cout for larger
    # channel counts to avoid vreg spills (see TODO at top).
    accs = [jnp.zeros((Nb, HW), jnp.float32) for _ in range(Cout)]

    # Shifted-tap FMA convolution: for tap (dy, dx) the neighbour x[r+oy, c+ox] lives at
    # flattened offset d = oy*W + ox, produced with a lane roll (XLU) and an edge mask.
    for dy in range(K):
        oy = dy - half
        for dx in range(K):
            ox = dx - half
            d = oy * W + ox
            shift = (-d) % HW                 # jnp.roll semantics: rolled[p] = plane[p + d]
            # Validity mask: zero contributions that fall outside the image ('same' zero pad)
            # or that wrapped around the flattened plane.  Built once per tap (9 total).
            mask = ((row + oy >= 0) & (row + oy < H)
                    & (col + ox >= 0) & (col + ox < W))          # (1, HW), broadcasts over Nb
            tap_off = dy * K + dx
            for ci in range(Cin):
                if d == 0:
                    shifted = planes[ci]
                else:
                    shifted = pltpu.roll(planes[ci], shift=shift, axis=1)
                tap = jnp.where(mask, shifted, 0.0)              # (Nb, HW) f32
                for co in range(Cout):
                    wv = w_ref[(co * Cin + ci) * (K * K) + tap_off]   # scalar from SMEM
                    accs[co] = accs[co] + wv * tap

    # Bias + SiLU (EUP sigmoid), then one coalesced lane-dense store for all Cout channels.
    outs = []
    for co in range(Cout):
        a = accs[co] + b_ref[co]
        outs.append((a * jax.nn.sigmoid(a)).astype(o_ref.dtype))
    o_ref[...] = jnp.stack(outs, axis=0)                          # (Cout, Nb, HW)


def cba_forward(x, conv_weight, bn_gamma, bn_beta, bn_mean, bn_var,
                conv_bias=None, bn_eps=1e-5, stride=1, padding=None, groups=1):
    """CBA forward: SiLU(BN(conv(x))).  x: (N, Cin, H, W), conv_weight: (Cout, Cin, K, K)."""
    N, Cin, H, W = x.shape
    Cout, Cin_w, KH, KW = conv_weight.shape
    K = KH
    if padding is None:
        padding = K // 2

    # Supported CBA instantiation (assert so the folded path can't silently diverge).
    assert groups == 1, "groups != 1 not supported"
    assert Cin_w == Cin, "grouped/depthwise conv not supported"
    assert stride == 1, "stride != 1 not supported (TODO)"
    assert KH == KW and K % 2 == 1 and padding == K // 2, "odd 'same'-padded kernels only (TODO)"
    HW = H * W
    assert HW % 128 == 0, "lane-dense layout needs H*W to be a multiple of 128 (TODO: pad)"

    # ---- Fold eval-mode BatchNorm into the conv (exact, f32) ---------------------------
    scale = (bn_gamma.astype(jnp.float32) /
             jnp.sqrt(bn_var.astype(jnp.float32) + jnp.float32(bn_eps)))
    w_eq = conv_weight.astype(jnp.float32) * scale[:, None, None, None]
    b_eq = bn_beta.astype(jnp.float32) - bn_mean.astype(jnp.float32) * scale
    if conv_bias is not None:
        b_eq = b_eq + conv_bias.astype(jnp.float32) * scale
    w_flat = w_eq.reshape(-1)                                      # (Cout*Cin*K*K,)

    # ---- Lane-dense relayout in the wrapper (layout plumbing, not compute) -------------
    # (N, C, H, W) -> (C, N, H*W): channel-major, spatial plane flattened onto lanes.
    x_t = jnp.transpose(x, (1, 0, 2, 3)).reshape(Cin, N, HW)

    # Row / col index planes for the halo masks (avoids integer div/mod in the kernel).
    p = jnp.arange(HW, dtype=jnp.int32)
    rc = jnp.stack([p // W, p % W], axis=0)                        # (2, HW) int32

    # Up to 8 images per grid step (fills the 8 sublanes and amortizes per-step overhead);
    # the batch-chunk grid axis is 'parallel' so v7x's two TensorCores split it.
    Nb = N if N <= 8 else 8
    assert N % Nb == 0, "batch must be a multiple of the per-step image count"
    grid = (N // Nb,)

    kernel = functools.partial(_cba_conv_silu_kernel, H, W, K)

    out = pl.pallas_call(
        kernel,
        out_shape=jax.ShapeDtypeStruct((Cout, N, HW), x.dtype),
        grid_spec=pltpu.PrefetchScalarGridSpec(
            num_scalar_prefetch=0,
            grid=grid,
            in_specs=[
                pl.BlockSpec((Cin, Nb, HW), lambda g: (0, g, 0)),
                pl.BlockSpec((2, HW), lambda g: (0, 0)),
                # Folded weight / bias are tiny: keep them in SMEM and read as scalars.
                pl.BlockSpec(memory_space=pltpu.MemorySpace.SMEM),
                pl.BlockSpec(memory_space=pltpu.MemorySpace.SMEM),
            ],
            out_specs=pl.BlockSpec((Cout, Nb, HW), lambda g: (0, g, 0)),
        ),
        compiler_params=pltpu.CompilerParams(
            dimension_semantics=("parallel",),
            # Explicit scoped-VMEM budget; <= 32 MiB so the same tiling fits v7x.
            vmem_limit_bytes=32 * 1024 * 1024,
        ),
    )(x_t, rc, w_flat, b_eq)

    # (Cout, N, H*W) -> (N, Cout, H, W)
    return jnp.transpose(out.reshape(Cout, N, H, W), (1, 0, 2, 3))


def cba_reference(x, conv_weight, bn_gamma, bn_beta, bn_mean, bn_var,
                  conv_bias=None, bn_eps=1e-5):
    """Plain-JAX reference: conv -> eval-mode BatchNorm -> SiLU (matches PyTorch CBA)."""
    K = conv_weight.shape[-1]
    pad = K // 2
    y = lax.conv_general_dilated(
        x, conv_weight, window_strides=(1, 1), padding=((pad, pad), (pad, pad)),
        dimension_numbers=('NCHW', 'OIHW', 'NCHW'))
    if conv_bias is not None:
        y = y + conv_bias[None, :, None, None]
    scale = bn_gamma / jnp.sqrt(bn_var + bn_eps)
    shift = bn_beta - bn_mean * scale
    y = y * scale[None, :, None, None] + shift[None, :, None, None]
    return y * jax.nn.sigmoid(y)                                   # SiLU


if __name__ == "__main__":
    # CBA config: in_channels=4, out_channels=4, kernel_size=3, stride=1, padding=1,
    #             dilation=1, groups=1, bn=True (so conv bias=False), act='silu'
    N, Cin, Cout, H, W, K = 2, 4, 4, 16, 16, 3

    key = jax.random.PRNGKey(0)
    kx, kw, kg, kb, km, kv = jax.random.split(key, 6)

    x = jax.random.normal(kx, (N, Cin, H, W), dtype=jnp.float32)
    conv_w = 0.1 * jax.random.normal(kw, (Cout, Cin, K, K), dtype=jnp.float32)
    bn_gamma = 1.0 + 0.1 * jax.random.normal(kg, (Cout,), dtype=jnp.float32)
    bn_beta = 0.1 * jax.random.normal(kb, (Cout,), dtype=jnp.float32)
    bn_mean = 0.1 * jax.random.normal(km, (Cout,), dtype=jnp.float32)
    bn_var = jax.random.uniform(kv, (Cout,), minval=0.5, maxval=1.5, dtype=jnp.float32)

    out = cba_forward(x, conv_w, bn_gamma, bn_beta, bn_mean, bn_var)
    out = jax.block_until_ready(out)

    ref = cba_reference(x, conv_w, bn_gamma, bn_beta, bn_mean, bn_var)
    assert out.shape == (N, Cout, H, W)
    assert jnp.allclose(out, ref, atol=1e-4, rtol=1e-4), "mismatch vs reference"

    print("KERNEL_OK")
</pallas_src>

<mosaic_0001>
module attributes {stable_mosaic.version = 11 : i64} {
  func.func @_cba_conv_silu_kernel(%arg0: i32, %arg1: memref<4x2x256xf32, #tpu.memory_space<vmem>>, %arg2: memref<2x256xi32, #tpu.memory_space<vmem>>, %arg3: memref<144xf32, #tpu.memory_space<smem>>, %arg4: memref<4xf32, #tpu.memory_space<smem>>, %arg5: memref<4x2x256xf32, #tpu.memory_space<vmem>>) attributes {dimension_semantics = [#tpu.dimension_semantics<parallel>], iteration_bounds = array<i64: 1>, scalar_prefetch = 0 : i64, scratch_operands = 0 : i64, tpu.core_type = #tpu.core_type<tc>, window_params = [{transform_indices = @transform_0, window_bounds = array<i64: 4, 2, 256>}, {pipeline_mode = #tpu.pipeline_mode<synchronous>, transform_indices = @transform_1, window_bounds = array<i64: 2, 256>}, {transform_indices = @transform_2, window_bounds = array<i64: 144>}, {transform_indices = @transform_3, window_bounds = array<i64: 4>}, {transform_indices = @transform_4, window_bounds = array<i64: 4, 2, 256>}]} {
    %c0 = arith.constant 0 : index
    %c0_0 = arith.constant 0 : index
    %0 = vector.load %arg2[%c0, %c0_0] : memref<2x256xi32, #tpu.memory_space<vmem>>, vector<1x256xi32>
    %c1 = arith.constant 1 : index
    %c0_1 = arith.constant 0 : index
    %1 = vector.load %arg2[%c1, %c0_1] : memref<2x256xi32, #tpu.memory_space<vmem>>, vector<1x256xi32>
    %c0_2 = arith.constant 0 : index
    %c0_3 = arith.constant 0 : index
    %c0_4 = arith.constant 0 : index
    %2 = vector.load %arg1[%c0_2, %c0_3, %c0_4] : memref<4x2x256xf32, #tpu.memory_space<vmem>>, vector<1x2x256xf32>
    %3 = vector.shape_cast %2 : vector<1x2x256xf32> to vector<2x256xf32>
    %c1_5 = arith.constant 1 : index
    %c0_6 = arith.constant 0 : index
    %c0_7 = arith.constant 0 : index
    %4 = vector.load %arg1[%c1_5, %c0_6, %c0_7] : memref<4x2x256xf32, #tpu.memory_space<vmem>>, vector<1x2x256xf32>
    %5 = vector.shape_cast %4 : vector<1x2x256xf32> to vector<2x256xf32>
    %c2 = arith.constant 2 : index
    %c0_8 = arith.constant 0 : index
    %c0_9 = arith.constant 0 : index
    %6 = vector.load %arg1[%c2, %c0_8, %c0_9] : memref<4x2x256xf32, #tpu.memory_space<vmem>>, vector<1x2x256xf32>
    %7 = vector.shape_cast %6 : vector<1x2x256xf32> to vector<2x256xf32>
    %c3 = arith.constant 3 : index
    %c0_10 = arith.constant 0 : index
    %c0_11 = arith.constant 0 : index
    %8 = vector.load %arg1[%c3, %c0_10, %c0_11] : memref<4x2x256xf32, #tpu.memory_space<vmem>>, vector<1x2x256xf32>
    %9 = vector.shape_cast %8 : vector<1x2x256xf32> to vector<2x256xf32>
    %cst = arith.constant 0.000000e+00 : f32
    %10 = vector.broadcast %cst : f32 to vector<2x256xf32>
    %cst_12 = arith.constant 0.000000e+00 : f32
    %11 = vector.broadcast %cst_12 : f32 to vector<2x256xf32>
    %cst_13 = arith.constant 0.000000e+00 : f32
    %12 = vector.broadcast %cst_13 : f32 to vector<2x256xf32>
    %cst_14 = arith.constant 0.000000e+00 : f32
    %13 = vector.broadcast %cst_14 : f32 to vector<2x256xf32>
    %c-1_i32 = arith.constant -1 : i32
    %14 = vector.broadcast %c-1_i32 : i32 to vector<1x256xi32>
    %15 = arith.addi %0, %14 : vector<1x256xi32>
    %c0_i32 = arith.constant 0 : i32
    %16 = vector.broadcast %c0_i32 : i32 to vector<1x256xi32>
    %17 = arith.cmpi sge, %15, %16 : vector<1x256xi32>
    %c-1_i32_15 = arith.constant -1 : i32
    %18 = vector.broadcast %c-1_i32_15 : i32 to vector<1x256xi32>
    %19 = arith.addi %0, %18 : vector<1x256xi32>
    %c16_i32 = arith.constant 16 : i32
    %20 = vector.broadcast %c16_i32 : i32 to vector<1x256xi32>
    %21 = arith.cmpi slt, %19, %20 : vector<1x256xi32>
    %22 = arith.andi %17, %21 : vector<1x256xi1>
    %c-1_i32_16 = arith.constant -1 : i32
    %23 = vector.broadcast %c-1_i32_16 : i32 to vector<1x256xi32>
    %24 = arith.addi %1, %23 : vector<1x256xi32>
    %c0_i32_17 = arith.constant 0 : i32
    %25 = vector.broadcast %c0_i32_17 : i32 to vector<1x256xi32>
    %26 = arith.cmpi sge, %24, %25 : vector<1x256xi32>
    %27 = arith.andi %22, %26 : vector<1x256xi1>
    %c-1_i32_18 = arith.constant -1 : i32
    %28 = vector.broadcast %c-1_i32_18 : i32 to vector<1x256xi32>
    %29 = arith.addi %1, %28 : vector<1x256xi32>
    %c16_i32_19 = arith.constant 16 : i32
    %30 = vector.broadcast %c16_i32_19 : i32 to vector<1x256xi32>
    %31 = arith.cmpi slt, %29, %30 : vector<1x256xi32>
    %32 = arith.andi %27, %31 : vector<1x256xi1>
    %c17_i32 = arith.constant 17 : i32
    %33 = tpu.dynamic_rotate %3 by %c17_i32 dim 1 : vector<2x256xf32>, i32 -> vector<2x256xf32>
    %cst_20 = arith.constant 0.000000e+00 : f32
    %34 = vector.shape_cast %32 : vector<1x256xi1> to vector<1x256xi1>
    %35 = vector.broadcast %34 : vector<1x256xi1> to vector<2x256xi1>
    %36 = vector.broadcast %cst_20 : f32 to vector<2x256xf32>
    %37 = arith.select %35, %33, %36 : vector<2x256xi1>, vector<2x256xf32>
    %c0_21 = arith.constant 0 : index
    %38 = memref.load %arg3[%c0_21] : memref<144xf32, #tpu.memory_space<smem>>
    %39 = vector.broadcast %38 : f32 to vector<2x256xf32>
    %40 = arith.mulf %39, %37 : vector<2x256xf32>
    %41 = arith.addf %10, %40 : vector<2x256xf32>
    %c36 = arith.constant 36 : index
    %42 = memref.load %arg3[%c36] : memref<144xf32, #tpu.memory_space<smem>>
    %43 = vector.broadcast %42 : f32 to vector<2x256xf32>
    %44 = arith.mulf %43, %37 : vector<2x256xf32>
    %45 = arith.addf %11, %44 : vector<2x256xf32>
    %c72 = arith.constant 72 : index
    %46 = memref.load %arg3[%c72] : memref<144xf32, #tpu.memory_space<smem>>
    %47 = vector.broadcast %46 : f32 to vector<2x256xf32>
    %48 = arith.mulf %47, %37 : vector<2x256xf32>
    %49 = arith.addf %12, %48 : vector<2x256xf32>
    %c108 = arith.constant 108 : index
    %50 = memref.load %arg3[%c108] : memref<144xf32, #tpu.memory_space<smem>>
    %51 = vector.broadcast %50 : f32 to vector<2x256xf32>
    %52 = arith.mulf %51, %37 : vector<2x256xf32>
    %53 = arith.addf %13, %52 : vector<2x256xf32>
    %c17_i32_22 = arith.constant 17 : i32
    %54 = tpu.dynamic_rotate %5 by %c17_i32_22 dim 1 : vector<2x256xf32>, i32 -> vector<2x256xf32>
    %cst_23 = arith.constant 0.000000e+00 : f32
    %55 = vector.shape_cast %32 : vector<1x256xi1> to vector<1x256xi1>
    %56 = vector.broadcast %55 : vector<1x256xi1> to vector<2x256xi1>
    %57 = vector.broadcast %cst_23 : f32 to vector<2x256xf32>
    %58 = arith.select %56, %54, %57 : vector<2x256xi1>, vector<2x256xf32>
    %c9 = arith.constant 9 : index
    %59 = memref.load %arg3[%c9] : memref<144xf32, #tpu.memory_space<smem>>
    %60 = vector.broadcast %59 : f32 to vector<2x256xf32>
    %61 = arith.mulf %60, %58 : vector<2x256xf32>
    %62 = arith.addf %41, %61 : vector<2x256xf32>
    %c45 = arith.constant 45 : index
    %63 = memref.load %arg3[%c45] : memref<144xf32, #tpu.memory_space<smem>>
    %64 = vector.broadcast %63 : f32 to vector<2x256xf32>
    %65 = arith.mulf %64, %58 : vector<2x256xf32>
    %66 = arith.addf %45, %65 : vector<2x256xf32>
    %c81 = arith.constant 81 : index
    %67 = memref.load %arg3[%c81] : memref<144xf32, #tpu.memory_space<smem>>
    %68 = vector.broadcast %67 : f32 to vector<2x256xf32>
    %69 = arith.mulf %68, %58 : vector<2x256xf32>
    %70 = arith.addf %49, %69 : vector<2x256xf32>
    %c117 = arith.constant 117 : index
    %71 = memref.load %arg3[%c117] : memref<144xf32, #tpu.memory_space<smem>>
    %72 = vector.broadcast %71 : f32 to vector<2x256xf32>
    %73 = arith.mulf %72, %58 : vector<2x256xf32>
    %74 = arith.addf %53, %73 : vector<2x256xf32>
    %c17_i32_24 = arith.constant 17 : i32
    %75 = tpu.dynamic_rotate %7 by %c17_i32_24 dim 1 : vector<2x256xf32>, i32 -> vector<2x256xf32>
    %cst_25 = arith.constant 0.000000e+00 : f32
    %76 = vector.shape_cast %32 : vector<1x256xi1> to vector<1x256xi1>
    %77 = vector.broadcast %76 : vector<1x256xi1> to vector<2x256xi1>
    %78 = vector.broadcast %cst_25 : f32 to vector<2x256xf32>
    %79 = arith.select %77, %75, %78 : vector<2x256xi1>, vector<2x256xf32>
    %c18 = arith.constant 18 : index
    %80 = memref.load %arg3[%c18] : memref<144xf32, #tpu.memory_space<smem>>
    %81 = vector.broadcast %80 : f32 to vector<2x256xf32>
    %82 = arith.mulf %81, %79 : vector<2x256xf32>
    %83 = arith.addf %62, %82 : vector<2x256xf32>
    %c54 = arith.constant 54 : index
    %84 = memref.load %arg3[%c54] : memref<144xf32, #tpu.memory_space<smem>>
    %85 = vector.broadcast %84 : f32 to vector<2x256xf32>
    %86 = arith.mulf %85, %79 : vector<2x256xf32>
    %87 = arith.addf %66, %86 : vector<2x256xf32>
    %c90 = arith.constant 90 : index
    %88 = memref.load %arg3[%c90] : memref<144xf32, #tpu.memory_space<smem>>
    %89 = vector.broadcast %88 : f32 to vector<2x256xf32>
    %90 = arith.mulf %89, %79 : vector<2x256xf32>
    %91 = arith.addf %70, %90 : vector<2x256xf32>
    %c126 = arith.constant 126 : index
    %92 = memref.load %arg3[%c126] : memref<144xf32, #tpu.memory_space<smem>>
    %93 = vector.broadcast %92 : f32 to vector<2x256xf32>
    %94 = arith.mulf %93, %79 : vector<2x256xf32>
    %95 = arith.addf %74, %94 : vector<2x256xf32>
    %c17_i32_26 = arith.constant 17 : i32
    %96 = tpu.dynamic_rotate %9 by %c17_i32_26 dim 1 : vector<2x256xf32>, i32 -> vector<2x256xf32>
    %cst_27 = arith.constant 0.000000e+00 : f32
    %97 = vector.shape_cast %32 : vector<1x256xi1> to vector<1x256xi1>
    %98 = vector.broadcast %97 : vector<1x256xi1> to vector<2x256xi1>
    %99 = vector.broadcast %cst_27 : f32 to vector<2x256xf32>
    %100 = arith.select %98, %96, %99 : vector<2x256xi1>, vector<2x256xf32>
    %c27 = arith.constant 27 : index
    %101 = memref.load %arg3[%c27] : memref<144xf32, #tpu.memory_space<smem>>
    %102 = vector.broadcast %101 : f32 to vector<2x256xf32>
    %103 = arith.mulf %102, %100 : vector<2x256xf32>
    %104 = arith.addf %83, %103 : vector<2x256xf32>
    %c63 = arith.constant 63 : index
    %105 = memref.load %arg3[%c63] : memref<144xf32, #tpu.memory_space<smem>>
    %106 = vector.broadcast %105 : f32 to vector<2x256xf32>
    %107 = arith.mulf %106, %100 : vector<2x256xf32>
    %108 = arith.addf %87, %107 : vector<2x256xf32>
    %c99 = arith.constant 99 : index
    %109 = memref.load %arg3[%c99] : memref<144xf32, #tpu.memory_space<smem>>
    %110 = vector.broadcast %109 : f32 to vector<2x256xf32>
    %111 = arith.mulf %110, %100 : vector<2x256xf32>
    %112 = arith.addf %91, %111 : vector<2x256xf32>
    %c135 = arith.constant 135 : index
    %113 = memref.load %arg3[%c135] : memref<144xf32, #tpu.memory_space<smem>>
    %114 = vector.broadcast %113 : f32 to vector<2x256xf32>
    %115 = arith.mulf %114, %100 : vector<2x256xf32>
    %116 = arith.addf %95, %115 : vector<2x256xf32>
    %c-1_i32_28 = arith.constant -1 : i32
    %117 = vector.broadcast %c-1_i32_28 : i32 to vector<1x256xi32>
    %118 = arith.addi %0, %117 : vector<1x256xi32>
    %c0_i32_29 = arith.constant 0 : i32
    %119 = vector.broadcast %c0_i32_29 : i32 to vector<1x256xi32>
    %120 = arith.cmpi sge, %118, %119 : vector<1x256xi32>
    %c-1_i32_30 = arith.constant -1 : i32
    %121 = vector.broadcast %c-1_i32_30 : i32 to vector<1x256xi32>
    %122 = arith.addi %0, %121 : vector<1x256xi32>
    %c16_i32_31 = arith.constant 16 : i32
    %123 = vector.broadcast %c16_i32_31 : i32 to vector<1x256xi32>
    %124 = arith.cmpi slt, %122, %123 : vector<1x256xi32>
    %125 = arith.andi %120, %124 : vector<1x256xi1>
    %c0_i32_32 = arith.constant 0 : i32
    %126 = vector.broadcast %c0_i32_32 : i32 to vector<1x256xi32>
    %127 = arith.addi %1, %126 : vector<1x256xi32>
    %c0_i32_33 = arith.constant 0 : i32
    %128 = vector.broadcast %c0_i32_33 : i32 to vector<1x256xi32>
    %129 = arith.cmpi sge, %127, %128 : vector<1x256xi32>
    %130 = arith.andi %125, %129 : vector<1x256xi1>
    %c0_i32_34 = arith.constant 0 : i32
    %131 = vector.broadcast %c0_i32_34 : i32 to vector<1x256xi32>
    %132 = arith.addi %1, %131 : vector<1x256xi32>
    %c16_i32_35 = arith.constant 16 : i32
    %133 = vector.broadcast %c16_i32_35 : i32 to vector<1x256xi32>
    %134 = arith.cmpi slt, %132, %133 : vector<1x256xi32>
    %135 = arith.andi %130, %134 : vector<1x256xi1>
    %c16_i32_36 = arith.constant 16 : i32
    %136 = tpu.dynamic_rotate %3 by %c16_i32_36 dim 1 : vector<2x256xf32>, i32 -> vector<2x256xf32>
    %cst_37 = arith.constant 0.000000e+00 : f32
    %137 = vector.shape_cast %135 : vector<1x256xi1> to vector<1x256xi1>
    %138 = vector.broadcast %137 : vector<1x256xi1> to vector<2x256xi1>
    %139 = vector.broadcast %cst_37 : f32 to vector<2x256xf32>
    %140 = arith.select %138, %136, %139 : vector<2x256xi1>, vector<2x256xf32>
    %c1_38 = arith.constant 1 : index
    %141 = memref.load %arg3[%c1_38] : memref<144xf32, #tpu.memory_space<smem>>
    %142 = vector.broadcast %141 : f32 to vector<2x256xf32>
    %143 = arith.mulf %142, %140 : vector<2x256xf32>
    %144 = arith.addf %104, %143 : vector<2x256xf32>
    %c37 = arith.constant 37 : index
    %145 = memref.load %arg3[%c37] : memref<144xf32, #tpu.memory_space<smem>>
    %146 = vector.broadcast %145 : f32 to vector<2x256xf32>
    %147 = arith.mulf %146, %140 : vector<2x256xf32>
    %148 = arith.addf %108, %147 : vector<2x256xf32>
    %c73 = arith.constant 73 : index
    %149 = memref.load %arg3[%c73] : memref<144xf32, #tpu.memory_space<smem>>
    %150 = vector.broadcast %149 : f32 to vector<2x256xf32>
    %151 = arith.mulf %150, %140 : vector<2x256xf32>
    %152 = arith.addf %112, %151 : vector<2x256xf32>
    %c109 = arith.constant 109 : index
    %153 = memref.load %arg3[%c109] : memref<144xf32, #tpu.memory_space<smem>>
    %154 = vector.broadcast %153 : f32 to vector<2x256xf32>
    %155 = arith.mulf %154, %140 : vector<2x256xf32>
    %156 = arith.addf %116, %155 : vector<2x256xf32>
    %c16_i32_39 = arith.constant 16 : i32
    %157 = tpu.dynamic_rotate %5 by %c16_i32_39 dim 1 : vector<2x256xf32>, i32 -> vector<2x256xf32>
    %cst_40 = arith.constant 0.000000e+00 : f32
    %158 = vector.shape_cast %135 : vector<1x256xi1> to vector<1x256xi1>
    %159 = vector.broadcast %158 : vector<1x256xi1> to vector<2x256xi1>
    %160 = vector.broadcast %cst_40 : f32 to vector<2x256xf32>
    %161 = arith.select %159, %157, %160 : vector<2x256xi1>, vector<2x256xf32>
    %c10 = arith.constant 10 : index
    %162 = memref.load %arg3[%c10] : memref<144xf32, #tpu.memory_space<smem>>
    %163 = vector.broadcast %162 : f32 to vector<2x256xf32>
    %164 = arith.mulf %163, %161 : vector<2x256xf32>
    %165 = arith.addf %144, %164 : vector<2x256xf32>
    %c46 = arith.constant 46 : index
    %166 = memref.load %arg3[%c46] : memref<144xf32, #tpu.memory_space<smem>>
    %167 = vector.broadcast %166 : f32 to vector<2x256xf32>
    %168 = arith.mulf %167, %161 : vector<2x256xf32>
    %169 = arith.addf %148, %168 : vector<2x256xf32>
    %c82 = arith.constant 82 : index
    %170 = memref.load %arg3[%c82] : memref<144xf32, #tpu.memory_space<smem>>
    %171 = vector.broadcast %170 : f32 to vector<2x256xf32>
    %172 = arith.mulf %171, %161 : vector<2x256xf32>
    %173 = arith.addf %152, %172 : vector<2x256xf32>
    %c118 = arith.constant 118 : index
    %174 = memref.load %arg3[%c118] : memref<144xf32, #tpu.memory_space<smem>>
    %175 = vector.broadcast %174 : f32 to vector<2x256xf32>
    %176 = arith.mulf %175, %161 : vector<2x256xf32>
    %177 = arith.addf %156, %176 : vector<2x256xf32>
    %c16_i32_41 = arith.constant 16 : i32
    %178 = tpu.dynamic_rotate %7 by %c16_i32_41 dim 1 : vector<2x256xf32>, i32 -> vector<2x256xf32>
    %cst_42 = arith.constant 0.000000e+00 : f32
    %179 = vector.shape_cast %135 : vector<1x256xi1> to vector<1x256xi1>
    %180 = vector.broadcast %179 : vector<1x256xi1> to vector<2x256xi1>
    %181 = vector.broadcast %cst_42 : f32 to vector<2x256xf32>
    %182 = arith.select %180, %178, %181 : vector<2x256xi1>, vector<2x256xf32>
    %c19 = arith.constant 19 : index
    %183 = memref.load %arg3[%c19] : memref<144xf32, #tpu.memory_space<smem>>
    %184 = vector.broadcast %183 : f32 to vector<2x256xf32>
    %185 = arith.mulf %184, %182 : vector<2x256xf32>
    %186 = arith.addf %165, %185 : vector<2x256xf32>
    %c55 = arith.constant 55 : index
    %187 = memref.load %arg3[%c55] : memref<144xf32, #tpu.memory_space<smem>>
    %188 = vector.broadcast %187 : f32 to vector<2x256xf32>
    %189 = arith.mulf %188, %182 : vector<2x256xf32>
    %190 = arith.addf %169, %189 : vector<2x256xf32>
    %c91 = arith.constant 91 : index
    %191 = memref.load %arg3[%c91] : memref<144xf32, #tpu.memory_space<smem>>
    %192 = vector.broadcast %191 : f32 to vector<2x256xf32>
    %193 = arith.mulf %192, %182 : vector<2x256xf32>
    %194 = arith.addf %173, %193 : vector<2x256xf32>
    %c127 = arith.constant 127 : index
    %195 = memref.load %arg3[%c127] : memref<144xf32, #tpu.memory_space<smem>>
    %196 = vector.broadcast %195 : f32 to vector<2x256xf32>
    %197 = arith.mulf %196, %182 : vector<2x256xf32>
    %198 = arith.addf %177, %197 : vector<2x256xf32>
    %c16_i32_43 = arith.constant 16 : i32
    %199 = tpu.dynamic_rotate %9 by %c16_i32_43 dim 1 : vector<2x256xf32>, i32 -> vector<2x256xf32>
    %cst_44 = arith.constant 0.000000e+00 : f32
    %200 = vector.shape_cast %135 : vector<1x256xi1> to vector<1x256xi1>
    %201 = vector.broadcast %200 : vector<1x256xi1> to vector<2x256xi1>
    %202 = vector.broadcast %cst_44 : f32 to vector<2x256xf32>
    %203 = arith.select %201, %199, %202 : vector<2x256xi1>, vector<2x256xf32>
    %c28 = arith.constant 28 : index
    %204 = memref.load %arg3[%c28] : memref<144xf32, #tpu.memory_space<smem>>
    %205 = vector.broadcast %204 : f32 to vector<2x256xf32>
    %206 = arith.mulf %205, %203 : vector<2x256xf32>
    %207 = arith.addf %186, %206 : vector<2x256xf32>
    %c64 = arith.constant 64 : index
    %208 = memref.load %arg3[%c64] : memref<144xf32, #tpu.memory_space<smem>>
    %209 = vector.broadcast %208 : f32 to vector<2x256xf32>
    %210 = arith.mulf %209, %203 : vector<2x256xf32>
    %211 = arith.addf %190, %210 : vector<2x256xf32>
    %c100 = arith.constant 100 : index
    %212 = memref.load %arg3[%c100] : memref<144xf32, #tpu.memory_space<smem>>
    %213 = vector.broadcast %212 : f32 to vector<2x256xf32>
    %214 = arith.mulf %213, %203 : vector<2x256xf32>
    %215 = arith.addf %194, %214 : vector<2x256xf32>
    %c136 = arith.constant 136 : index
    %216 = memref.load %arg3[%c136] : memref<144xf32, #tpu.memory_space<smem>>
    %217 = vector.broadcast %216 : f32 to vector<2x256xf32>
    %218 = arith.mulf %217, %203 : vector<2x256xf32>
    %219 = arith.addf %198, %218 : vector<2x256xf32>
    %c-1_i32_45 = arith.constant -1 : i32
    %220 = vector.broadcast %c-1_i32_45 : i32 to vector<1x256xi32>
    %221 = arith.addi %0, %220 : vector<1x256xi32>
    %c0_i32_46 = arith.constant 0 : i32
    %222 = vector.broadcast %c0_i32_46 : i32 to vector<1x256xi32>
    %223 = arith.cmpi sge, %221, %222 : vector<1x256xi32>
    %c-1_i32_47 = arith.constant -1 : i32
    %224 = vector.broadcast %c-1_i32_47 : i32 to vector<1x256xi32>
    %225 = arith.addi %0, %224 : vector<1x256xi32>
    %c16_i32_48 = arith.constant 16 : i32
    %226 = vector.broadcast %c16_i32_48 : i32 to vector<1x256xi32>
    %227 = arith.cmpi slt, %225, %226 : vector<1x256xi32>
    %228 = arith.andi %223, %227 : vector<1x256xi1>
    %c1_i32 = arith.constant 1 : i32
    %229 = vector.broadcast %c1_i32 : i32 to vector<1x256xi32>
    %230 = arith.addi %1, %229 : vector<1x256xi32>
    %c0_i32_49 = arith.constant 0 : i32
    %231 = vector.broadcast %c0_i32_49 : i32 to vector<1x256xi32>
    %232 = arith.cmpi sge, %230, %231 : vector<1x256xi32>
    %233 = arith.andi %228, %232 : vector<1x256xi1>
    %c1_i32_50 = arith.constant 1 : i32
    %234 = vector.broadcast %c1_i32_50 : i32 to vector<1x256xi32>
    %235 = arith.addi %1, %234 : vector<1x256xi32>
    %c16_i32_51 = arith.constant 16 : i32
    %236 = vector.broadcast %c16_i32_51 : i32 to vector<1x256xi32>
    %237 = arith.cmpi slt, %235, %236 : vector<1x256xi32>
    %238 = arith.andi %233, %237 : vector<1x256xi1>
    %c15_i32 = arith.constant 15 : i32
    %239 = tpu.dynamic_rotate %3 by %c15_i32 dim 1 : vector<2x256xf32>, i32 -> vector<2x256xf32>
    %cst_52 = arith.constant 0.000000e+00 : f32
    %240 = vector.shape_cast %238 : vector<1x256xi1> to vector<1x256xi1>
    %241 = vector.broadcast %240 : vector<1x256xi1> to vector<2x256xi1>
    %242 = vector.broadcast %cst_52 : f32 to vector<2x256xf32>
    %243 = arith.select %241, %239, %242 : vector<2x256xi1>, vector<2x256xf32>
    %c2_53 = arith.constant 2 : index
    %244 = memref.load %arg3[%c2_53] : memref<144xf32, #tpu.memory_space<smem>>
    %245 = vector.broadcast %244 : f32 to vector<2x256xf32>
    %246 = arith.mulf %245, %243 : vector<2x256xf32>
    %247 = arith.addf %207, %246 : vector<2x256xf32>
    %c38 = arith.constant 38 : index
    %248 = memref.load %arg3[%c38] : memref<144xf32, #tpu.memory_space<smem>>
    %249 = vector.broadcast %248 : f32 to vector<2x256xf32>
    %250 = arith.mulf %249, %243 : vector<2x256xf32>
    %251 = arith.addf %211, %250 : vector<2x256xf32>
    %c74 = arith.constant 74 : index
    %252 = memref.load %arg3[%c74] : memref<144xf32, #tpu.memory_space<smem>>
    %253 = vector.broadcast %252 : f32 to vector<2x256xf32>
    %254 = arith.mulf %253, %243 : vector<2x256xf32>
    %255 = arith.addf %215, %254 : vector<2x256xf32>
    %c110 = arith.constant 110 : index
    %256 = memref.load %arg3[%c110] : memref<144xf32, #tpu.memory_space<smem>>
    %257 = vector.broadcast %256 : f32 to vector<2x256xf32>
    %258 = arith.mulf %257, %243 : vector<2x256xf32>
    %259 = arith.addf %219, %258 : vector<2x256xf32>
    %c15_i32_54 = arith.constant 15 : i32
    %260 = tpu.dynamic_rotate %5 by %c15_i32_54 dim 1 : vector<2x256xf32>, i32 -> vector<2x256xf32>
    %cst_55 = arith.constant 0.000000e+00 : f32
    %261 = vector.shape_cast %238 : vector<1x256xi1> to vector<1x256xi1>
    %262 = vector.broadcast %261 : vector<1x256xi1> to vector<2x256xi1>
    %263 = vector.broadcast %cst_55 : f32 to vector<2x256xf32>
    %264 = arith.select %262, %260, %263 : vector<2x256xi1>, vector<2x256xf32>
    %c11 = arith.constant 11 : index
    %265 = memref.load %arg3[%c11] : memref<144xf32, #tpu.memory_space<smem>>
    %266 = vector.broadcast %265 : f32 to vector<2x256xf32>
    %267 = arith.mulf %266, %264 : vector<2x256xf32>
    %268 = arith.addf %247, %267 : vector<2x256xf32>
    %c47 = arith.constant 47 : index
    %269 = memref.load %arg3[%c47] : memref<144xf32, #tpu.memory_space<smem>>
    %270 = vector.broadcast %269 : f32 to vector<2x256xf32>
    %271 = arith.mulf %270, %264 : vector<2x256xf32>
    %272 = arith.addf %251, %271 : vector<2x256xf32>
    %c83 = arith.constant 83 : index
    %273 = memref.load %arg3[%c83] : memref<144xf32, #tpu.memory_space<smem>>
    %274 = vector.broadcast %273 : f32 to vector<2x256xf32>
    %275 = arith.mulf %274, %264 : vector<2x256xf32>
    %276 = arith.addf %255, %275 : vector<2x256xf32>
    %c119 = arith.constant 119 : index
    %277 = memref.load %arg3[%c119] : memref<144xf32, #tpu.memory_space<smem>>
    %278 = vector.broadcast %277 : f32 to vector<2x256xf32>
    %279 = arith.mulf %278, %264 : vector<2x256xf32>
    %280 = arith.addf %259, %279 : vector<2x256xf32>
    %c15_i32_56 = arith.constant 15 : i32
    %281 = tpu.dynamic_rotate %7 by %c15_i32_56 dim 1 : vector<2x256xf32>, i32 -> vector<2x256xf32>
    %cst_57 = arith.constant 0.000000e+00 : f32
    %282 = vector.shape_cast %238 : vector<1x256xi1> to vector<1x256xi1>
    %283 = vector.broadcast %282 : vector<1x256xi1> to vector<2x256xi1>
    %284 = vector.broadcast %cst_57 : f32 to vector<2x256xf32>
    %285 = arith.select %283, %281, %284 : vector<2x256xi1>, vector<2x256xf32>
    %c20 = arith.constant 20 : index
    %286 = memref.load %arg3[%c20] : memref<144xf32, #tpu.memory_space<smem>>
    %287 = vector.broadcast %286 : f32 to vector<2x256xf32>
    %288 = arith.mulf %287, %285 : vector<2x256xf32>
    %289 = arith.addf %268, %288 : vector<2x256xf32>
    %c56 = arith.constant 56 : index
    %290 = memref.load %arg3[%c56] : memref<144xf32, #tpu.memory_space<smem>>
    %291 = vector.broadcast %290 : f32 to vector<2x256xf32>
    %292 = arith.mulf %291, %285 : vector<2x256xf32>
    %293 = arith.addf %272, %292 : vector<2x256xf32>
    %c92 = arith.constant 92 : index
    %294 = memref.load %arg3[%c92] : memref<144xf32, #tpu.memory_space<smem>>
    %295 = vector.broadcast %294 : f32 to vector<2x256xf32>
    %296 = arith.mulf %295, %285 : vector<2x256xf32>
    %297 = arith.addf %276, %296 : vector<2x256xf32>
    %c128 = arith.constant 128 : index
    %298 = memref.load %arg3[%c128] : memref<144xf32, #tpu.memory_space<smem>>
    %299 = vector.broadcast %298 : f32 to vector<2x256xf32>
    %300 = arith.mulf %299, %285 : vector<2x256xf32>
    %301 = arith.addf %280, %300 : vector<2x256xf32>
    %c15_i32_58 = arith.constant 15 : i32
    %302 = tpu.dynamic_rotate %9 by %c15_i32_58 dim 1 : vector<2x256xf32>, i32 -> vector<2x256xf32>
    %cst_59 = arith.constant 0.000000e+00 : f32
    %303 = vector.shape_cast %238 : vector<1x256xi1> to vector<1x256xi1>
    %304 = vector.broadcast %303 : vector<1x256xi1> to vector<2x256xi1>
    %305 = vector.broadcast %cst_59 : f32 to vector<2x256xf32>
    %306 = arith.select %304, %302, %305 : vector<2x256xi1>, vector<2x256xf32>
    %c29 = arith.constant 29 : index
    %307 = memref.load %arg3[%c29] : memref<144xf32, #tpu.memory_space<smem>>
    %308 = vector.broadcast %307 : f32 to vector<2x256xf32>
    %309 = arith.mulf %308, %306 : vector<2x256xf32>
    %310 = arith.addf %289, %309 : vector<2x256xf32>
    %c65 = arith.constant 65 : index
    %311 = memref.load %arg3[%c65] : memref<144xf32, #tpu.memory_space<smem>>
    %312 = vector.broadcast %311 : f32 to vector<2x256xf32>
    %313 = arith.mulf %312, %306 : vector<2x256xf32>
    %314 = arith.addf %293, %313 : vector<2x256xf32>
    %c101 = arith.constant 101 : index
    %315 = memref.load %arg3[%c101] : memref<144xf32, #tpu.memory_space<smem>>
    %316 = vector.broadcast %315 : f32 to vector<2x256xf32>
    %317 = arith.mulf %316, %306 : vector<2x256xf32>
    %318 = arith.addf %297, %317 : vector<2x256xf32>
    %c137 = arith.constant 137 : index
    %319 = memref.load %arg3[%c137] : memref<144xf32, #tpu.memory_space<smem>>
    %320 = vector.broadcast %319 : f32 to vector<2x256xf32>
    %321 = arith.mulf %320, %306 : vector<2x256xf32>
    %322 = arith.addf %301, %321 : vector<2x256xf32>
    %c0_i32_60 = arith.constant 0 : i32
    %323 = vector.broadcast %c0_i32_60 : i32 to vector<1x256xi32>
    %324 = arith.addi %0, %323 : vector<1x256xi32>
    %c0_i32_61 = arith.constant 0 : i32
    %325 = vector.broadcast %c0_i32_61 : i32 to vector<1x256xi32>
    %326 = arith.cmpi sge, %324, %325 : vector<1x256xi32>
    %c0_i32_62 = arith.constant 0 : i32
    %327 = vector.broadcast %c0_i32_62 : i32 to vector<1x256xi32>
    %328 = arith.addi %0, %327 : vector<1x256xi32>
    %c16_i32_63 = arith.constant 16 : i32
    %329 = vector.broadcast %c16_i32_63 : i32 to vector<1x256xi32>
    %330 = arith.cmpi slt, %328, %329 : vector<1x256xi32>
    %331 = arith.andi %326, %330 : vector<1x256xi1>
    %c-1_i32_64 = arith.constant -1 : i32
    %332 = vector.broadcast %c-1_i32_64 : i32 to vector<1x256xi32>
    %333 = arith.addi %1, %332 : vector<1x256xi32>
    %c0_i32_65 = arith.constant 0 : i32
    %334 = vector.broadcast %c0_i32_65 : i32 to vector<1x256xi32>
    %335 = arith.cmpi sge, %333, %334 : vector<1x256xi32>
    %336 = arith.andi %331, %335 : vector<1x256xi1>
    %c-1_i32_66 = arith.constant -1 : i32
    %337 = vector.broadcast %c-1_i32_66 : i32 to vector<1x256xi32>
    %338 = arith.addi %1, %337 : vector<1x256xi32>
    %c16_i32_67 = arith.constant 16 : i32
    %339 = vector.broadcast %c16_i32_67 : i32 to vector<1x256xi32>
    %340 = arith.cmpi slt, %338, %339 : vector<1x256xi32>
    %341 = arith.andi %336, %340 : vector<1x256xi1>
    %c1_i32_68 = arith.constant 1 : i32
    %342 = tpu.dynamic_rotate %3 by %c1_i32_68 dim 1 : vector<2x256xf32>, i32 -> vector<2x256xf32>
    %cst_69 = arith.constant 0.000000e+00 : f32
    %343 = vector.shape_cast %341 : vector<1x256xi1> to vector<1x256xi1>
    %344 = vector.broadcast %343 : vector<1x256xi1> to vector<2x256xi1>
    %345 = vector.broadcast %cst_69 : f32 to vector<2x256xf32>
    %346 = arith.select %344, %342, %345 : vector<2x256xi1>, vector<2x256xf32>
    %c3_70 = arith.constant 3 : index
    %347 = memref.load %arg3[%c3_70] : memref<144xf32, #tpu.memory_space<smem>>
    %348 = vector.broadcast %347 : f32 to vector<2x256xf32>
    %349 = arith.mulf %348, %346 : vector<2x256xf32>
    %350 = arith.addf %310, %349 : vector<2x256xf32>
    %c39 = arith.constant 39 : index
    %351 = memref.load %arg3[%c39] : memref<144xf32, #tpu.memory_space<smem>>
    %352 = vector.broadcast %351 : f32 to vector<2x256xf32>
    %353 = arith.mulf %352, %346 : vector<2x256xf32>
    %354 = arith.addf %314, %353 : vector<2x256xf32>
    %c75 = arith.constant 75 : index
    %355 = memref.load %arg3[%c75] : memref<144xf32, #tpu.memory_space<smem>>
    %356 = vector.broadcast %355 : f32 to vector<2x256xf32>
    %357 = arith.mulf %356, %346 : vector<2x256xf32>
    %358 = arith.addf %318, %357 : vector<2x256xf32>
    %c111 = arith.constant 111 : index
    %359 = memref.load %arg3[%c111] : memref<144xf32, #tpu.memory_space<smem>>
    %360 = vector.broadcast %359 : f32 to vector<2x256xf32>
    %361 = arith.mulf %360, %346 : vector<2x256xf32>
    %362 = arith.addf %322, %361 : vector<2x256xf32>
    %c1_i32_71 = arith.constant 1 : i32
    %363 = tpu.dynamic_rotate %5 by %c1_i32_71 dim 1 : vector<2x256xf32>, i32 -> vector<2x256xf32>
    %cst_72 = arith.constant 0.000000e+00 : f32
    %364 = vector.shape_cast %341 : vector<1x256xi1> to vector<1x256xi1>
    %365 = vector.broadcast %364 : vector<1x256xi1> to vector<2x256xi1>
    %366 = vector.broadcast %cst_72 : f32 to vector<2x256xf32>
    %367 = arith.select %365, %363, %366 : vector<2x256xi1>, vector<2x256xf32>
    %c12 = arith.constant 12 : index
    %368 = memref.load %arg3[%c12] : memref<144xf32, #tpu.memory_space<smem>>
    %369 = vector.broadcast %368 : f32 to vector<2x256xf32>
    %370 = arith.mulf %369, %367 : vector<2x256xf32>
    %371 = arith.addf %350, %370 : vector<2x256xf32>
    %c48 = arith.constant 48 : index
    %372 = memref.load %arg3[%c48] : memref<144xf32, #tpu.memory_space<smem>>
    %373 = vector.broadcast %372 : f32 to vector<2x256xf32>
    %374 = arith.mulf %373, %367 : vector<2x256xf32>
    %375 = arith.addf %354, %374 : vector<2x256xf32>
    %c84 = arith.constant 84 : index
    %376 = memref.load %arg3[%c84] : memref<144xf32, #tpu.memory_space<smem>>
    %377 = vector.broadcast %376 : f32 to vector<2x256xf32>
    %378 = arith.mulf %377, %367 : vector<2x256xf32>
    %379 = arith.addf %358, %378 : vector<2x256xf32>
    %c120 = arith.constant 120 : index
    %380 = memref.load %arg3[%c120] : memref<144xf32, #tpu.memory_space<smem>>
    %381 = vector.broadcast %380 : f32 to vector<2x256xf32>
    %382 = arith.mulf %381, %367 : vector<2x256xf32>
    %383 = arith.addf %362, %382 : vector<2x256xf32>
    %c1_i32_73 = arith.constant 1 : i32
    %384 = tpu.dynamic_rotate %7 by %c1_i32_73 dim 1 : vector<2x256xf32>, i32 -> vector<2x256xf32>
    %cst_74 = arith.constant 0.000000e+00 : f32
    %385 = vector.shape_cast %341 : vector<1x256xi1> to vector<1x256xi1>
    %386 = vector.broadcast %385 : vector<1x256xi1> to vector<2x256xi1>
    %387 = vector.broadcast %cst_74 : f32 to vector<2x256xf32>
    %388 = arith.select %386, %384, %387 : vector<2x256xi1>, vector<2x256xf32>
    %c21 = arith.constant 21 : index
    %389 = memref.load %arg3[%c21] : memref<144xf32, #tpu.memory_space<smem>>
    %390 = vector.broadcast %389 : f32 to vector<2x256xf32>
    %391 = arith.mulf %390, %388 : vector<2x256xf32>
    %392 = arith.addf %371, %391 : vector<2x256xf32>
    %c57 = arith.constant 57 : index
    %393 = memref.load %arg3[%c57] : memref<144xf32, #tpu.memory_space<smem>>
    %394 = vector.broadcast %393 : f32 to vector<2x256xf32>
    %395 = arith.mulf %394, %388 : vector<2x256xf32>
    %396 = arith.addf %375, %395 : vector<2x256xf32>
    %c93 = arith.constant 93 : index
    %397 = memref.load %arg3[%c93] : memref<144xf32, #tpu.memory_space<smem>>
    %398 = vector.broadcast %397 : f32 to vector<2x256xf32>
    %399 = arith.mulf %398, %388 : vector<2x256xf32>
    %400 = arith.addf %379, %399 : vector<2x256xf32>
    %c129 = arith.constant 129 : index
    %401 = memref.load %arg3[%c129] : memref<144xf32, #tpu.memory_space<smem>>
    %402 = vector.broadcast %401 : f32 to vector<2x256xf32>
    %403 = arith.mulf %402, %388 : vector<2x256xf32>
    %404 = arith.addf %383, %403 : vector<2x256xf32>
    %c1_i32_75 = arith.constant 1 : i32
    %405 = tpu.dynamic_rotate %9 by %c1_i32_75 dim 1 : vector<2x256xf32>, i32 -> vector<2x256xf32>
    %cst_76 = arith.constant 0.000000e+00 : f32
    %406 = vector.shape_cast %341 : vector<1x256xi1> to vector<1x256xi1>
    %407 = vector.broadcast %406 : vector<1x256xi1> to vector<2x256xi1>
    %408 = vector.broadcast %cst_76 : f32 to vector<2x256xf32>
    %409 = arith.select %407, %405, %408 : vector<2x256xi1>, vector<2x256xf32>
    %c30 = arith.constant 30 : index
    %410 = memref.load %arg3[%c30] : memref<144xf32, #tpu.memory_space<smem>>
    %411 = vector.broadcast %410 : f32 to vector<2x256xf32>
    %412 = arith.mulf %411, %409 : vector<2x256xf32>
    %413 = arith.addf %392, %412 : vector<2x256xf32>
    %c66 = arith.constant 66 : index
    %414 = memref.load %arg3[%c66] : memref<144xf32, #tpu.memory_space<smem>>
    %415 = vector.broadcast %414 : f32 to vector<2x256xf32>
    %416 = arith.mulf %415, %409 : vector<2x256xf32>
    %417 = arith.addf %396, %416 : vector<2x256xf32>
    %c102 = arith.constant 102 : index
    %418 = memref.load %arg3[%c102] : memref<144xf32, #tpu.memory_space<smem>>
    %419 = vector.broadcast %418 : f32 to vector<2x256xf32>
    %420 = arith.mulf %419, %409 : vector<2x256xf32>
    %421 = arith.addf %400, %420 : vector<2x256xf32>
    %c138 = arith.constant 138 : index
    %422 = memref.load %arg3[%c138] : memref<144xf32, #tpu.memory_space<smem>>
    %423 = vector.broadcast %422 : f32 to vector<2x256xf32>
    %424 = arith.mulf %423, %409 : vector<2x256xf32>
    %425 = arith.addf %404, %424 : vector<2x256xf32>
    %c0_i32_77 = arith.constant 0 : i32
    %426 = vector.broadcast %c0_i32_77 : i32 to vector<1x256xi32>
    %427 = arith.addi %0, %426 : vector<1x256xi32>
    %c0_i32_78 = arith.constant 0 : i32
    %428 = vector.broadcast %c0_i32_78 : i32 to vector<1x256xi32>
    %429 = arith.cmpi sge, %427, %428 : vector<1x256xi32>
    %c0_i32_79 = arith.constant 0 : i32
    %430 = vector.broadcast %c0_i32_79 : i32 to vector<1x256xi32>
    %431 = arith.addi %0, %430 : vector<1x256xi32>
    %c16_i32_80 = arith.constant 16 : i32
    %432 = vector.broadcast %c16_i32_80 : i32 to vector<1x256xi32>
    %433 = arith.cmpi slt, %431, %432 : vector<1x256xi32>
    %434 = arith.andi %429, %433 : vector<1x256xi1>
    %c0_i32_81 = arith.constant 0 : i32
    %435 = vector.broadcast %c0_i32_81 : i32 to vector<1x256xi32>
    %436 = arith.addi %1, %435 : vector<1x256xi32>
    %c0_i32_82 = arith.constant 0 : i32
    %437 = vector.broadcast %c0_i32_82 : i32 to vector<1x256xi32>
    %438 = arith.cmpi sge, %436, %437 : vector<1x256xi32>
    %439 = arith.andi %434, %438 : vector<1x256xi1>
    %c0_i32_83 = arith.constant 0 : i32
    %440 = vector.broadcast %c0_i32_83 : i32 to vector<1x256xi32>
    %441 = arith.addi %1, %440 : vector<1x256xi32>
    %c16_i32_84 = arith.constant 16 : i32
    %442 = vector.broadcast %c16_i32_84 : i32 to vector<1x256xi32>
    %443 = arith.cmpi slt, %441, %442 : vector<1x256xi32>
    %444 = arith.andi %439, %443 : vector<1x256xi1>
    %cst_85 = arith.constant 0.000000e+00 : f32
    %445 = vector.shape_cast %444 : vector<1x256xi1> to vector<1x256xi1>
    %446 = vector.broadcast %445 : vector<1x256xi1> to vector<2x256xi1>
    %447 = vector.broadcast %cst_85 : f32 to vector<2x256xf32>
    %448 = arith.select %446, %3, %447 : vector<2x256xi1>, vector<2x256xf32>
    %c4 = arith.constant 4 : index
    %449 = memref.load %arg3[%c4] : memref<144xf32, #tpu.memory_space<smem>>
    %450 = vector.broadcast %449 : f32 to vector<2x256xf32>
    %451 = arith.mulf %450, %448 : vector<2x256xf32>
    %452 = arith.addf %413, %451 : vector<2x256xf32>
    %c40 = arith.constant 40 : index
    %453 = memref.load %arg3[%c40] : memref<144xf32, #tpu.memory_space<smem>>
    %454 = vector.broadcast %453 : f32 to vector<2x256xf32>
    %455 = arith.mulf %454, %448 : vector<2x256xf32>
    %456 = arith.addf %417, %455 : vector<2x256xf32>
    %c76 = arith.constant 76 : index
    %457 = memref.load %arg3[%c76] : memref<144xf32, #tpu.memory_space<smem>>
    %458 = vector.broadcast %457 : f32 to vector<2x256xf32>
    %459 = arith.mulf %458, %448 : vector<2x256xf32>
    %460 = arith.addf %421, %459 : vector<2x256xf32>
    %c112 = arith.constant 112 : index
    %461 = memref.load %arg3[%c112] : memref<144xf32, #tpu.memory_space<smem>>
    %462 = vector.broadcast %461 : f32 to vector<2x256xf32>
    %463 = arith.mulf %462, %448 : vector<2x256xf32>
    %464 = arith.addf %425, %463 : vector<2x256xf32>
    %cst_86 = arith.constant 0.000000e+00 : f32
    %465 = vector.shape_cast %444 : vector<1x256xi1> to vector<1x256xi1>
    %466 = vector.broadcast %465 : vector<1x256xi1> to vector<2x256xi1>
    %467 = vector.broadcast %cst_86 : f32 to vector<2x256xf32>
    %468 = arith.select %466, %5, %467 : vector<2x256xi1>, vector<2x256xf32>
    %c13 = arith.constant 13 : index
    %469 = memref.load %arg3[%c13] : memref<144xf32, #tpu.memory_space<smem>>
    %470 = vector.broadcast %469 : f32 to vector<2x256xf32>
    %471 = arith.mulf %470, %468 : vector<2x256xf32>
    %472 = arith.addf %452, %471 : vector<2x256xf32>
    %c49 = arith.constant 49 : index
    %473 = memref.load %arg3[%c49] : memref<144xf32, #tpu.memory_space<smem>>
    %474 = vector.broadcast %473 : f32 to vector<2x256xf32>
    %475 = arith.mulf %474, %468 : vector<2x256xf32>
    %476 = arith.addf %456, %475 : vector<2x256xf32>
    %c85 = arith.constant 85 : index
    %477 = memref.load %arg3[%c85] : memref<144xf32, #tpu.memory_space<smem>>
    %478 = vector.broadcast %477 : f32 to vector<2x256xf32>
    %479 = arith.mulf %478, %468 : vector<2x256xf32>
    %480 = arith.addf %460, %479 : vector<2x256xf32>
    %c121 = arith.constant 121 : index
    %481 = memref.load %arg3[%c121] : memref<144xf32, #tpu.memory_space<smem>>
    %482 = vector.broadcast %481 : f32 to vector<2x256xf32>
    %483 = arith.mulf %482, %468 : vector<2x256xf32>
    %484 = arith.addf %464, %483 : vector<2x256xf32>
    %cst_87 = arith.constant 0.000000e+00 : f32
    %485 = vector.shape_cast %444 : vector<1x256xi1> to vector<1x256xi1>
    %486 = vector.broadcast %485 : vector<1x256xi1> to vector<2x256xi1>
    %487 = vector.broadcast %cst_87 : f32 to vector<2x256xf32>
    %488 = arith.select %486, %7, %487 : vector<2x256xi1>, vector<2x256xf32>
    %c22 = arith.constant 22 : index
    %489 = memref.load %arg3[%c22] : memref<144xf32, #tpu.memory_space<smem>>
    %490 = vector.broadcast %489 : f32 to vector<2x256xf32>
    %491 = arith.mulf %490, %488 : vector<2x256xf32>
    %492 = arith.addf %472, %491 : vector<2x256xf32>
    %c58 = arith.constant 58 : index
    %493 = memref.load %arg3[%c58] : memref<144xf32, #tpu.memory_space<smem>>
    %494 = vector.broadcast %493 : f32 to vector<2x256xf32>
    %495 = arith.mulf %494, %488 : vector<2x256xf32>
    %496 = arith.addf %476, %495 : vector<2x256xf32>
    %c94 = arith.constant 94 : index
    %497 = memref.load %arg3[%c94] : memref<144xf32, #tpu.memory_space<smem>>
    %498 = vector.broadcast %497 : f32 to vector<2x256xf32>
    %499 = arith.mulf %498, %488 : vector<2x256xf32>
    %500 = arith.addf %480, %499 : vector<2x256xf32>
    %c130 = arith.constant 130 : index
    %501 = memref.load %arg3[%c130] : memref<144xf32, #tpu.memory_space<smem>>
    %502 = vector.broadcast %501 : f32 to vector<2x256xf32>
    %503 = arith.mulf %502, %488 : vector<2x256xf32>
    %504 = arith.addf %484, %503 : vector<2x256xf32>
    %cst_88 = arith.constant 0.000000e+00 : f32
    %505 = vector.shape_cast %444 : vector<1x256xi1> to vector<1x256xi1>
    %506 = vector.broadcast %505 : vector<1x256xi1> to vector<2x256xi1>
    %507 = vector.broadcast %cst_88 : f32 to vector<2x256xf32>
    %508 = arith.select %506, %9, %507 : vector<2x256xi1>, vector<2x256xf32>
    %c31 = arith.constant 31 : index
    %509 = memref.load %arg3[%c31] : memref<144xf32, #tpu.memory_space<smem>>
    %510 = vector.broadcast %509 : f32 to vector<2x256xf32>
    %511 = arith.mulf %510, %508 : vector<2x256xf32>
    %512 = arith.addf %492, %511 : vector<2x256xf32>
    %c67 = arith.constant 67 : index
    %513 = memref.load %arg3[%c67] : memref<144xf32, #tpu.memory_space<smem>>
    %514 = vector.broadcast %513 : f32 to vector<2x256xf32>
    %515 = arith.mulf %514, %508 : vector<2x256xf32>
    %516 = arith.addf %496, %515 : vector<2x256xf32>
    %c103 = arith.constant 103 : index
    %517 = memref.load %arg3[%c103] : memref<144xf32, #tpu.memory_space<smem>>
    %518 = vector.broadcast %517 : f32 to vector<2x256xf32>
    %519 = arith.mulf %518, %508 : vector<2x256xf32>
    %520 = arith.addf %500, %519 : vector<2x256xf32>
    %c139 = arith.constant 139 : index
    %521 = memref.load %arg3[%c139] : memref<144xf32, #tpu.memory_space<smem>>
    %522 = vector.broadcast %521 : f32 to vector<2x256xf32>
    %523 = arith.mulf %522, %508 : vector<2x256xf32>
    %524 = arith.addf %504, %523 : vector<2x256xf32>
    %c0_i32_89 = arith.constant 0 : i32
    %525 = vector.broadcast %c0_i32_89 : i32 to vector<1x256xi32>
    %526 = arith.addi %0, %525 : vector<1x256xi32>
    %c0_i32_90 = arith.constant 0 : i32
    %527 = vector.broadcast %c0_i32_90 : i32 to vector<1x256xi32>
    %528 = arith.cmpi sge, %526, %527 : vector<1x256xi32>
    %c0_i32_91 = arith.constant 0 : i32
    %529 = vector.broadcast %c0_i32_91 : i32 to vector<1x256xi32>
    %530 = arith.addi %0, %529 : vector<1x256xi32>
    %c16_i32_92 = arith.constant 16 : i32
    %531 = vector.broadcast %c16_i32_92 : i32 to vector<1x256xi32>
    %532 = arith.cmpi slt, %530, %531 : vector<1x256xi32>
    %533 = arith.andi %528, %532 : vector<1x256xi1>
    %c1_i32_93 = arith.constant 1 : i32
    %534 = vector.broadcast %c1_i32_93 : i32 to vector<1x256xi32>
    %535 = arith.addi %1, %534 : vector<1x256xi32>
    %c0_i32_94 = arith.constant 0 : i32
    %536 = vector.broadcast %c0_i32_94 : i32 to vector<1x256xi32>
    %537 = arith.cmpi sge, %535, %536 : vector<1x256xi32>
    %538 = arith.andi %533, %537 : vector<1x256xi1>
    %c1_i32_95 = arith.constant 1 : i32
    %539 = vector.broadcast %c1_i32_95 : i32 to vector<1x256xi32>
    %540 = arith.addi %1, %539 : vector<1x256xi32>
    %c16_i32_96 = arith.constant 16 : i32
    %541 = vector.broadcast %c16_i32_96 : i32 to vector<1x256xi32>
    %542 = arith.cmpi slt, %540, %541 : vector<1x256xi32>
    %543 = arith.andi %538, %542 : vector<1x256xi1>
    %c255_i32 = arith.constant 255 : i32
    %544 = tpu.dynamic_rotate %3 by %c255_i32 dim 1 : vector<2x256xf32>, i32 -> vector<2x256xf32>
    %cst_97 = arith.constant 0.000000e+00 : f32
    %545 = vector.shape_cast %543 : vector<1x256xi1> to vector<1x256xi1>
    %546 = vector.broadcast %545 : vector<1x256xi1> to vector<2x256xi1>
    %547 = vector.broadcast %cst_97 : f32 to vector<2x256xf32>
    %548 = arith.select %546, %544, %547 : vector<2x256xi1>, vector<2x256xf32>
    %c5 = arith.constant 5 : index
    %549 = memref.load %arg3[%c5] : memref<144xf32, #tpu.memory_space<smem>>
    %550 = vector.broadcast %549 : f32 to vector<2x256xf32>
    %551 = arith.mulf %550, %548 : vector<2x256xf32>
    %552 = arith.addf %512, %551 : vector<2x256xf32>
    %c41 = arith.constant 41 : index
    %553 = memref.load %arg3[%c41] : memref<144xf32, #tpu.memory_space<smem>>
    %554 = vector.broadcast %553 : f32 to vector<2x256xf32>
    %555 = arith.mulf %554, %548 : vector<2x256xf32>
    %556 = arith.addf %516, %555 : vector<2x256xf32>
    %c77 = arith.constant 77 : index
    %557 = memref.load %arg3[%c77] : memref<144xf32, #tpu.memory_space<smem>>
    %558 = vector.broadcast %557 : f32 to vector<2x256xf32>
    %559 = arith.mulf %558, %548 : vector<2x256xf32>
    %560 = arith.addf %520, %559 : vector<2x256xf32>
    %c113 = arith.constant 113 : index
    %561 = memref.load %arg3[%c113] : memref<144xf32, #tpu.memory_space<smem>>
    %562 = vector.broadcast %561 : f32 to vector<2x256xf32>
    %563 = arith.mulf %562, %548 : vector<2x256xf32>
    %564 = arith.addf %524, %563 : vector<2x256xf32>
    %c255_i32_98 = arith.constant 255 : i32
    %565 = tpu.dynamic_rotate %5 by %c255_i32_98 dim 1 : vector<2x256xf32>, i32 -> vector<2x256xf32>
    %cst_99 = arith.constant 0.000000e+00 : f32
    %566 = vector.shape_cast %543 : vector<1x256xi1> to vector<1x256xi1>
    %567 = vector.broadcast %566 : vector<1x256xi1> to vector<2x256xi1>
    %568 = vector.broadcast %cst_99 : f32 to vector<2x256xf32>
    %569 = arith.select %567, %565, %568 : vector<2x256xi1>, vector<2x256xf32>
    %c14 = arith.constant 14 : index
    %570 = memref.load %arg3[%c14] : memref<144xf32, #tpu.memory_space<smem>>
    %571 = vector.broadcast %570 : f32 to vector<2x256xf32>
    %572 = arith.mulf %571, %569 : vector<2x256xf32>
    %573 = arith.addf %552, %572 : vector<2x256xf32>
    %c50 = arith.constant 50 : index
    %574 = memref.load %arg3[%c50] : memref<144xf32, #tpu.memory_space<smem>>
    %575 = vector.broadcast %574 : f32 to vector<2x256xf32>
    %576 = arith.mulf %575, %569 : vector<2x256xf32>
    %577 = arith.addf %556, %576 : vector<2x256xf32>
    %c86 = arith.constant 86 : index
    %578 = memref.load %arg3[%c86] : memref<144xf32, #tpu.memory_space<smem>>
    %579 = vector.broadcast %578 : f32 to vector<2x256xf32>
    %580 = arith.mulf %579, %569 : vector<2x256xf32>
    %581 = arith.addf %560, %580 : vector<2x256xf32>
    %c122 = arith.constant 122 : index
    %582 = memref.load %arg3[%c122] : memref<144xf32, #tpu.memory_space<smem>>
    %583 = vector.broadcast %582 : f32 to vector<2x256xf32>
    %584 = arith.mulf %583, %569 : vector<2x256xf32>
    %585 = arith.addf %564, %584 : vector<2x256xf32>
    %c255_i32_100 = arith.constant 255 : i32
    %586 = tpu.dynamic_rotate %7 by %c255_i32_100 dim 1 : vector<2x256xf32>, i32 -> vector<2x256xf32>
    %cst_101 = arith.constant 0.000000e+00 : f32
    %587 = vector.shape_cast %543 : vector<1x256xi1> to vector<1x256xi1>
    %588 = vector.broadcast %587 : vector<1x256xi1> to vector<2x256xi1>
    %589 = vector.broadcast %cst_101 : f32 to vector<2x256xf32>
    %590 = arith.select %588, %586, %589 : vector<2x256xi1>, vector<2x256xf32>
    %c23 = arith.constant 23 : index
    %591 = memref.load %arg3[%c23] : memref<144xf32, #tpu.memory_space<smem>>
    %592 = vector.broadcast %591 : f32 to vector<2x256xf32>
    %593 = arith.mulf %592, %590 : vector<2x256xf32>
    %594 = arith.addf %573, %593 : vector<2x256xf32>
    %c59 = arith.constant 59 : index
    %595 = memref.load %arg3[%c59] : memref<144xf32, #tpu.memory_space<smem>>
    %596 = vector.broadcast %595 : f32 to vector<2x256xf32>
    %597 = arith.mulf %596, %590 : vector<2x256xf32>
    %598 = arith.addf %577, %597 : vector<2x256xf32>
    %c95 = arith.constant 95 : index
    %599 = memref.load %arg3[%c95] : memref<144xf32, #tpu.memory_space<smem>>
    %600 = vector.broadcast %599 : f32 to vector<2x256xf32>
    %601 = arith.mulf %600, %590 : vector<2x256xf32>
    %602 = arith.addf %581, %601 : vector<2x256xf32>
    %c131 = arith.constant 131 : index
    %603 = memref.load %arg3[%c131] : memref<144xf32, #tpu.memory_space<smem>>
    %604 = vector.broadcast %603 : f32 to vector<2x256xf32>
    %605 = arith.mulf %604, %590 : vector<2x256xf32>
    %606 = arith.addf %585, %605 : vector<2x256xf32>
    %c255_i32_102 = arith.constant 255 : i32
    %607 = tpu.dynamic_rotate %9 by %c255_i32_102 dim 1 : vector<2x256xf32>, i32 -> vector<2x256xf32>
    %cst_103 = arith.constant 0.000000e+00 : f32
    %608 = vector.shape_cast %543 : vector<1x256xi1> to vector<1x256xi1>
    %609 = vector.broadcast %608 : vector<1x256xi1> to vector<2x256xi1>
    %610 = vector.broadcast %cst_103 : f32 to vector<2x256xf32>
    %611 = arith.select %609, %607, %610 : vector<2x256xi1>, vector<2x256xf32>
    %c32 = arith.constant 32 : index
    %612 = memref.load %arg3[%c32] : memref<144xf32, #tpu.memory_space<smem>>
    %613 = vector.broadcast %612 : f32 to vector<2x256xf32>
    %614 = arith.mulf %613, %611 : vector<2x256xf32>
    %615 = arith.addf %594, %614 : vector<2x256xf32>
    %c68 = arith.constant 68 : index
    %616 = memref.load %arg3[%c68] : memref<144xf32, #tpu.memory_space<smem>>
    %617 = vector.broadcast %616 : f32 to vector<2x256xf32>
    %618 = arith.mulf %617, %611 : vector<2x256xf32>
    %619 = arith.addf %598, %618 : vector<2x256xf32>
    %c104 = arith.constant 104 : index
    %620 = memref.load %arg3[%c104] : memref<144xf32, #tpu.memory_space<smem>>
    %621 = vector.broadcast %620 : f32 to vector<2x256xf32>
    %622 = arith.mulf %621, %611 : vector<2x256xf32>
    %623 = arith.addf %602, %622 : vector<2x256xf32>
    %c140 = arith.constant 140 : index
    %624 = memref.load %arg3[%c140] : memref<144xf32, #tpu.memory_space<smem>>
    %625 = vector.broadcast %624 : f32 to vector<2x256xf32>
    %626 = arith.mulf %625, %611 : vector<2x256xf32>
    %627 = arith.addf %606, %626 : vector<2x256xf32>
    %c1_i32_104 = arith.constant 1 : i32
    %628 = vector.broadcast %c1_i32_104 : i32 to vector<1x256xi32>
    %629 = arith.addi %0, %628 : vector<1x256xi32>
    %c0_i32_105 = arith.constant 0 : i32
    %630 = vector.broadcast %c0_i32_105 : i32 to vector<1x256xi32>
    %631 = arith.cmpi sge, %629, %630 : vector<1x256xi32>
    %c1_i32_106 = arith.constant 1 : i32
    %632 = vector.broadcast %c1_i32_106 : i32 to vector<1x256xi32>
    %633 = arith.addi %0, %632 : vector<1x256xi32>
    %c16_i32_107 = arith.constant 16 : i32
    %634 = vector.broadcast %c16_i32_107 : i32 to vector<1x256xi32>
    %635 = arith.cmpi slt, %633, %634 : vector<1x256xi32>
    %636 = arith.andi %631, %635 : vector<1x256xi1>
    %c-1_i32_108 = arith.constant -1 : i32
    %637 = vector.broadcast %c-1_i32_108 : i32 to vector<1x256xi32>
    %638 = arith.addi %1, %637 : vector<1x256xi32>
    %c0_i32_109 = arith.constant 0 : i32
    %639 = vector.broadcast %c0_i32_109 : i32 to vector<1x256xi32>
    %640 = arith.cmpi sge, %638, %639 : vector<1x256xi32>
    %641 = arith.andi %636, %640 : vector<1x256xi1>
    %c-1_i32_110 = arith.constant -1 : i32
    %642 = vector.broadcast %c-1_i32_110 : i32 to vector<1x256xi32>
    %643 = arith.addi %1, %642 : vector<1x256xi32>
    %c16_i32_111 = arith.constant 16 : i32
    %644 = vector.broadcast %c16_i32_111 : i32 to vector<1x256xi32>
    %645 = arith.cmpi slt, %643, %644 : vector<1x256xi32>
    %646 = arith.andi %641, %645 : vector<1x256xi1>
    %c241_i32 = arith.constant 241 : i32
    %647 = tpu.dynamic_rotate %3 by %c241_i32 dim 1 : vector<2x256xf32>, i32 -> vector<2x256xf32>
    %cst_112 = arith.constant 0.000000e+00 : f32
    %648 = vector.shape_cast %646 : vector<1x256xi1> to vector<1x256xi1>
    %649 = vector.broadcast %648 : vector<1x256xi1> to vector<2x256xi1>
    %650 = vector.broadcast %cst_112 : f32 to vector<2x256xf32>
    %651 = arith.select %649, %647, %650 : vector<2x256xi1>, vector<2x256xf32>
    %c6 = arith.constant 6 : index
    %652 = memref.load %arg3[%c6] : memref<144xf32, #tpu.memory_space<smem>>
    %653 = vector.broadcast %652 : f32 to vector<2x256xf32>
    %654 = arith.mulf %653, %651 : vector<2x256xf32>
    %655 = arith.addf %615, %654 : vector<2x256xf32>
    %c42 = arith.constant 42 : index
    %656 = memref.load %arg3[%c42] : memref<144xf32, #tpu.memory_space<smem>>
    %657 = vector.broadcast %656 : f32 to vector<2x256xf32>
    %658 = arith.mulf %657, %651 : vector<2x256xf32>
    %659 = arith.addf %619, %658 : vector<2x256xf32>
    %c78 = arith.constant 78 : index
    %660 = memref.load %arg3[%c78] : memref<144xf32, #tpu.memory_space<smem>>
    %661 = vector.broadcast %660 : f32 to vector<2x256xf32>
    %662 = arith.mulf %661, %651 : vector<2x256xf32>
    %663 = arith.addf %623, %662 : vector<2x256xf32>
    %c114 = arith.constant 114 : index
    %664 = memref.load %arg3[%c114] : memref<144xf32, #tpu.memory_space<smem>>
    %665 = vector.broadcast %664 : f32 to vector<2x256xf32>
    %666 = arith.mulf %665, %651 : vector<2x256xf32>
    %667 = arith.addf %627, %666 : vector<2x256xf32>
    %c241_i32_113 = arith.constant 241 : i32
    %668 = tpu.dynamic_rotate %5 by %c241_i32_113 dim 1 : vector<2x256xf32>, i32 -> vector<2x256xf32>
    %cst_114 = arith.constant 0.000000e+00 : f32
    %669 = vector.shape_cast %646 : vector<1x256xi1> to vector<1x256xi1>
    %670 = vector.broadcast %669 : vector<1x256xi1> to vector<2x256xi1>
    %671 = vector.broadcast %cst_114 : f32 to vector<2x256xf32>
    %672 = arith.select %670, %668, %671 : vector<2x256xi1>, vector<2x256xf32>
    %c15 = arith.constant 15 : index
    %673 = memref.load %arg3[%c15] : memref<144xf32, #tpu.memory_space<smem>>
    %674 = vector.broadcast %673 : f32 to vector<2x256xf32>
    %675 = arith.mulf %674, %672 : vector<2x256xf32>
    %676 = arith.addf %655, %675 : vector<2x256xf32>
    %c51 = arith.constant 51 : index
    %677 = memref.load %arg3[%c51] : memref<144xf32, #tpu.memory_space<smem>>
    %678 = vector.broadcast %677 : f32 to vector<2x256xf32>
    %679 = arith.mulf %678, %672 : vector<2x256xf32>
    %680 = arith.addf %659, %679 : vector<2x256xf32>
    %c87 = arith.constant 87 : index
    %681 = memref.load %arg3[%c87] : memref<144xf32, #tpu.memory_space<smem>>
    %682 = vector.broadcast %681 : f32 to vector<2x256xf32>
    %683 = arith.mulf %682, %672 : vector<2x256xf32>
    %684 = arith.addf %663, %683 : vector<2x256xf32>
    %c123 = arith.constant 123 : index
    %685 = memref.load %arg3[%c123] : memref<144xf32, #tpu.memory_space<smem>>
    %686 = vector.broadcast %685 : f32 to vector<2x256xf32>
    %687 = arith.mulf %686, %672 : vector<2x256xf32>
    %688 = arith.addf %667, %687 : vector<2x256xf32>
    %c241_i32_115 = arith.constant 241 : i32
    %689 = tpu.dynamic_rotate %7 by %c241_i32_115 dim 1 : vector<2x256xf32>, i32 -> vector<2x256xf32>
    %cst_116 = arith.constant 0.000000e+00 : f32
    %690 = vector.shape_cast %646 : vector<1x256xi1> to vector<1x256xi1>
    %691 = vector.broadcast %690 : vector<1x256xi1> to vector<2x256xi1>
    %692 = vector.broadcast %cst_116 : f32 to vector<2x256xf32>
    %693 = arith.select %691, %689, %692 : vector<2x256xi1>, vector<2x256xf32>
    %c24 = arith.constant 24 : index
    %694 = memref.load %arg3[%c24] : memref<144xf32, #tpu.memory_space<smem>>
    %695 = vector.broadcast %694 : f32 to vector<2x256xf32>
    %696 = arith.mulf %695, %693 : vector<2x256xf32>
    %697 = arith.addf %676, %696 : vector<2x256xf32>
    %c60 = arith.constant 60 : index
    %698 = memref.load %arg3[%c60] : memref<144xf32, #tpu.memory_space<smem>>
    %699 = vector.broadcast %698 : f32 to vector<2x256xf32>
    %700 = arith.mulf %699, %693 : vector<2x256xf32>
    %701 = arith.addf %680, %700 : vector<2x256xf32>
    %c96 = arith.constant 96 : index
    %702 = memref.load %arg3[%c96] : memref<144xf32, #tpu.memory_space<smem>>
    %703 = vector.broadcast %702 : f32 to vector<2x256xf32>
    %704 = arith.mulf %703, %693 : vector<2x256xf32>
    %705 = arith.addf %684, %704 : vector<2x256xf32>
    %c132 = arith.constant 132 : index
    %706 = memref.load %arg3[%c132] : memref<144xf32, #tpu.memory_space<smem>>
    %707 = vector.broadcast %706 : f32 to vector<2x256xf32>
    %708 = arith.mulf %707, %693 : vector<2x256xf32>
    %709 = arith.addf %688, %708 : vector<2x256xf32>
    %c241_i32_117 = arith.constant 241 : i32
    %710 = tpu.dynamic_rotate %9 by %c241_i32_117 dim 1 : vector<2x256xf32>, i32 -> vector<2x256xf32>
    %cst_118 = arith.constant 0.000000e+00 : f32
    %711 = vector.shape_cast %646 : vector<1x256xi1> to vector<1x256xi1>
    %712 = vector.broadcast %711 : vector<1x256xi1> to vector<2x256xi1>
    %713 = vector.broadcast %cst_118 : f32 to vector<2x256xf32>
    %714 = arith.select %712, %710, %713 : vector<2x256xi1>, vector<2x256xf32>
    %c33 = arith.constant 33 : index
    %715 = memref.load %arg3[%c33] : memref<144xf32, #tpu.memory_space<smem>>
    %716 = vector.broadcast %715 : f32 to vector<2x256xf32>
    %717 = arith.mulf %716, %714 : vector<2x256xf32>
    %718 = arith.addf %697, %717 : vector<2x256xf32>
    %c69 = arith.constant 69 : index
    %719 = memref.load %arg3[%c69] : memref<144xf32, #tpu.memory_space<smem>>
    %720 = vector.broadcast %719 : f32 to vector<2x256xf32>
    %721 = arith.mulf %720, %714 : vector<2x256xf32>
    %722 = arith.addf %701, %721 : vector<2x256xf32>
    %c105 = arith.constant 105 : index
    %723 = memref.load %arg3[%c105] : memref<144xf32, #tpu.memory_space<smem>>
    %724 = vector.broadcast %723 : f32 to vector<2x256xf32>
    %725 = arith.mulf %724, %714 : vector<2x256xf32>
    %726 = arith.addf %705, %725 : vector<2x256xf32>
    %c141 = arith.constant 141 : index
    %727 = memref.load %arg3[%c141] : memref<144xf32, #tpu.memory_space<smem>>
    %728 = vector.broadcast %727 : f32 to vector<2x256xf32>
    %729 = arith.mulf %728, %714 : vector<2x256xf32>
    %730 = arith.addf %709, %729 : vector<2x256xf32>
    %c1_i32_119 = arith.constant 1 : i32
    %731 = vector.broadcast %c1_i32_119 : i32 to vector<1x256xi32>
    %732 = arith.addi %0, %731 : vector<1x256xi32>
    %c0_i32_120 = arith.constant 0 : i32
    %733 = vector.broadcast %c0_i32_120 : i32 to vector<1x256xi32>
    %734 = arith.cmpi sge, %732, %733 : vector<1x256xi32>
    %c1_i32_121 = arith.constant 1 : i32
    %735 = vector.broadcast %c1_i32_121 : i32 to vector<1x256xi32>
    %736 = arith.addi %0, %735 : vector<1x256xi32>
    %c16_i32_122 = arith.constant 16 : i32
    %737 = vector.broadcast %c16_i32_122 : i32 to vector<1x256xi32>
    %738 = arith.cmpi slt, %736, %737 : vector<1x256xi32>
    %739 = arith.andi %734, %738 : vector<1x256xi1>
    %c0_i32_123 = arith.constant 0 : i32
    %740 = vector.broadcast %c0_i32_123 : i32 to vector<1x256xi32>
    %741 = arith.addi %1, %740 : vector<1x256xi32>
    %c0_i32_124 = arith.constant 0 : i32
    %742 = vector.broadcast %c0_i32_124 : i32 to vector<1x256xi32>
    %743 = arith.cmpi sge, %741, %742 : vector<1x256xi32>
    %744 = arith.andi %739, %743 : vector<1x256xi1>
    %c0_i32_125 = arith.constant 0 : i32
    %745 = vector.broadcast %c0_i32_125 : i32 to vector<1x256xi32>
    %746 = arith.addi %1, %745 : vector<1x256xi32>
    %c16_i32_126 = arith.constant 16 : i32
    %747 = vector.broadcast %c16_i32_126 : i32 to vector<1x256xi32>
    %748 = arith.cmpi slt, %746, %747 : vector<1x256xi32>
    %749 = arith.andi %744, %748 : vector<1x256xi1>
    %c240_i32 = arith.constant 240 : i32
    %750 = tpu.dynamic_rotate %3 by %c240_i32 dim 1 : vector<2x256xf32>, i32 -> vector<2x256xf32>
    %cst_127 = arith.constant 0.000000e+00 : f32
    %751 = vector.shape_cast %749 : vector<1x256xi1> to vector<1x256xi1>
    %752 = vector.broadcast %751 : vector<1x256xi1> to vector<2x256xi1>
    %753 = vector.broadcast %cst_127 : f32 to vector<2x256xf32>
    %754 = arith.select %752, %750, %753 : vector<2x256xi1>, vector<2x256xf32>
    %c7 = arith.constant 7 : index
    %755 = memref.load %arg3[%c7] : memref<144xf32, #tpu.memory_space<smem>>
    %756 = vector.broadcast %755 : f32 to vector<2x256xf32>
    %757 = arith.mulf %756, %754 : vector<2x256xf32>
    %758 = arith.addf %718, %757 : vector<2x256xf32>
    %c43 = arith.constant 43 : index
    %759 = memref.load %arg3[%c43] : memref<144xf32, #tpu.memory_space<smem>>
    %760 = vector.broadcast %759 : f32 to vector<2x256xf32>
    %761 = arith.mulf %760, %754 : vector<2x256xf32>
    %762 = arith.addf %722, %761 : vector<2x256xf32>
    %c79 = arith.constant 79 : index
    %763 = memref.load %arg3[%c79] : memref<144xf32, #tpu.memory_space<smem>>
    %764 = vector.broadcast %763 : f32 to vector<2x256xf32>
    %765 = arith.mulf %764, %754 : vector<2x256xf32>
    %766 = arith.addf %726, %765 : vector<2x256xf32>
    %c115 = arith.constant 115 : index
    %767 = memref.load %arg3[%c115] : memref<144xf32, #tpu.memory_space<smem>>
    %768 = vector.broadcast %767 : f32 to vector<2x256xf32>
    %769 = arith.mulf %768, %754 : vector<2x256xf32>
    %770 = arith.addf %730, %769 : vector<2x256xf32>
    %c240_i32_128 = arith.constant 240 : i32
    %771 = tpu.dynamic_rotate %5 by %c240_i32_128 dim 1 : vector<2x256xf32>, i32 -> vector<2x256xf32>
    %cst_129 = arith.constant 0.000000e+00 : f32
    %772 = vector.shape_cast %749 : vector<1x256xi1> to vector<1x256xi1>
    %773 = vector.broadcast %772 : vector<1x256xi1> to vector<2x256xi1>
    %774 = vector.broadcast %cst_129 : f32 to vector<2x256xf32>
    %775 = arith.select %773, %771, %774 : vector<2x256xi1>, vector<2x256xf32>
    %c16 = arith.constant 16 : index
    %776 = memref.load %arg3[%c16] : memref<144xf32, #tpu.memory_space<smem>>
    %777 = vector.broadcast %776 : f32 to vector<2x256xf32>
    %778 = arith.mulf %777, %775 : vector<2x256xf32>
    %779 = arith.addf %758, %778 : vector<2x256xf32>
    %c52 = arith.constant 52 : index
    %780 = memref.load %arg3[%c52] : memref<144xf32, #tpu.memory_space<smem>>
    %781 = vector.broadcast %780 : f32 to vector<2x256xf32>
    %782 = arith.mulf %781, %775 : vector<2x256xf32>
    %783 = arith.addf %762, %782 : vector<2x256xf32>
    %c88 = arith.constant 88 : index
    %784 = memref.load %arg3[%c88] : memref<144xf32, #tpu.memory_space<smem>>
    %785 = vector.broadcast %784 : f32 to vector<2x256xf32>
    %786 = arith.mulf %785, %775 : vector<2x256xf32>
    %787 = arith.addf %766, %786 : vector<2x256xf32>
    %c124 = arith.constant 124 : index
    %788 = memref.load %arg3[%c124] : memref<144xf32, #tpu.memory_space<smem>>
    %789 = vector.broadcast %788 : f32 to vector<2x256xf32>
    %790 = arith.mulf %789, %775 : vector<2x256xf32>
    %791 = arith.addf %770, %790 : vector<2x256xf32>
    %c240_i32_130 = arith.constant 240 : i32
    %792 = tpu.dynamic_rotate %7 by %c240_i32_130 dim 1 : vector<2x256xf32>, i32 -> vector<2x256xf32>
    %cst_131 = arith.constant 0.000000e+00 : f32
    %793 = vector.shape_cast %749 : vector<1x256xi1> to vector<1x256xi1>
    %794 = vector.broadcast %793 : vector<1x256xi1> to vector<2x256xi1>
    %795 = vector.broadcast %cst_131 : f32 to vector<2x256xf32>
    %796 = arith.select %794, %792, %795 : vector<2x256xi1>, vector<2x256xf32>
    %c25 = arith.constant 25 : index
    %797 = memref.load %arg3[%c25] : memref<144xf32, #tpu.memory_space<smem>>
    %798 = vector.broadcast %797 : f32 to vector<2x256xf32>
    %799 = arith.mulf %798, %796 : vector<2x256xf32>
    %800 = arith.addf %779, %799 : vector<2x256xf32>
    %c61 = arith.constant 61 : index
    %801 = memref.load %arg3[%c61] : memref<144xf32, #tpu.memory_space<smem>>
    %802 = vector.broadcast %801 : f32 to vector<2x256xf32>
    %803 = arith.mulf %802, %796 : vector<2x256xf32>
    %804 = arith.addf %783, %803 : vector<2x256xf32>
    %c97 = arith.constant 97 : index
    %805 = memref.load %arg3[%c97] : memref<144xf32, #tpu.memory_space<smem>>
    %806 = vector.broadcast %805 : f32 to vector<2x256xf32>
    %807 = arith.mulf %806, %796 : vector<2x256xf32>
    %808 = arith.addf %787, %807 : vector<2x256xf32>
    %c133 = arith.constant 133 : index
    %809 = memref.load %arg3[%c133] : memref<144xf32, #tpu.memory_space<smem>>
    %810 = vector.broadcast %809 : f32 to vector<2x256xf32>
    %811 = arith.mulf %810, %796 : vector<2x256xf32>
    %812 = arith.addf %791, %811 : vector<2x256xf32>
    %c240_i32_132 = arith.constant 240 : i32
    %813 = tpu.dynamic_rotate %9 by %c240_i32_132 dim 1 : vector<2x256xf32>, i32 -> vector<2x256xf32>
    %cst_133 = arith.constant 0.000000e+00 : f32
    %814 = vector.shape_cast %749 : vector<1x256xi1> to vector<1x256xi1>
    %815 = vector.broadcast %814 : vector<1x256xi1> to vector<2x256xi1>
    %816 = vector.broadcast %cst_133 : f32 to vector<2x256xf32>
    %817 = arith.select %815, %813, %816 : vector<2x256xi1>, vector<2x256xf32>
    %c34 = arith.constant 34 : index
    %818 = memref.load %arg3[%c34] : memref<144xf32, #tpu.memory_space<smem>>
    %819 = vector.broadcast %818 : f32 to vector<2x256xf32>
    %820 = arith.mulf %819, %817 : vector<2x256xf32>
    %821 = arith.addf %800, %820 : vector<2x256xf32>
    %c70 = arith.constant 70 : index
    %822 = memref.load %arg3[%c70] : memref<144xf32, #tpu.memory_space<smem>>
    %823 = vector.broadcast %822 : f32 to vector<2x256xf32>
    %824 = arith.mulf %823, %817 : vector<2x256xf32>
    %825 = arith.addf %804, %824 : vector<2x256xf32>
    %c106 = arith.constant 106 : index
    %826 = memref.load %arg3[%c106] : memref<144xf32, #tpu.memory_space<smem>>
    %827 = vector.broadcast %826 : f32 to vector<2x256xf32>
    %828 = arith.mulf %827, %817 : vector<2x256xf32>
    %829 = arith.addf %808, %828 : vector<2x256xf32>
    %c142 = arith.constant 142 : index
    %830 = memref.load %arg3[%c142] : memref<144xf32, #tpu.memory_space<smem>>
    %831 = vector.broadcast %830 : f32 to vector<2x256xf32>
    %832 = arith.mulf %831, %817 : vector<2x256xf32>
    %833 = arith.addf %812, %832 : vector<2x256xf32>
    %c1_i32_134 = arith.constant 1 : i32
    %834 = vector.broadcast %c1_i32_134 : i32 to vector<1x256xi32>
    %835 = arith.addi %0, %834 : vector<1x256xi32>
    %c0_i32_135 = arith.constant 0 : i32
    %836 = vector.broadcast %c0_i32_135 : i32 to vector<1x256xi32>
    %837 = arith.cmpi sge, %835, %836 : vector<1x256xi32>
    %c1_i32_136 = arith.constant 1 : i32
    %838 = vector.broadcast %c1_i32_136 : i32 to vector<1x256xi32>
    %839 = arith.addi %0, %838 : vector<1x256xi32>
    %c16_i32_137 = arith.constant 16 : i32
    %840 = vector.broadcast %c16_i32_137 : i32 to vector<1x256xi32>
    %841 = arith.cmpi slt, %839, %840 : vector<1x256xi32>
    %842 = arith.andi %837, %841 : vector<1x256xi1>
    %c1_i32_138 = arith.constant 1 : i32
    %843 = vector.broadcast %c1_i32_138 : i32 to vector<1x256xi32>
    %844 = arith.addi %1, %843 : vector<1x256xi32>
    %c0_i32_139 = arith.constant 0 : i32
    %845 = vector.broadcast %c0_i32_139 : i32 to vector<1x256xi32>
    %846 = arith.cmpi sge, %844, %845 : vector<1x256xi32>
    %847 = arith.andi %842, %846 : vector<1x256xi1>
    %c1_i32_140 = arith.constant 1 : i32
    %848 = vector.broadcast %c1_i32_140 : i32 to vector<1x256xi32>
    %849 = arith.addi %1, %848 : vector<1x256xi32>
    %c16_i32_141 = arith.constant 16 : i32
    %850 = vector.broadcast %c16_i32_141 : i32 to vector<1x256xi32>
    %851 = arith.cmpi slt, %849, %850 : vector<1x256xi32>
    %852 = arith.andi %847, %851 : vector<1x256xi1>
    %c239_i32 = arith.constant 239 : i32
    %853 = tpu.dynamic_rotate %3 by %c239_i32 dim 1 : vector<2x256xf32>, i32 -> vector<2x256xf32>
    %cst_142 = arith.constant 0.000000e+00 : f32
    %854 = vector.shape_cast %852 : vector<1x256xi1> to vector<1x256xi1>
    %855 = vector.broadcast %854 : vector<1x256xi1> to vector<2x256xi1>
    %856 = vector.broadcast %cst_142 : f32 to vector<2x256xf32>
    %857 = arith.select %855, %853, %856 : vector<2x256xi1>, vector<2x256xf32>
    %c8 = arith.constant 8 : index
    %858 = memref.load %arg3[%c8] : memref<144xf32, #tpu.memory_space<smem>>
    %859 = vector.broadcast %858 : f32 to vector<2x256xf32>
    %860 = arith.mulf %859, %857 : vector<2x256xf32>
    %861 = arith.addf %821, %860 : vector<2x256xf32>
    %c44 = arith.constant 44 : index
    %862 = memref.load %arg3[%c44] : memref<144xf32, #tpu.memory_space<smem>>
    %863 = vector.broadcast %862 : f32 to vector<2x256xf32>
    %864 = arith.mulf %863, %857 : vector<2x256xf32>
    %865 = arith.addf %825, %864 : vector<2x256xf32>
    %c80 = arith.constant 80 : index
    %866 = memref.load %arg3[%c80] : memref<144xf32, #tpu.memory_space<smem>>
    %867 = vector.broadcast %866 : f32 to vector<2x256xf32>
    %868 = arith.mulf %867, %857 : vector<2x256xf32>
    %869 = arith.addf %829, %868 : vector<2x256xf32>
    %c116 = arith.constant 116 : index
    %870 = memref.load %arg3[%c116] : memref<144xf32, #tpu.memory_space<smem>>
    %871 = vector.broadcast %870 : f32 to vector<2x256xf32>
    %872 = arith.mulf %871, %857 : vector<2x256xf32>
    %873 = arith.addf %833, %872 : vector<2x256xf32>
    %c239_i32_143 = arith.constant 239 : i32
    %874 = tpu.dynamic_rotate %5 by %c239_i32_143 dim 1 : vector<2x256xf32>, i32 -> vector<2x256xf32>
    %cst_144 = arith.constant 0.000000e+00 : f32
    %875 = vector.shape_cast %852 : vector<1x256xi1> to vector<1x256xi1>
    %876 = vector.broadcast %875 : vector<1x256xi1> to vector<2x256xi1>
    %877 = vector.broadcast %cst_144 : f32 to vector<2x256xf32>
    %878 = arith.select %876, %874, %877 : vector<2x256xi1>, vector<2x256xf32>
    %c17 = arith.constant 17 : index
    %879 = memref.load %arg3[%c17] : memref<144xf32, #tpu.memory_space<smem>>
    %880 = vector.broadcast %879 : f32 to vector<2x256xf32>
    %881 = arith.mulf %880, %878 : vector<2x256xf32>
    %882 = arith.addf %861, %881 : vector<2x256xf32>
    %c53 = arith.constant 53 : index
    %883 = memref.load %arg3[%c53] : memref<144xf32, #tpu.memory_space<smem>>
    %884 = vector.broadcast %883 : f32 to vector<2x256xf32>
    %885 = arith.mulf %884, %878 : vector<2x256xf32>
    %886 = arith.addf %865, %885 : vector<2x256xf32>
    %c89 = arith.constant 89 : index
    %887 = memref.load %arg3[%c89] : memref<144xf32, #tpu.memory_space<smem>>
    %888 = vector.broadcast %887 : f32 to vector<2x256xf32>
    %889 = arith.mulf %888, %878 : vector<2x256xf32>
    %890 = arith.addf %869, %889 : vector<2x256xf32>
    %c125 = arith.constant 125 : index
    %891 = memref.load %arg3[%c125] : memref<144xf32, #tpu.memory_space<smem>>
    %892 = vector.broadcast %891 : f32 to vector<2x256xf32>
    %893 = arith.mulf %892, %878 : vector<2x256xf32>
    %894 = arith.addf %873, %893 : vector<2x256xf32>
    %c239_i32_145 = arith.constant 239 : i32
    %895 = tpu.dynamic_rotate %7 by %c239_i32_145 dim 1 : vector<2x256xf32>, i32 -> vector<2x256xf32>
    %cst_146 = arith.constant 0.000000e+00 : f32
    %896 = vector.shape_cast %852 : vector<1x256xi1> to vector<1x256xi1>
    %897 = vector.broadcast %896 : vector<1x256xi1> to vector<2x256xi1>
    %898 = vector.broadcast %cst_146 : f32 to vector<2x256xf32>
    %899 = arith.select %897, %895, %898 : vector<2x256xi1>, vector<2x256xf32>
    %c26 = arith.constant 26 : index
    %900 = memref.load %arg3[%c26] : memref<144xf32, #tpu.memory_space<smem>>
    %901 = vector.broadcast %900 : f32 to vector<2x256xf32>
    %902 = arith.mulf %901, %899 : vector<2x256xf32>
    %903 = arith.addf %882, %902 : vector<2x256xf32>
    %c62 = arith.constant 62 : index
    %904 = memref.load %arg3[%c62] : memref<144xf32, #tpu.memory_space<smem>>
    %905 = vector.broadcast %904 : f32 to vector<2x256xf32>
    %906 = arith.mulf %905, %899 : vector<2x256xf32>
    %907 = arith.addf %886, %906 : vector<2x256xf32>
    %c98 = arith.constant 98 : index
    %908 = memref.load %arg3[%c98] : memref<144xf32, #tpu.memory_space<smem>>
    %909 = vector.broadcast %908 : f32 to vector<2x256xf32>
    %910 = arith.mulf %909, %899 : vector<2x256xf32>
    %911 = arith.addf %890, %910 : vector<2x256xf32>
    %c134 = arith.constant 134 : index
    %912 = memref.load %arg3[%c134] : memref<144xf32, #tpu.memory_space<smem>>
    %913 = vector.broadcast %912 : f32 to vector<2x256xf32>
    %914 = arith.mulf %913, %899 : vector<2x256xf32>
    %915 = arith.addf %894, %914 : vector<2x256xf32>
    %c239_i32_147 = arith.constant 239 : i32
    %916 = tpu.dynamic_rotate %9 by %c239_i32_147 dim 1 : vector<2x256xf32>, i32 -> vector<2x256xf32>
    %cst_148 = arith.constant 0.000000e+00 : f32
    %917 = vector.shape_cast %852 : vector<1x256xi1> to vector<1x256xi1>
    %918 = vector.broadcast %917 : vector<1x256xi1> to vector<2x256xi1>
    %919 = vector.broadcast %cst_148 : f32 to vector<2x256xf32>
    %920 = arith.select %918, %916, %919 : vector<2x256xi1>, vector<2x256xf32>
    %c35 = arith.constant 35 : index
    %921 = memref.load %arg3[%c35] : memref<144xf32, #tpu.memory_space<smem>>
    %922 = vector.broadcast %921 : f32 to vector<2x256xf32>
    %923 = arith.mulf %922, %920 : vector<2x256xf32>
    %924 = arith.addf %903, %923 : vector<2x256xf32>
    %c71 = arith.constant 71 : index
    %925 = memref.load %arg3[%c71] : memref<144xf32, #tpu.memory_space<smem>>
    %926 = vector.broadcast %925 : f32 to vector<2x256xf32>
    %927 = arith.mulf %926, %920 : vector<2x256xf32>
    %928 = arith.addf %907, %927 : vector<2x256xf32>
    %c107 = arith.constant 107 : index
    %929 = memref.load %arg3[%c107] : memref<144xf32, #tpu.memory_space<smem>>
    %930 = vector.broadcast %929 : f32 to vector<2x256xf32>
    %931 = arith.mulf %930, %920 : vector<2x256xf32>
    %932 = arith.addf %911, %931 : vector<2x256xf32>
    %c143 = arith.constant 143 : index
    %933 = memref.load %arg3[%c143] : memref<144xf32, #tpu.memory_space<smem>>
    %934 = vector.broadcast %933 : f32 to vector<2x256xf32>
    %935 = arith.mulf %934, %920 : vector<2x256xf32>
    %936 = arith.addf %915, %935 : vector<2x256xf32>
    %c0_149 = arith.constant 0 : index
    %937 = memref.load %arg4[%c0_149] : memref<4xf32, #tpu.memory_space<smem>>
    %938 = vector.broadcast %937 : f32 to vector<2x256xf32>
    %939 = arith.addf %924, %938 : vector<2x256xf32>
    %940 = arith.negf %939 : vector<2x256xf32>
    %941 = math.exp %940 : vector<2x256xf32>
    %cst_150 = arith.constant 1.000000e+00 : f32
    %942 = vector.broadcast %cst_150 : f32 to vector<2x256xf32>
    %943 = arith.addf %942, %941 : vector<2x256xf32>
    %944 = arith.divf %942, %943 : vector<2x256xf32>
    %945 = arith.mulf %939, %944 : vector<2x256xf32>
    %c1_151 = arith.constant 1 : index
    %946 = memref.load %arg4[%c1_151] : memref<4xf32, #tpu.memory_space<smem>>
    %947 = vector.broadcast %946 : f32 to vector<2x256xf32>
    %948 = arith.addf %928, %947 : vector<2x256xf32>
    %949 = arith.negf %948 : vector<2x256xf32>
    %950 = math.exp %949 : vector<2x256xf32>
    %cst_152 = arith.constant 1.000000e+00 : f32
    %951 = vector.broadcast %cst_152 : f32 to vector<2x256xf32>
    %952 = arith.addf %951, %950 : vector<2x256xf32>
    %953 = arith.divf %951, %952 : vector<2x256xf32>
    %954 = arith.mulf %948, %953 : vector<2x256xf32>
    %c2_153 = arith.constant 2 : index
    %955 = memref.load %arg4[%c2_153] : memref<4xf32, #tpu.memory_space<smem>>
    %956 = vector.broadcast %955 : f32 to vector<2x256xf32>
    %957 = arith.addf %932, %956 : vector<2x256xf32>
    %958 = arith.negf %957 : vector<2x256xf32>
    %959 = math.exp %958 : vector<2x256xf32>
    %cst_154 = arith.constant 1.000000e+00 : f32
    %960 = vector.broadcast %cst_154 : f32 to vector<2x256xf32>
    %961 = arith.addf %960, %959 : vector<2x256xf32>
    %962 = arith.divf %960, %961 : vector<2x256xf32>
    %963 = arith.mulf %957, %962 : vector<2x256xf32>
    %c3_155 = arith.constant 3 : index
    %964 = memref.load %arg4[%c3_155] : memref<4xf32, #tpu.memory_space<smem>>
    %965 = vector.broadcast %964 : f32 to vector<2x256xf32>
    %966 = arith.addf %936, %965 : vector<2x256xf32>
    %967 = arith.negf %966 : vector<2x256xf32>
    %968 = math.exp %967 : vector<2x256xf32>
    %cst_156 = arith.constant 1.000000e+00 : f32
    %969 = vector.broadcast %cst_156 : f32 to vector<2x256xf32>
    %970 = arith.addf %969, %968 : vector<2x256xf32>
    %971 = arith.divf %969, %970 : vector<2x256xf32>
    %972 = arith.mulf %966, %971 : vector<2x256xf32>
    %973 = vector.shape_cast %945 : vector<2x256xf32> to vector<1x2x256xf32>
    %974 = vector.shape_cast %954 : vector<2x256xf32> to vector<1x2x256xf32>
    %975 = vector.shape_cast %963 : vector<2x256xf32> to vector<1x2x256xf32>
    %976 = vector.shape_cast %972 : vector<2x256xf32> to vector<1x2x256xf32>
    %977 = tpu.concatenate %973, %974, %975, %976 in 0 : vector<1x2x256xf32>, vector<1x2x256xf32>, vector<1x2x256xf32>, vector<1x2x256xf32> -> vector<4x2x256xf32>
    %c0_157 = arith.constant 0 : index
    %c0_158 = arith.constant 0 : index
    %c0_159 = arith.constant 0 : index
    %978 = vector.load %arg5[%c0_157, %c0_158, %c0_159] : memref<4x2x256xf32, #tpu.memory_space<vmem>>, vector<4x2x256xf32>
    tpu.vector_store %arg5[%c0_157, %c0_158, %c0_159], %977 {strides = array<i32>} : memref<4x2x256xf32, #tpu.memory_space<vmem>>, vector<4x2x256xf32>,
    return
  }
  func.func @transform_0(%arg0: i32) -> (i32, i32, i32) {
    %c0_i32 = arith.constant 0 : i32
    %c0_i32_0 = arith.constant 0 : i32
    %c0_i32_1 = arith.constant 0 : i32
    return %c0_i32, %arg0, %c0_i32_0 : i32, i32, i32
  }
  func.func @transform_1(%arg0: i32) -> (i32, i32) {
    %c0_i32 = arith.constant 0 : i32
    %c0_i32_0 = arith.constant 0 : i32
    %c0_i32_1 = arith.constant 0 : i32
    return %c0_i32, %c0_i32_0 : i32, i32
  }
  func.func @transform_2(%arg0: i32) -> i32 {
    %c0_i32 = arith.constant 0 : i32
    %c0_i32_0 = arith.constant 0 : i32
    return %c0_i32 : i32
  }
  func.func @transform_3(%arg0: i32) -> i32 {
    %c0_i32 = arith.constant 0 : i32
    %c0_i32_0 = arith.constant 0 : i32
    return %c0_i32 : i32
  }
  func.func @transform_4(%arg0: i32) -> (i32, i32, i32) {
    %c0_i32 = arith.constant 0 : i32
    %c0_i32_0 = arith.constant 0 : i32
    %c0_i32_1 = arith.constant 0 : i32
    return %c0_i32, %arg0, %c0_i32_0 : i32, i32, i32
  }
}

</mosaic_0001>

<bundles_post_ra>
// kernel: tpu_custom_call.1
= control target key start
LH: loop header
LB: loop body
LE: loop exit
PB: predicated region body
PF: predicated region fallthrough
CT: control target
= control target key end

     0   :  { %9 = vsyncpa [#allocation3], 0  ;;  %s3672_s0 = inlined_call_operand.hbm [shape: f32[4,2,256], index: 0, kind: input, shape index: {}]   ;;  %s3673_s1 = inlined_call_operand.hbm [shape: s32[2,256], index: 1, kind: input, shape index: {}]   ;;  %s3674_s2 = inlined_call_operand.hbm [shape: f32[144], index: 2, kind: input, shape index: {}]   ;;  %s3675_s3 = inlined_call_operand.vmem [shape: f32[4], index: 3, kind: input, shape index: {}]   ;;  %s3676_s4 = inlined_call_operand.hbm [shape: f32[4,2,256], index: 4, kind: output, shape index: {}]  }
   0x1   :  { %10 = vsyncpa [#allocation8], 0 }
   0x2   :  { %11 = vsyncpa [#allocation5], 0 }
   0x3   :  { %12 = vsyncpa [#allocation6], 0 }
   0x4   :  { %13 = vsyncpa [#allocation4], 0  ;;  %s18_s17 = sshll.u32 %s3672_s0, 4  ;;  %s2019_s18 = smov [#allocation2]   ;;  %s19_s17 = int_to_ptr.hbm [resolvable:$true] %s18_s17 }
   0x5   :  { %s20_s19 = sshll.u32 %s2019_s18, 4  ;;  %s32_s22 = sshll.u32 %s3673_s1, 4  ;;  %s21_s19 = int_to_ptr.vmem [resolvable:$true] %s20_s19  ;;  %s33_s22 = int_to_ptr.hbm [resolvable:$true] %s32_s22 }
   0x6   :  { %s2020_s23 = smov 64   ;;  %s2021_s24 = smov 4  }
   0x7   :  { %26 = dma.hbm_to_vmem [thread:$0]  %s19_s17, 256, %s21_s19, [#allocation3], %s2020_s23, %s2020_s23, %s2021_s24  }
   0x8   :  { %s2022_s25 = smov [#allocation7]   ;;  %s43_s0 = sshll.u32 %s3674_s2, 4  ;;  %s44_s0 = int_to_ptr.hbm [resolvable:$true] %s43_s0 }
   0x9   :  { %s34_s26 = sshll.u32 %s2022_s25, 4  ;;  %s52_s1 = sshll.u32 %s3675_s3, 4  ;;  %s35_s26 = int_to_ptr.vmem [resolvable:$true] %s34_s26  ;;  %s53_s1 = int_to_ptr.vmem [resolvable:$true] %s52_s1 }
   0xa   :  { %37 = dma.hbm_to_vmem [thread:$0]  %s33_s22, 64, %s35_s26, [#allocation8]  }
   0xb   :  { %s2023_s5 = smov [#allocation9]   ;;  %s2024_s6 = smov [#allocation10]  }
   0xc   :  { %46 = dma.hbm_to_smem %s44_s0, 32, %s2023_s5, [#allocation5]  }
   0xd   :  { %55 = dma.vmem_to_smem %s53_s1, 16, %s2024_s6, [#allocation6]  }
   0xe   :  { %2009 = dma.done.wait [#allocation3], 256  }
   0xf   :  { %2010 = vsyncadd [#allocation3], 4294967040 }
  0x10   :  { %2011 = dma.done.wait [#allocation8], 64  }
  0x11   :  { %2012 = vsyncadd [#allocation8], 4294967232 }
  0x12   :  { %2013 = dma.done.wait [#allocation5], 32  }
  0x13   :  { %2014 = vsyncadd [#allocation5], 4294967264 }
  0x14   :  { %2015 = dma.done.wait [#allocation6], 16  }
  0x15   :  { %2016 = vsyncadd [#allocation6], 4294967280 }
  0x16   :  { %72 = sfence }
  0x17   :  { %v2075_v0 = vld [vmem:[#allocation2] sm:$0xf]  ;;  %v2078_v1 = vld [vmem:[#allocation2 + $0x4] sm:$0xf]  ;;  %s2025_s2 = smov 17   ;;  %s2026_s3 = smov 16   ;;  %v102_v45 = vlaneseq }
  0x18   :  { %93 = vst [vmem:[#allocation1] ss:$4 sm:$0xff] %v2075_v0  ;;  %v2081_v4 = vld [vmem:[#allocation2 + $0x8] sm:$0xf]  ;;  %v2084_v7 = vld [vmem:[#allocation2 + $0xc] sm:$0xf] }
  0x19   :  { %s2027_s7 = smov 15   ;;  %s2028_s8 = smov 1   ;;  %v2141_v47 = vld [vmem:[#allocation7] ss:$2 sm:$0x3]  ;;  %v2148_v51 = vand.u32 127, %v102_v45 }
  0x1a   :  { %s2105_s9 = sld [smem:[#allocation9]]  ;;  %v2143_v48 = vld [vmem:[#allocation7 + $0x1] ss:$2 sm:$0x3]  ;;  %v83_v49 = vadd.s32 4294967295, %v2141_v47  ;;  %s2030_s30 = smov 127  }
  0x1b   :  { %s2107_s10 = sld [smem:[#allocation9 + $0x24]]  ;;  %v2151_v52 = vadd.s32 4294967295, %v2143_v48  ;;  %vm104_vm2 = vcmp.lt.s32.totalorder %v2148_v51, 17  ;;  %vm265_vm10 = vcmp.lt.s32.totalorder %v2148_v51, 16  ;;  %vm252_vm11 = vcmp.ge.s32.totalorder %v2143_v48, 0 }
  0x1c   :  { %s2109_s11 = sld [smem:[#allocation9 + $0x48]]  ;;  %vm84_vm0 = vcmp.ge.s32.totalorder %v83_v49, 0  ;;  %vm85_vm1 = vcmp.lt.s32.totalorder %v83_v49, 16  ;;  %vm254_vm13 = vcmp.lt.s32.totalorder %v2143_v48, 16 }
  0x1d   :  { %s2111_s12 = sld [smem:[#allocation9 + $0x6c]]  ;;  %vm2158_vm3 = vmand %vm84_vm0, %vm85_vm1  ;;  %vm88_vm4 = vcmp.ge.s32.totalorder %v2151_v52, 0  ;;  %vm90_vm5 = vcmp.lt.s32.totalorder %v2151_v52, 16  ;;  %vm424_vm1 = vcmp.lt.s32.totalorder %v2148_v51, 15 }
  0x1e   :  { %s2113_s13 = sld [smem:[#allocation9 + $0x9]]  ;;  %vm89_vm6 = vmand %vm2158_vm3, %vm88_vm4 }
  0x1f   :  { %v94_v2 = vld.sshfl [vmem:[#allocation1] sm:$0xff pattern:$0x73625140]  ;;  %v95_v3 = vld.sshfl [vmem:[#allocation1 + $0x8] sm:$0xff pattern:$0x73625140]  ;;  %vm91_vm7 = vmand %vm89_vm6, %vm90_vm5 }
  0x20   :  { %98 = vrot.lane.b32.xlu0 %v94_v2, %s2025_s2  ;;  %139 = vst [vmem:[#allocation1] ss:$4 sm:$0xff] %v2078_v1  ;;  %s2115_s14 = sld [smem:[#allocation9 + $0x2d]]  ;;  %v115_v58 = vstv %s2105_s9  ;;  %vm253_vm12 = vmand %vm2158_vm3, %vm252_vm11 }
  0x21   :  { %s2122_s15 = sld [smem:[#allocation9 + $0x51]]  ;;  %v121_v59 = vstv %s2107_s10  ;;  %vm255_vm14 = vmand %vm253_vm12, %vm254_vm13  ;;  %vm570_vm12 = vcmp.lt.s32.totalorder %v2141_v47, 16 }
  0x22   :  { %s2124_s16 = sld [smem:[#allocation9 + $0x75]]  ;;  %v127_v60 = vstv %s2109_s11 }
  0x23   :  { %s2126_s17 = sld [smem:[#allocation9 + $0x12]]  ;;  %v133_v61 = vstv %s2111_s12 }
  0x24   :  { %s2128_s18 = sld [smem:[#allocation9 + $0x36]]  ;;  %v153_v2 = vstv %s2113_s13 }
  0x25   :  { %s2130_s19 = sld [smem:[#allocation9 + $0x5a]] }
  0x26   :  { %s2132_s20 = sld [smem:[#allocation9 + $0x7e]] }
  0x27   :  { %v140_v5 = vld.sshfl [vmem:[#allocation1] sm:$0xff pattern:$0x73625140]  ;;  %v141_v6 = vld.sshfl [vmem:[#allocation1 + $0x8] sm:$0xff pattern:$0x73625140] }
  0x28   :  { %144 = vrot.lane.b32.xlu1 %v140_v5, %s2025_s2  ;;  %100 = vrot.lane.b32.xlu0 %v95_v3, %s2025_s2  ;;  %177 = vst [vmem:[#allocation1] ss:$4 sm:$0xff] %v2081_v4  ;;  %s2134_s21 = sld [smem:[#allocation9 + $0x1b]]  ;;  %v159_v3 = vstv %s2115_s14  ;;  %v165_v5 = vstv %s2122_s15 }
  0x29   :  { %s2146_s22 = sld [smem:[#allocation9 + $0x3f]] }
  0x2a   :  { %s2153_s25 = sld [smem:[#allocation9 + $0x63]] }
  0x2b   :  { %s2155_s26 = sld [smem:[#allocation9 + $0x87]] }
  0x2c   :  { %s2214_s27 = sld [smem:[#allocation9 + $0x1]] }
  0x2d   :  { %s2224_s28 = sld [smem:[#allocation9 + $0x25]] }
  0x2e   :  { %s2226_s0 = sld [smem:[#allocation9 + $0x49]] }
  0x2f   :  { %v178_v8 = vld.sshfl [vmem:[#allocation1] sm:$0xff pattern:$0x73625140]  ;;  %v179_v9 = vld.sshfl [vmem:[#allocation1 + $0x8] sm:$0xff pattern:$0x73625140] }
  0x30   :  { %146 = vrot.lane.b32.xlu1 %v141_v6, %s2025_s2  ;;  %215 = vst [vmem:[#allocation1] ss:$4 sm:$0xff] %v2084_v7  ;;  %182 = vrot.lane.b32.xlu2 %v178_v8, %s2025_s2  ;;  %v171_v6 = vstv %s2124_s16  ;;  %v3677_v8 = vmov 0   ;;  %s2228_s29 = sld [smem:[#allocation9 + $0x6d]] }
  0x31   :  { %s2233_s1 = sld [smem:[#allocation9 + $0xa]] }
  0x32   :  { %s2235_s5 = sld [smem:[#allocation9 + $0x2e]] }
  0x33   :  { %s2241_s6 = sld [smem:[#allocation9 + $0x52]] }
  0x34   :  { %s2283_s9 = sld [smem:[#allocation9 + $0x7f]] }
  0x35   :  { %s2294_s10 = sld [smem:[#allocation9 + $0x1c]] }
  0x36   :  { %s2304_s11 = sld [smem:[#allocation9 + $0x40]] }
  0x37   :  { %v217_v10 = vld.sshfl [vmem:[#allocation1 + $0x8] sm:$0xff pattern:$0x73625140]  ;;  %v216_v11 = vld.sshfl [vmem:[#allocation1] sm:$0xff pattern:$0x73625140] }
  0x38   :  { %222 = vrot.lane.b32.xlu1 %v217_v10, %s2025_s2  ;;  %220 = vrot.lane.b32.xlu0 %v216_v11, %s2025_s2  ;;  %256 = vst [vmem:[#allocation1] ss:$4 sm:$0xff] %v2075_v0  ;;  %v191_v10 = vstv %s2126_s17  ;;  %v197_v11 = vstv %s2128_s18  ;;  %s2312_s12 = sld [smem:[#allocation9 + $0x64]]  ;;  %s2031_s18 = smov 113  }
  0x39   :  { %184 = vrot.lane.b32.xlu2 %v179_v9, %s2025_s2  ;;  %v107_v9 = vsel %vm91_vm7, 1, %v3677_v8  ;;  %s2251_s2 = sld [smem:[#allocation9 + $0x76]] }
  0x3a   :  { %s2392_s13 = sld [smem:[#allocation9 + $0x88]] }
  0x3b   :  { %s2396_s14 = sld [smem:[#allocation9 + $0x2]] }
  0x3c   :  { %s2398_s15 = sld [smem:[#allocation9 + $0x26]] }
  0x3d   :  { %s2404_s16 = sld [smem:[#allocation9 + $0x4a]] }
  0x3e   :  { %s2412_s17 = sld [smem:[#allocation9 + $0x6e]] }
  0x3f   :  { %v258_v12 = vld.sshfl [vmem:[#allocation1 + $0x8] sm:$0xff pattern:$0x73625140]  ;;  %v257_v13 = vld.sshfl [vmem:[#allocation1] sm:$0xff pattern:$0x73625140] }
  0x40   :  { %263 = vrot.lane.b32.xlu0 %v258_v12, %s2026_s3  ;;  %299 = vst [vmem:[#allocation1] ss:$4 sm:$0xff] %v2078_v1  ;;  %v203_v12 = vstv %s2130_s19  ;;  %s2421_s19 = sld [smem:[#allocation9 + $0xb]] }
  0x41   :  { %261 = vrot.lane.b32.xlu2 %v257_v13, %s2026_s3 }
  0x46   :  { %v472_v53 = vstv %s2421_s19  ;;  %s2714_s19 = sld [smem:[#allocation9 + $0x66]] }
  0x47   :  { %v300_v14 = vld.sshfl [vmem:[#allocation1] sm:$0xff pattern:$0x73625140]  ;;  %v301_v15 = vld.sshfl [vmem:[#allocation1 + $0x8] sm:$0xff pattern:$0x73625140] }
  0x48   :  { %304 = vrot.lane.b32.xlu1 %v300_v14, %s2026_s3  ;;  %336 = vst [vmem:[#allocation1] ss:$4 sm:$0xff] %v2081_v4 }
  0x49   :  { %306 = vrot.lane.b32.xlu2 %v301_v15, %s2026_s3  ;;  %v108_v15 = vperm.slane %v107_v9, 0 }
  0x4b   :  { %vm2203_vm8 = vcmp.eq.s32.totalorder %v108_v15, 1 }
  0x4f   :  { %v338_v16 = vld.sshfl [vmem:[#allocation1 + $0x8] sm:$0xff pattern:$0x73625140]  ;;  %v337_v17 = vld.sshfl [vmem:[#allocation1] sm:$0xff pattern:$0x73625140] }
  0x50   :  { %343 = vrot.lane.b32.xlu1 %v338_v16, %s2026_s3  ;;  %341 = vrot.lane.b32.xlu0 %v337_v17, %s2026_s3  ;;  %373 = vst [vmem:[#allocation1] ss:$4 sm:$0xff] %v2084_v7  ;;  %v109_v16 = vperm.slane %v107_v9, 1  ;;  %v209_v17 = vstv %s2132_s20  ;;  %s2428_s20 = sld [smem:[#allocation9 + $0x2f]] }
  0x52   :  { %vm2207_vm9 = vcmp.eq.s32.totalorder %v109_v16, 1 }
  0x57   :  { %v375_v18 = vld.sshfl [vmem:[#allocation1 + $0x8] sm:$0xff pattern:$0x73625140]  ;;  %v374_v19 = vld.sshfl [vmem:[#allocation1] sm:$0xff pattern:$0x73625140] }
  0x58   :  { %380 = vrot.lane.b32.xlu0 %v375_v18, %s2026_s3  ;;  %415 = vst [vmem:[#allocation1] ss:$4 sm:$0xff] %v2075_v0  ;;  %378 = vrot.lane.b32.xlu2 %v374_v19, %s2026_s3  ;;  %s2259_s3 = sld [smem:[#allocation9 + $0x13]] }
  0x5f   :  { %v416_v20 = vld.sshfl [vmem:[#allocation1] sm:$0xff pattern:$0x73625140]  ;;  %v417_v21 = vld.sshfl [vmem:[#allocation1 + $0x8] sm:$0xff pattern:$0x73625140] }
  0x60   :  { %420 = vrot.lane.b32.xlu1 %v416_v20, %s2027_s7  ;;  %458 = vst [vmem:[#allocation1] ss:$4 sm:$0xff] %v2078_v1  ;;  %422 = vrot.lane.b32.xlu2 %v417_v21, %s2027_s7  ;;  %v229_v21 = vstv %s2134_s21  ;;  %s2437_s21 = sld [smem:[#allocation9 + $0x53]] }
  0x67   :  { %v460_v22 = vld.sshfl [vmem:[#allocation1 + $0x8] sm:$0xff pattern:$0x73625140]  ;;  %v459_v23 = vld.sshfl [vmem:[#allocation1] sm:$0xff pattern:$0x73625140] }
  0x68   :  { %465 = vrot.lane.b32.xlu1 %v460_v22, %s2027_s7  ;;  %463 = vrot.lane.b32.xlu0 %v459_v23, %s2027_s7  ;;  %495 = vst [vmem:[#allocation1] ss:$4 sm:$0xff] %v2081_v4  ;;  %v235_v22 = vstv %s2146_s22  ;;  %v241_v23 = vstv %s2153_s25  ;;  %s2447_s22 = sld [smem:[#allocation9 + $0x77]] }
  0x69   :  { %s2455_s25 = sld [smem:[#allocation9 + $0x14]] }
  0x6f   :  { %v497_v24 = vld.sshfl [vmem:[#allocation1 + $0x8] sm:$0xff pattern:$0x73625140]  ;;  %v496_v25 = vld.sshfl [vmem:[#allocation1] sm:$0xff pattern:$0x73625140] }
  0x70   :  { %502 = vrot.lane.b32.xlu0 %v497_v24, %s2027_s7  ;;  %532 = vst [vmem:[#allocation1] ss:$4 sm:$0xff] %v2084_v7  ;;  %500 = vrot.lane.b32.xlu2 %v496_v25, %s2027_s7 }
  0x77   :  { %v533_v26 = vld.sshfl [vmem:[#allocation1] sm:$0xff pattern:$0x73625140]  ;;  %v534_v27 = vld.sshfl [vmem:[#allocation1 + $0x8] sm:$0xff pattern:$0x73625140] }
  0x78   :  { %537 = vrot.lane.b32.xlu1 %v533_v26, %s2027_s7  ;;  %574 = vst [vmem:[#allocation1] ss:$4 sm:$0xff] %v2075_v0  ;;  %539 = vrot.lane.b32.xlu2 %v534_v27, %s2027_s7  ;;  %v247_v26 = vstv %s2155_s26  ;;  %s2269_s7 = sld [smem:[#allocation9 + $0x37]] }
  0x79   :  { %s2463_s26 = sld [smem:[#allocation9 + $0x38]] }
  0x7f   :  { %v576_v28 = vld.sshfl [vmem:[#allocation1 + $0x8] sm:$0xff pattern:$0x73625140]  ;;  %v575_v29 = vld.sshfl [vmem:[#allocation1] sm:$0xff pattern:$0x73625140] }
  0x80   :  { %581 = vrot.lane.b32.xlu1 %v576_v28, %s2028_s8  ;;  %579 = vrot.lane.b32.xlu0 %v575_v29, %s2028_s8  ;;  %617 = vst [vmem:[#allocation1] ss:$4 sm:$0xff] %v2078_v1 }
  0x87   :  { %v619_v30 = vld.sshfl [vmem:[#allocation1 + $0x8] sm:$0xff pattern:$0x73625140]  ;;  %v618_v31 = vld.sshfl [vmem:[#allocation1] sm:$0xff pattern:$0x73625140] }
  0x88   :  { %624 = vrot.lane.b32.xlu0 %v619_v30, %s2028_s8  ;;  %654 = vst [vmem:[#allocation1] ss:$4 sm:$0xff] %v2081_v4  ;;  %622 = vrot.lane.b32.xlu2 %v618_v31, %s2028_s8 }
  0x8a   :  { %v183_v44 = vpop.permute.xlu2 %182 }
  0x8f   :  { %v655_v32 = vld.sshfl [vmem:[#allocation1] sm:$0xff pattern:$0x73625140]  ;;  %v656_v33 = vld.sshfl [vmem:[#allocation1 + $0x8] sm:$0xff pattern:$0x73625140] }
  0x90   :  { %659 = vrot.lane.b32.xlu1 %v655_v32, %s2028_s8  ;;  %691 = vst [vmem:[#allocation1] ss:$4 sm:$0xff] %v2084_v7  ;;  %661 = vrot.lane.b32.xlu2 %v656_v33, %s2028_s8 }
  0x92   :  { %v99_v40 = vpop.permute.xlu0 %98 }
  0x93   :  { %v185_v13 = vpop.permute.xlu2 %184 }
  0x94   :  { %v186_v18 = vsel %vm104_vm2, %v183_v44, %v185_v13  ;;  %v187_v19 = vsel %vm104_vm2, %v185_v13, %v183_v44 }
  0x97   :  { %v693_v34 = vld.sshfl [vmem:[#allocation1 + $0x8] sm:$0xff pattern:$0x73625140]  ;;  %v692_v35 = vld.sshfl [vmem:[#allocation1] sm:$0xff pattern:$0x73625140] }
  0x98   :  { %698 = vrot.lane.b32.xlu1 %v693_v34, %s2028_s8  ;;  %696 = vrot.lane.b32.xlu0 %v692_v35, %s2028_s8  ;;  %735 = vst [vmem:[#allocation1] ss:$4 sm:$0xff] %v2075_v0  ;;  %s2273_s8 = sld [smem:[#allocation9 + $0x5b]] }
  0x9a   :  { %v145_v41 = vpop.permute.xlu1 %144  ;;  %v101_v46 = vpop.permute.xlu0 %100 }
  0x9b   :  { %v105_v54 = vsel %vm104_vm2, %v99_v40, %v101_v46  ;;  %v106_v55 = vsel %vm104_vm2, %v101_v46, %v99_v40  ;;  %v2237_v16 = vpop.permute.xlu2 %261 }
  0x9c   :  { %v112_v28 = vsel %vm2203_vm8, %v106_v55, 0.0  ;;  %v113_v29 = vsel %vm2207_vm9, %v105_v54, 0.0 }
  0x9d   :  { %v116_v32 = vmul.f32 %v115_v58, %v112_v28  ;;  %v117_v33 = vmul.f32 %v115_v58, %v113_v29  ;;  %v122_v34 = vmul.f32 %v121_v59, %v112_v28  ;;  %v123_v35 = vmul.f32 %v121_v59, %v113_v29 }
  0x9e   :  { %v128_v40 = vmul.f32 %v127_v60, %v112_v28  ;;  %v134_v44 = vmul.f32 %v133_v61, %v112_v28  ;;  %v135_v45 = vmul.f32 %v133_v61, %v113_v29 }
  0x9f   :  { %v2100_v36 = vld.sshfl [vmem:[#allocation1] sm:$0xff pattern:$0x73625140]  ;;  %v2102_v37 = vld.sshfl [vmem:[#allocation1 + $0x8] sm:$0xff pattern:$0x73625140] }
  0xa0   :  { %766 = vst [vmem:[#allocation1] ss:$4 sm:$0xff] %v2078_v1 }
  0xa2   :  { %v147_v50 = vpop.permute.xlu1 %146 }
  0xa3   :  { %v148_v56 = vsel %vm104_vm2, %v145_v41, %v147_v50  ;;  %v149_v57 = vsel %vm104_vm2, %v147_v50, %v145_v41  ;;  %v129_v41 = vmul.f32 %v127_v60, %v113_v29  ;;  %v188_v29 = vsel %vm2203_vm8, %v187_v19, 0.0 }
  0xa4   :  { %v150_v30 = vsel %vm2203_vm8, %v149_v57, 0.0  ;;  %v151_v31 = vsel %vm2207_vm9, %v148_v56, 0.0  ;;  %v204_v19 = vmul.f32 %v203_v12, %v188_v29 }
  0xa5   :  { %v154_v50 = vmul.f32 %v153_v2, %v150_v30  ;;  %v155_v54 = vmul.f32 %v153_v2, %v151_v31  ;;  %v160_v55 = vmul.f32 %v159_v3, %v150_v30  ;;  %v161_v56 = vmul.f32 %v159_v3, %v151_v31 }
  0xa6   :  { %v166_v57 = vmul.f32 %v165_v5, %v150_v30  ;;  %v167_v58 = vmul.f32 %v165_v5, %v151_v31  ;;  %v172_v59 = vmul.f32 %v171_v6, %v150_v30  ;;  %v173_v15 = vmul.f32 %v171_v6, %v151_v31 }
  0xa7   :  { %v2117_v38 = vld.sshfl [vmem:[#allocation1] sm:$0xff pattern:$0x73625140]  ;;  %v2119_v39 = vld.sshfl [vmem:[#allocation1 + $0x8] sm:$0xff pattern:$0x73625140]  ;;  %v156_v60 = vadd.f32 %v154_v50, %v116_v32  ;;  %v157_v61 = vadd.f32 %v155_v54, %v117_v33  ;;  %v162_v9 = vadd.f32 %v160_v55, %v122_v34  ;;  %v163_v13 = vadd.f32 %v161_v56, %v123_v35 }
  0xa8   :  { %797 = vst [vmem:[#allocation1] ss:$4 sm:$0xff] %v2081_v4  ;;  %v168_v2 = vadd.f32 %v166_v57, %v128_v40  ;;  %v169_v3 = vadd.f32 %v167_v58, %v129_v41  ;;  %v174_v5 = vadd.f32 %v172_v59, %v134_v44  ;;  %v189_v30 = vsel %vm2207_vm9, %v186_v18, 0.0 }
  0xa9   :  { %v175_v31 = vadd.f32 %v173_v15, %v135_v45  ;;  %v192_v33 = vmul.f32 %v191_v10, %v188_v29  ;;  %v193_v34 = vmul.f32 %v191_v10, %v189_v30  ;;  %v198_v35 = vmul.f32 %v197_v11, %v188_v29 }
  0xaa   :  { %v221_v14 = vpop.permute.xlu0 %220  ;;  %v223_v20 = vpop.permute.xlu1 %222  ;;  %v199_v18 = vmul.f32 %v197_v11, %v189_v30  ;;  %v211_v10 = vmul.f32 %v209_v17, %v189_v30  ;;  %v206_v44 = vadd.f32 %v204_v19, %v168_v2  ;;  %v325_v19 = vstv %s2241_s6  ;;  %s2591_s6 = sld [smem:[#allocation9 + $0x3]] }
  0xab   :  { %v224_v27 = vsel %vm104_vm2, %v221_v14, %v223_v20  ;;  %v225_v32 = vsel %vm104_vm2, %v223_v20, %v221_v14  ;;  %v205_v14 = vmul.f32 %v203_v12, %v189_v30  ;;  %v210_v20 = vmul.f32 %v209_v17, %v188_v29 }
  0xac   :  { %v227_v6 = vsel %vm2207_vm9, %v224_v27, 0.0  ;;  %v194_v25 = vadd.f32 %v192_v33, %v156_v60  ;;  %v195_v27 = vadd.f32 %v193_v34, %v157_v61  ;;  %v200_v40 = vadd.f32 %v198_v35, %v162_v9 }
  0xad   :  { %v201_v12 = vadd.f32 %v199_v18, %v163_v13  ;;  %v207_v45 = vadd.f32 %v205_v14, %v169_v3  ;;  %v213_v17 = vadd.f32 %v211_v10, %v175_v31  ;;  %v226_v50 = vsel %vm2203_vm8, %v225_v32, 0.0 }
  0xae   :  { %v231_v54 = vmul.f32 %v229_v21, %v227_v6  ;;  %v237_v55 = vmul.f32 %v235_v22, %v227_v6  ;;  %v230_v56 = vmul.f32 %v229_v21, %v226_v50  ;;  %v236_v57 = vmul.f32 %v235_v22, %v226_v50 }
  0xaf   :  { %v2136_v42 = vld.sshfl [vmem:[#allocation1] sm:$0xff pattern:$0x73625140]  ;;  %v2138_v43 = vld.sshfl [vmem:[#allocation1 + $0x8] sm:$0xff pattern:$0x73625140]  ;;  %v242_v58 = vmul.f32 %v241_v23, %v226_v50  ;;  %v243_v59 = vmul.f32 %v241_v23, %v227_v6  ;;  %v248_v61 = vmul.f32 %v247_v26, %v226_v50  ;;  %v249_v21 = vmul.f32 %v247_v26, %v227_v6  ;;  %v307_v26 = vpop.permute.xlu2 %306 }
  0xb0   :  { %828 = vst [vmem:[#allocation1] ss:$4 sm:$0xff] %v2084_v7  ;;  %v2296_v24 = vadd.f32 %v231_v54, %v195_v27  ;;  %v2298_v60 = vadd.f32 %v237_v55, %v201_v12  ;;  %v232_v22 = vadd.f32 %v230_v56, %v194_v25  ;;  %v2306_v23 = vadd.f32 %v236_v57, %v200_v40 }
  0xb1   :  { %v2308_v9 = vadd.f32 %v242_v58, %v206_v44  ;;  %v2310_v13 = vadd.f32 %v243_v59, %v207_v45  ;;  %v2316_v3 = vadd.f32 %v249_v21, %v213_v17  ;;  %v282_v29 = vstv %s2224_s28  ;;  %s2477_s28 = sld [smem:[#allocation9 + $0x80]] }
  0xb2   :  { %v2239_v28 = vpop.permute.xlu0 %263  ;;  %v288_v30 = vstv %s2226_s0  ;;  %v294_v32 = vstv %s2228_s29  ;;  %v313_v35 = vstv %s2233_s1  ;;  %v319_v18 = vstv %s2235_s5  ;;  %s2032_s0 = smov 112   ;;  %s2571_s29 = sld [smem:[#allocation9 + $0x1d]] }
  0xb3   :  { %v266_v6 = vsel %vm265_vm10, %v2237_v16, %v2239_v28  ;;  %v267_v31 = vsel %vm265_vm10, %v2239_v28, %v2237_v16  ;;  %v268_v16 = vsel %vm255_vm14, 1, %v3677_v8  ;;  %v331_v28 = vstv %s2251_s2  ;;  %s2579_s1 = sld [smem:[#allocation9 + $0x65]] }
  0xb4   :  { %v350_v25 = vstv %s2259_s3  ;;  %v269_v27 = vperm.slane %v268_v16, 0  ;;  %v270_v40 = vperm.slane %v268_v16, 1  ;;  %v368_v12 = vstv %s2283_s9  ;;  %s2581_s5 = sld [smem:[#allocation9 + $0x89]] }
  0xb5   :  { %v393_v50 = vstv %s2304_s11  ;;  %v399_v54 = vstv %s2312_s12  ;;  %s2604_s2 = sld [smem:[#allocation9 + $0x27]] }
  0xb6   :  { %vm2360_vm15 = vcmp.eq.s32.totalorder %v269_v27, 1  ;;  %vm2364_vm0 = vcmp.eq.s32.totalorder %v270_v40, 1  ;;  %s2611_s3 = sld [smem:[#allocation9 + $0x4b]] }
  0xb7   :  { %v2182_v62 = vld.sshfl [vmem:[#allocation1] sm:$0xff pattern:$0x73625140]  ;;  %v2184_v63 = vld.sshfl [vmem:[#allocation1 + $0x8] sm:$0xff pattern:$0x73625140]  ;;  %v2378_v27 = vpop.permute.xlu2 %378 }
  0xb8   :  { %861 = vst [vmem:[#allocation1] ss:$4 sm:$0xff] %v2075_v0  ;;  %v273_v55 = vsel %vm2360_vm15, %v267_v31, 0.0  ;;  %v274_v56 = vsel %vm2364_vm0, %v266_v6, 0.0  ;;  %s2641_s9 = sld [smem:[#allocation9 + $0x30]] }
  0xb9   :  { %v283_v21 = vmul.f32 %v282_v29, %v273_v55  ;;  %v296_v16 = vmul.f32 %v294_v32, %v274_v56  ;;  %s2653_s11 = sld [smem:[#allocation9 + $0x78]] }
  0xba   :  { %s2667_s12 = sld [smem:[#allocation9 + $0x15]] }
  0xbb   :  { %v285_v8 = vadd.f32 %v283_v21, %v2306_v23 }
  0xbf   :  { %v863_v46 = vld.sshfl [vmem:[#allocation1 + $0x8] sm:$0xff pattern:$0x73625140]  ;;  %v862_v49 = vld.sshfl [vmem:[#allocation1] sm:$0xff pattern:$0x73625140] }
  0xc0   :  { %868 = vrot.lane.b32.xlu0 %v863_v46, %s2030_s30  ;;  %904 = vst [vmem:[#allocation1] ss:$4 sm:$0xff] %v2078_v1  ;;  %866 = vrot.lane.b32.xlu2 %v862_v49, %s2030_s30  ;;  %v212_v46 = vadd.f32 %v210_v20, %v174_v5  ;;  %v305_v49 = vpop.permute.xlu1 %304  ;;  %v276_v5 = vstv %s2214_s27  ;;  %s2465_s27 = sld [smem:[#allocation9 + $0x5c]] }
  0xc1   :  { %v308_v14 = vsel %vm265_vm10, %v305_v49, %v307_v26  ;;  %v309_v20 = vsel %vm265_vm10, %v307_v26, %v305_v49  ;;  %v277_v59 = vmul.f32 %v276_v5, %v273_v55  ;;  %v284_v26 = vmul.f32 %v282_v29, %v274_v56 }
  0xc2   :  { %v2314_v2 = vadd.f32 %v248_v61, %v212_v46  ;;  %v342_v15 = vpop.permute.xlu0 %341  ;;  %v387_v46 = vstv %s2294_s10  ;;  %v310_v57 = vsel %vm2360_vm15, %v309_v20, 0.0  ;;  %v311_v58 = vsel %vm2364_vm0, %v308_v14, 0.0  ;;  %s2647_s10 = sld [smem:[#allocation9 + $0x54]] }
  0xc3   :  { %v278_v61 = vmul.f32 %v276_v5, %v274_v56  ;;  %v286_v14 = vadd.f32 %v284_v26, %v2298_v60  ;;  %v315_v23 = vmul.f32 %v313_v35, %v311_v58  ;;  %v320_v60 = vmul.f32 %v319_v18, %v310_v57 }
  0xc5   :  { %v280_v20 = vadd.f32 %v278_v61, %v2296_v24  ;;  %v298_v24 = vadd.f32 %v296_v16, %v2316_v3  ;;  %v322_v61 = vadd.f32 %v320_v60, %v285_v8 }
  0xc7   :  { %v905_v11 = vld.sshfl [vmem:[#allocation1] sm:$0xff pattern:$0x73625140]  ;;  %v906_v41 = vld.sshfl [vmem:[#allocation1 + $0x8] sm:$0xff pattern:$0x73625140] }
  0xc8   :  { %909 = vrot.lane.b32.xlu1 %v905_v11, %s2030_s30  ;;  %941 = vst [vmem:[#allocation1] ss:$4 sm:$0xff] %v2081_v4  ;;  %911 = vrot.lane.b32.xlu2 %v906_v41, %s2030_s30  ;;  %v344_v10 = vpop.permute.xlu1 %343  ;;  %v356_v11 = vstv %s2269_s7  ;;  %v362_v41 = vstv %s2273_s8  ;;  %s2618_s7 = sld [smem:[#allocation9 + $0x6f]] }
  0xc9   :  { %v345_v44 = vsel %vm265_vm10, %v342_v15, %v344_v10  ;;  %v346_v45 = vsel %vm265_vm10, %v344_v10, %v342_v15  ;;  %v289_v15 = vmul.f32 %v288_v30, %v273_v55  ;;  %v279_v10 = vadd.f32 %v277_v59, %v232_v22  ;;  %s2624_s8 = sld [smem:[#allocation9 + $0xc]] }
  0xca   :  { %v2380_v31 = vpop.permute.xlu0 %380  ;;  %v314_v22 = vmul.f32 %v313_v35, %v310_v57  ;;  %v332_v59 = vmul.f32 %v331_v28, %v310_v57 }
  0xcb   :  { %v291_v5 = vadd.f32 %v289_v15, %v2308_v9  ;;  %v327_v9 = vmul.f32 %v325_v19, %v311_v58 }
  0xcf   :  { %v943_v33 = vld.sshfl [vmem:[#allocation1 + $0x8] sm:$0xff pattern:$0x73625140]  ;;  %v942_v34 = vld.sshfl [vmem:[#allocation1] sm:$0xff pattern:$0x73625140] }
  0xd0   :  { %948 = vrot.lane.b32.xlu1 %v943_v33, %s2030_s30  ;;  %946 = vrot.lane.b32.xlu0 %v942_v34, %s2030_s30  ;;  %978 = vst [vmem:[#allocation1] ss:$4 sm:$0xff] %v2084_v7  ;;  %v290_v33 = vmul.f32 %v288_v30, %v274_v56  ;;  %v295_v34 = vmul.f32 %v294_v32, %v273_v55  ;;  %v347_v32 = vsel %vm2360_vm15, %v346_v45, 0.0 }
  0xd1   :  { %v321_v55 = vmul.f32 %v319_v18, %v311_v58  ;;  %v326_v56 = vmul.f32 %v325_v19, %v310_v57  ;;  %v333_v45 = vmul.f32 %v331_v28, %v311_v58  ;;  %v348_v19 = vsel %vm2364_vm0, %v345_v44, 0.0 }
  0xd2   :  { %v292_v29 = vadd.f32 %v290_v33, %v2310_v13  ;;  %v297_v30 = vadd.f32 %v295_v34, %v2314_v2  ;;  %v316_v13 = vadd.f32 %v314_v22, %v279_v10  ;;  %v317_v2 = vadd.f32 %v315_v23, %v280_v20  ;;  %v421_v34 = vpop.permute.xlu1 %420 }
  0xd3   :  { %v323_v3 = vadd.f32 %v321_v55, %v286_v14  ;;  %v328_v21 = vadd.f32 %v326_v56, %v291_v5  ;;  %v335_v18 = vadd.f32 %v333_v45, %v298_v24  ;;  %v351_v57 = vmul.f32 %v350_v25, %v347_v32  ;;  %v423_v5 = vpop.permute.xlu2 %422 }
  0xd4   :  { %v329_v35 = vadd.f32 %v327_v9, %v292_v29  ;;  %v334_v26 = vadd.f32 %v332_v59, %v297_v30  ;;  %v357_v15 = vmul.f32 %v356_v11, %v347_v32  ;;  %v352_v8 = vmul.f32 %v350_v25, %v348_v19 }
  0xd5   :  { %v358_v28 = vmul.f32 %v356_v11, %v348_v19  ;;  %v363_v58 = vmul.f32 %v362_v41, %v347_v32  ;;  %v364_v33 = vmul.f32 %v362_v41, %v348_v19  ;;  %v369_v10 = vmul.f32 %v368_v12, %v347_v32 }
  0xd6   :  { %v359_v44 = vadd.f32 %v357_v15, %v322_v61  ;;  %v370_v20 = vmul.f32 %v368_v12, %v348_v19  ;;  %v354_v25 = vadd.f32 %v352_v8, %v317_v2  ;;  %v405_v41 = vstv %s2392_s13  ;;  %s2686_s13 = sld [smem:[#allocation9 + $0x39]] }
  0xd7   :  { %v980_v40 = vld.sshfl [vmem:[#allocation1 + $0x8] sm:$0xff pattern:$0x73625140]  ;;  %v979_v6 = vld.sshfl [vmem:[#allocation1] sm:$0xff pattern:$0x73625140]  ;;  %v360_v11 = vadd.f32 %v358_v28, %v323_v3  ;;  %v365_v14 = vadd.f32 %v363_v58, %v328_v21  ;;  %v366_v30 = vadd.f32 %v364_v33, %v329_v35  ;;  %v371_v12 = vadd.f32 %v369_v10, %v334_v26 }
  0xd8   :  { %985 = vrot.lane.b32.xlu0 %v980_v40, %s2030_s30  ;;  %1021 = vst [vmem:[#allocation1] ss:$4 sm:$0xff] %v2075_v0  ;;  %983 = vrot.lane.b32.xlu2 %v979_v6, %s2030_s30  ;;  %v353_v6 = vadd.f32 %v351_v57, %v316_v13  ;;  %v372_v32 = vadd.f32 %v370_v20, %v335_v18  ;;  %v2473_v18 = vadd.s32 1, %v2143_v48  ;;  %v435_v33 = vstv %s2396_s14  ;;  %s2577_s30 = sld [smem:[#allocation9 + $0x41]]  ;;  %s2033_s14 = smov 111  }
  0xd9   :  { %v382_v24 = vsel %vm265_vm10, %v2378_v27, %v2380_v31  ;;  %v383_v22 = vsel %vm265_vm10, %v2380_v31, %v2378_v27  ;;  %v425_v26 = vsel %vm424_vm1, %v421_v34, %v423_v5  ;;  %v426_v19 = vsel %vm424_vm1, %v423_v5, %v421_v34 }
  0xda   :  { %v464_v29 = vpop.permute.xlu0 %463  ;;  %v385_v23 = vsel %vm2364_vm0, %v382_v24, 0.0  ;;  %v384_v60 = vsel %vm2360_vm15, %v383_v22, 0.0  ;;  %v466_v57 = vpop.permute.xlu1 %465  ;;  %vm411_vm2 = vcmp.ge.s32.totalorder %v2473_v18, 0  ;;  %vm413_vm6 = vcmp.lt.s32.totalorder %v2473_v18, 16 }
  0xdb   :  { %v389_v55 = vmul.f32 %v387_v46, %v385_v23  ;;  %v395_v56 = vmul.f32 %v393_v50, %v385_v23  ;;  %v401_v9 = vmul.f32 %v399_v54, %v385_v23  ;;  %v388_v27 = vmul.f32 %v387_v46, %v384_v60  ;;  %v2483_v8 = vpop.permute.xlu2 %500  ;;  %vm412_vm7 = vmand %vm2158_vm3, %vm411_vm2 }
  0xdc   :  { %v394_v49 = vmul.f32 %v393_v50, %v384_v60  ;;  %v400_v31 = vmul.f32 %v399_v54, %v384_v60  ;;  %v406_v59 = vmul.f32 %v405_v41, %v384_v60  ;;  %v407_v61 = vmul.f32 %v405_v41, %v385_v23  ;;  %vm414_vm8 = vmand %vm412_vm7, %vm413_vm6 }
  0xdd   :  { %v2457_v13 = vadd.f32 %v389_v55, %v354_v25  ;;  %v2459_v17 = vadd.f32 %v395_v56, %v360_v11  ;;  %v2461_v2 = vadd.f32 %v401_v9, %v366_v30  ;;  %v390_v45 = vadd.f32 %v388_v27, %v353_v6 }
  0xde   :  { %v396_v3 = vadd.f32 %v394_v49, %v359_v44  ;;  %v402_v21 = vadd.f32 %v400_v31, %v365_v14  ;;  %v408_v46 = vadd.f32 %v406_v59, %v371_v12  ;;  %v409_v35 = vadd.f32 %v407_v61, %v372_v32 }
  0xdf   :  { %v1022_v16 = vld.sshfl [vmem:[#allocation1] sm:$0xff pattern:$0x73625140]  ;;  %v1023_v40 = vld.sshfl [vmem:[#allocation1 + $0x8] sm:$0xff pattern:$0x73625140]  ;;  %v468_v15 = vsel %vm424_vm1, %v466_v57, %v464_v29  ;;  %v441_v34 = vstv %s2398_s15  ;;  %v478_v25 = vstv %s2428_s20  ;;  %v467_v11 = vsel %vm424_vm1, %v464_v29, %v466_v57 }
  0xe0   :  { %1026 = vrot.lane.b32.xlu1 %v1022_v16, %s2031_s18  ;;  %1064 = vst [vmem:[#allocation1] ss:$4 sm:$0xff] %v2078_v1  ;;  %1028 = vrot.lane.b32.xlu2 %v1023_v40, %s2031_s18  ;;  %v447_v16 = vstv %s2404_s16  ;;  %v453_v40 = vstv %s2412_s17  ;;  %v3689_v6 = vmov 0   ;;  %vm569_vm10 = vcmp.ge.s32.totalorder %v2141_v47, 0  ;;  %s2694_s15 = sld [smem:[#allocation9 + $0x5d]] }
  0xe1   :  { %v427_v44 = vsel %vm414_vm8, 1, %v3689_v6  ;;  %v484_v5 = vstv %s2437_s21  ;;  %v490_v30 = vstv %s2447_s22  ;;  %v509_v12 = vstv %s2455_s25  ;;  %vm2573_vm14 = vmand %vm569_vm10, %vm570_vm12  ;;  %s2706_s16 = sld [smem:[#allocation9 + $0x81]] }
  0xe2   :  { %v2485_v28 = vpop.permute.xlu0 %502  ;;  %v428_v10 = vperm.slane %v427_v44, 0  ;;  %v429_v20 = vperm.slane %v427_v44, 1  ;;  %vm572_vm15 = vmand %vm2573_vm14, %vm88_vm4  ;;  %s2710_s17 = sld [smem:[#allocation9 + $0x1e]] }
  0xe3   :  { %v505_v58 = vsel %vm424_vm1, %v2485_v28, %v2483_v8  ;;  %v540_v47 = vpop.permute.xlu2 %539  ;;  %vm573_vm0 = vmand %vm572_vm15, %vm90_vm5  ;;  %s2720_s20 = sld [smem:[#allocation9 + $0x8a]] }
  0xe4   :  { %vm2512_vm3 = vcmp.eq.s32.totalorder %v428_v10, 1  ;;  %vm2516_vm9 = vcmp.eq.s32.totalorder %v429_v20, 1  ;;  %vm2633_vm7 = vmand %vm2573_vm14, %vm252_vm11  ;;  %s2724_s21 = sld [smem:[#allocation9 + $0x4]] }
  0xe5   :  { %v432_v60 = vsel %vm2512_vm3, %v426_v19, 0.0  ;;  %v433_v55 = vsel %vm2516_vm9, %v425_v26, 0.0  ;;  %v469_v56 = vsel %vm2512_vm3, %v468_v15, 0.0  ;;  %v470_v9 = vsel %vm2516_vm9, %v467_v11, 0.0  ;;  %vm729_vm8 = vmand %vm2633_vm7, %vm254_vm13  ;;  %s2730_s22 = sld [smem:[#allocation9 + $0x28]] }
  0xe6   :  { %v436_v27 = vmul.f32 %v435_v33, %v432_v60  ;;  %v437_v49 = vmul.f32 %v435_v33, %v433_v55  ;;  %v442_v31 = vmul.f32 %v441_v34, %v432_v60  ;;  %v443_v59 = vmul.f32 %v441_v34, %v433_v55  ;;  %s2733_s25 = sld [smem:[#allocation9 + $0x4c]]  ;;  %vm859_vm15 = vmand %vm2573_vm14, %vm411_vm2 }
  0xe7   :  { %v1066_v50 = vld.sshfl [vmem:[#allocation1 + $0x8] sm:$0xff pattern:$0x73625140]  ;;  %v1065_v54 = vld.sshfl [vmem:[#allocation1] sm:$0xff pattern:$0x73625140]  ;;  %v448_v61 = vmul.f32 %v447_v16, %v432_v60  ;;  %v455_v57 = vmul.f32 %v453_v40, %v433_v55  ;;  %v473_v11 = vmul.f32 %v472_v53, %v469_v56  ;;  %v474_v29 = vmul.f32 %v472_v53, %v470_v9  ;;  %vm860_vm14 = vmand %vm859_vm15, %vm413_vm6 }
  0xe8   :  { %1071 = vrot.lane.b32.xlu1 %v1066_v50, %s2031_s18  ;;  %1069 = vrot.lane.b32.xlu0 %v1065_v54, %s2031_s18  ;;  %1101 = vst [vmem:[#allocation1] ss:$4 sm:$0xff] %v2081_v4  ;;  %v449_v50 = vmul.f32 %v447_v16, %v433_v55  ;;  %v454_v54 = vmul.f32 %v453_v40, %v432_v60  ;;  %v3694_v60 = vstv %s2463_s26  ;;  %s2736_s26 = sld [smem:[#allocation9 + $0x70]] }
  0xe9   :  { %v438_v44 = vadd.f32 %v436_v27, %v390_v45  ;;  %v439_v19 = vadd.f32 %v437_v49, %v2457_v13  ;;  %v444_v10 = vadd.f32 %v442_v31, %v396_v3  ;;  %v445_v26 = vadd.f32 %v443_v59, %v2459_v17 }
  0xea   :  { %v450_v20 = vadd.f32 %v448_v61, %v402_v21  ;;  %v451_v15 = vadd.f32 %v449_v50, %v2461_v2  ;;  %v479_v33 = vmul.f32 %v478_v25, %v469_v56  ;;  %v480_v23 = vmul.f32 %v478_v25, %v470_v9 }
  0xeb   :  { %v485_v16 = vmul.f32 %v484_v5, %v469_v56  ;;  %v486_v40 = vmul.f32 %v484_v5, %v470_v9  ;;  %v491_v45 = vmul.f32 %v490_v30, %v469_v56  ;;  %v492_v13 = vmul.f32 %v490_v30, %v470_v9  ;;  %v623_v24 = vpop.permute.xlu2 %622 }
  0xec   :  { %v475_v17 = vadd.f32 %v473_v11, %v438_v44  ;;  %v2536_v2 = vadd.f32 %v474_v29, %v439_v19  ;;  %v481_v3 = vadd.f32 %v479_v33, %v444_v10  ;;  %v506_v21 = vsel %vm2512_vm3, %v505_v58, 0.0 }
  0xed   :  { %v2542_v53 = vadd.f32 %v486_v40, %v451_v15  ;;  %v510_v30 = vmul.f32 %v509_v12, %v506_v21  ;;  %v516_v55 = vmul.f32 %v3694_v60, %v506_v21  ;;  %v3695_v29 = vstv %s2465_s27  ;;  %s2742_s27 = sld [smem:[#allocation9 + $0xd]] }
  0xee   :  { %v522_v56 = vmul.f32 %v3695_v29, %v506_v21  ;;  %v3696_v58 = vstv %s2477_s28  ;;  %v504_v44 = vsel %vm424_vm1, %v2483_v8, %v2485_v28  ;;  %v3700_v33 = vmov %v3695_v29  ;;  %s2744_s28 = sld [smem:[#allocation9 + $0x31]] }
  0xef   :  { %v1103_v14 = vld.sshfl [vmem:[#allocation1 + $0x8] sm:$0xff pattern:$0x73625140]  ;;  %v1102_v41 = vld.sshfl [vmem:[#allocation1] sm:$0xff pattern:$0x73625140]  ;;  %v2553_v9 = vadd.f32 %v510_v30, %v475_v17  ;;  %v2555_v27 = vadd.f32 %v516_v55, %v481_v3  ;;  %v552_v40 = vstv %s2577_s30 }
  0xf0   :  { %1108 = vrot.lane.b32.xlu0 %v1103_v14, %s2031_s18  ;;  %1138 = vst [vmem:[#allocation1] ss:$4 sm:$0xff] %v2084_v7  ;;  %1106 = vrot.lane.b32.xlu2 %v1102_v41, %s2031_s18  ;;  %v456_v14 = vadd.f32 %v454_v54, %v408_v46  ;;  %v457_v41 = vadd.f32 %v455_v57, %v409_v35  ;;  %v538_v57 = vpop.permute.xlu1 %537  ;;  %s2785_s30 = sld [smem:[#allocation9 + $0x16]] }
  0xf1   :  { %v2540_v46 = vadd.f32 %v480_v23, %v445_v26  ;;  %v487_v35 = vadd.f32 %v485_v16, %v450_v20  ;;  %v528_v23 = vmul.f32 %v3696_v58, %v506_v21  ;;  %v507_v26 = vsel %vm2516_vm9, %v504_v44, 0.0 }
  0xf2   :  { %v493_v25 = vadd.f32 %v491_v45, %v456_v14  ;;  %v2545_v5 = vadd.f32 %v492_v13, %v457_v41  ;;  %v541_v8 = vsel %vm424_vm1, %v538_v57, %v540_v47  ;;  %v542_v28 = vsel %vm424_vm1, %v540_v47, %v538_v57  ;;  %v580_v11 = vpop.permute.xlu0 %579 }
  0xf3   :  { %v2559_v49 = vadd.f32 %v522_v56, %v487_v35  ;;  %v586_v20 = vsel %vm573_vm0, 1, %v3689_v6  ;;  %v511_v15 = vmul.f32 %v509_v12, %v507_v26  ;;  %v3699_v14 = vmov %v3694_v60 }
  0xf4   :  { %v2561_v31 = vadd.f32 %v528_v23, %v493_v25  ;;  %v517_v41 = vmul.f32 %v3699_v14, %v507_v26  ;;  %v546_v16 = vstv %s2571_s29  ;;  %vm583_vm1 = vcmp.lt.s32.totalorder %v2148_v51, 1  ;;  %s2771_s29 = sld [smem:[#allocation9 + $0x79]] }
  0xf5   :  { %v543_v12 = vsel %vm2512_vm3, %v542_v28, 0.0  ;;  %v544_v13 = vsel %vm2516_vm9, %v541_v8, 0.0  ;;  %v587_v17 = vperm.slane %v586_v20, 0  ;;  %v588_v3 = vperm.slane %v586_v20, 1 }
  0xf6   :  { %v558_v21 = vstv %s2579_s1  ;;  %v564_v35 = vstv %s2581_s5  ;;  %v594_v25 = vstv %s2591_s6  ;;  %v513_v22 = vadd.f32 %v511_v15, %v2536_v2  ;;  %s2787_s1 = sld [smem:[#allocation9 + $0x3a]] }
  0xf7   :  { %v1139_v34 = vld.sshfl [vmem:[#allocation1] sm:$0xff pattern:$0x73625140]  ;;  %v1140_v32 = vld.sshfl [vmem:[#allocation1 + $0x8] sm:$0xff pattern:$0x73625140]  ;;  %v519_v29 = vadd.f32 %v517_v41, %v2540_v46  ;;  %v3703_v56 = vmov %v3696_v58  ;;  %v554_v2 = vmul.f32 %v552_v40, %v544_v13  ;;  %v559_v46 = vmul.f32 %v558_v21, %v543_v12 }
  0xf8   :  { %1143 = vrot.lane.b32.xlu1 %v1139_v34, %s2031_s18  ;;  %1177 = vst [vmem:[#allocation1] ss:$4 sm:$0xff] %v2075_v0  ;;  %1145 = vrot.lane.b32.xlu2 %v1140_v32, %s2031_s18  ;;  %v523_v34 = vmul.f32 %v3700_v33, %v507_v26  ;;  %v582_v45 = vpop.permute.xlu1 %581  ;;  %v529_v58 = vmul.f32 %v3703_v56, %v507_v26  ;;  %vm2659_vm3 = vcmp.eq.s32.totalorder %v587_v17, 1  ;;  %vm2663_vm9 = vcmp.eq.s32.totalorder %v588_v3, 1  ;;  %s2712_s18 = sld [smem:[#allocation9 + $0x42]] }
  0xf9   :  { %v565_v57 = vmul.f32 %v564_v35, %v543_v12  ;;  %v600_v26 = vstv %s2604_s2  ;;  %v606_v8 = vstv %s2611_s3  ;;  %v612_v15 = vstv %s2618_s7  ;;  %s2789_s5 = sld [smem:[#allocation9 + $0x5e]] }
  0xfa   :  { %v525_v23 = vadd.f32 %v523_v34, %v2542_v53  ;;  %v585_v53 = vsel %vm583_vm1, %v582_v45, %v580_v11  ;;  %v2675_v14 = vsel %vm729_vm8, 1, %v3689_v6  ;;  %v637_v56 = vstv %s2641_s9  ;;  %s2800_s6 = sld [smem:[#allocation9 + $0x82]] }
  0xfb   :  { %v591_v33 = vsel %vm2659_vm3, %v585_v53, 0.0  ;;  %v731_v17 = vperm.slane %v2675_v14, 0  ;;  %v732_v3 = vperm.slane %v2675_v14, 1  ;;  %s2803_s2 = sld [smem:[#allocation9 + $0x1f]]  ;;  %vm870_vm0 = vcmp.lt.s32.totalorder %v2148_v51, 127 }
  0xfc   :  { %v601_v30 = vmul.f32 %v600_v26, %v591_v33  ;;  %s2805_s3 = sld [smem:[#allocation9 + $0x43]] }
  0xfd   :  { %vm2748_vm10 = vcmp.eq.s32.totalorder %v731_v17, 1  ;;  %vm2760_vm12 = vcmp.eq.s32.totalorder %v732_v3, 1  ;;  %s2807_s7 = sld [smem:[#allocation9 + $0x67]] }
  0xfe   :  { %s2811_s9 = sld [smem:[#allocation9 + $0x5]] }
  0xff   :  { %v1179_v59 = vld.sshfl [vmem:[#allocation1 + $0x8] sm:$0xff pattern:$0x73625140]  ;;  %v1178_v32 = vld.sshfl [vmem:[#allocation1] sm:$0xff pattern:$0x73625140] }
 0x100   :  { %1184 = vrot.lane.b32.xlu1 %v1179_v59, %s2032_s0  ;;  %1182 = vrot.lane.b32.xlu0 %v1178_v32, %s2032_s0  ;;  %1220 = vst [vmem:[#allocation1] ss:$4 sm:$0xff] %v2078_v1  ;;  %v547_v59 = vmul.f32 %v546_v16, %v543_v12  ;;  %v548_v32 = vmul.f32 %v546_v16, %v544_v13 }
 0x101   :  { %v561_v16 = vadd.f32 %v559_v46, %v2559_v49 }
 0x102   :  { %v549_v28 = vadd.f32 %v547_v59, %v2553_v9  ;;  %v550_v20 = vadd.f32 %v548_v32, %v513_v22  ;;  %v567_v9 = vadd.f32 %v565_v57, %v2561_v31  ;;  %v668_v59 = vstv %s2667_s12  ;;  %s2834_s12 = sld [smem:[#allocation9 + $0x71]] }
 0x103   :  { %v607_v32 = vmul.f32 %v606_v8, %v591_v33 }
 0x107   :  { %v1222_v61 = vld.sshfl [vmem:[#allocation1 + $0x8] sm:$0xff pattern:$0x73625140]  ;;  %v1221_v50 = vld.sshfl [vmem:[#allocation1] sm:$0xff pattern:$0x73625140] }
 0x108   :  { %1227 = vrot.lane.b32.xlu0 %v1222_v61, %s2032_s0  ;;  %1257 = vst [vmem:[#allocation1] ss:$4 sm:$0xff] %v2081_v4  ;;  %1225 = vrot.lane.b32.xlu2 %v1221_v50, %s2032_s0  ;;  %v553_v61 = vmul.f32 %v552_v40, %v543_v12  ;;  %v560_v50 = vmul.f32 %v558_v21, %v544_v13  ;;  %v660_v12 = vpop.permute.xlu1 %659 }
 0x109   :  { %v595_v21 = vmul.f32 %v594_v25, %v591_v33 }
 0x10a   :  { %v555_v41 = vadd.f32 %v553_v61, %v2555_v27  ;;  %v562_v40 = vadd.f32 %v560_v50, %v525_v23  ;;  %v649_v23 = vstv %s2653_s11  ;;  %v613_v61 = vmul.f32 %v612_v15, %v591_v33  ;;  %s2828_s11 = sld [smem:[#allocation9 + $0x4d]] }
 0x10b   :  { %v597_v46 = vadd.f32 %v595_v21, %v549_v28 }
 0x10c   :  { %v603_v57 = vadd.f32 %v601_v30, %v555_v41  ;;  %v615_v41 = vadd.f32 %v613_v61, %v567_v9 }
 0x10f   :  { %v1258_v19 = vld.sshfl [vmem:[#allocation1] sm:$0xff pattern:$0x73625140]  ;;  %v1259_v10 = vld.sshfl [vmem:[#allocation1 + $0x8] sm:$0xff pattern:$0x73625140] }
 0x110   :  { %1262 = vrot.lane.b32.xlu1 %v1258_v19, %s2032_s0  ;;  %1294 = vst [vmem:[#allocation1] ss:$4 sm:$0xff] %v2084_v7  ;;  %1264 = vrot.lane.b32.xlu2 %v1259_v10, %s2032_s0  ;;  %v531_v19 = vadd.f32 %v529_v58, %v2545_v5  ;;  %v566_v10 = vmul.f32 %v564_v35, %v544_v13  ;;  %v625_v5 = vpop.permute.xlu0 %624  ;;  %v643_v58 = vstv %s2647_s10  ;;  %v699_v21 = vpop.permute.xlu1 %698  ;;  %s2819_s10 = sld [smem:[#allocation9 + $0x29]] }
 0x111   :  { %v626_v49 = vsel %vm583_vm1, %v623_v24, %v625_v5 }
 0x112   :  { %v568_v13 = vadd.f32 %v566_v10, %v531_v19 }
 0x117   :  { %v1296_v60 = vld.sshfl [vmem:[#allocation1 + $0x8] sm:$0xff pattern:$0x73625140]  ;;  %v1295_v55 = vld.sshfl [vmem:[#allocation1] sm:$0xff pattern:$0x73625140] }
 0x118   :  { %1301 = vrot.lane.b32.xlu1 %v1296_v60, %s2032_s0  ;;  %1299 = vrot.lane.b32.xlu0 %v1295_v55, %s2032_s0  ;;  %1333 = vst [vmem:[#allocation1] ss:$4 sm:$0xff] %v2075_v0  ;;  %v584_v0 = vsel %vm583_vm1, %v580_v11, %v582_v45  ;;  %v556_v11 = vadd.f32 %v554_v2, %v519_v29  ;;  %v631_v60 = vstv %s2624_s8  ;;  %v662_v55 = vpop.permute.xlu2 %661  ;;  %s2765_s0 = sld [smem:[#allocation9 + $0x55]] }
 0x119   :  { %v592_v34 = vsel %vm2663_vm9, %v584_v0, 0.0  ;;  %v627_v45 = vsel %vm583_vm1, %v625_v5, %v623_v24  ;;  %v664_v33 = vsel %vm583_vm1, %v662_v55, %v660_v12  ;;  %s2809_s8 = sld [smem:[#allocation9 + $0x8b]] }
 0x11a   :  { %v596_v35 = vmul.f32 %v594_v25, %v592_v34  ;;  %v602_v22 = vmul.f32 %v600_v26, %v592_v34  ;;  %v608_v29 = vmul.f32 %v606_v8, %v592_v34  ;;  %v628_v24 = vsel %vm2659_vm3, %v627_v45, 0.0 }
 0x11b   :  { %v629_v25 = vsel %vm2663_vm9, %v626_v49, 0.0  ;;  %v614_v2 = vmul.f32 %v612_v15, %v592_v34  ;;  %v632_v0 = vmul.f32 %v631_v60, %v628_v24  ;;  %v638_v26 = vmul.f32 %v637_v56, %v628_v24 }
 0x11c   :  { %v598_v50 = vadd.f32 %v596_v35, %v550_v20  ;;  %v604_v53 = vadd.f32 %v602_v22, %v556_v11  ;;  %v610_v19 = vadd.f32 %v608_v29, %v562_v40  ;;  %v633_v10 = vmul.f32 %v631_v60, %v629_v25 }
 0x11d   :  { %v639_v8 = vmul.f32 %v637_v56, %v629_v25  ;;  %v645_v15 = vmul.f32 %v643_v58, %v629_v25  ;;  %v609_v20 = vadd.f32 %v607_v32, %v561_v16  ;;  %v616_v34 = vadd.f32 %v614_v2, %v568_v13 }
 0x11e   :  { %v674_v11 = vstv %s2686_s13  ;;  %v634_v45 = vadd.f32 %v632_v0, %v597_v46  ;;  %v650_v49 = vmul.f32 %v649_v23, %v628_v24  ;;  %v635_v35 = vadd.f32 %v633_v10, %v598_v50  ;;  %s2837_s13 = sld [smem:[#allocation9 + $0xe]] }
 0x11f   :  { %v1335_v27 = vld.sshfl [vmem:[#allocation1 + $0x8] sm:$0xff pattern:$0x73625140]  ;;  %v1334_v31 = vld.sshfl [vmem:[#allocation1] sm:$0xff pattern:$0x73625140]  ;;  %v640_v16 = vadd.f32 %v638_v26, %v603_v57  ;;  %v651_v9 = vmul.f32 %v649_v23, %v629_v25  ;;  %v641_v30 = vadd.f32 %v639_v8, %v604_v53  ;;  %v647_v60 = vadd.f32 %v645_v15, %v610_v19 }
 0x120   :  { %1340 = vrot.lane.b32.xlu0 %v1335_v27, %s2033_s14  ;;  %1376 = vst [vmem:[#allocation1] ss:$4 sm:$0xff] %v2078_v1  ;;  %1338 = vrot.lane.b32.xlu2 %v1334_v31, %s2033_s14  ;;  %v663_v1 = vsel %vm583_vm1, %v660_v12, %v662_v55  ;;  %v644_v27 = vmul.f32 %v643_v58, %v628_v24  ;;  %v680_v31 = vstv %s2694_s15  ;;  %v697_v12 = vpop.permute.xlu0 %696  ;;  %v665_v13 = vsel %vm2659_vm3, %v664_v33, 0.0  ;;  %s2845_s15 = sld [smem:[#allocation9 + $0x56]] }
 0x121   :  { %v666_v28 = vsel %vm2663_vm9, %v663_v1, 0.0  ;;  %v686_v55 = vstv %s2706_s16  ;;  %v701_v24 = vsel %vm583_vm1, %v699_v21, %v697_v12  ;;  %v652_v23 = vadd.f32 %v650_v49, %v615_v41  ;;  %s2854_s16 = sld [smem:[#allocation9 + $0x7a]] }
 0x122   :  { %v670_v22 = vmul.f32 %v668_v59, %v666_v28  ;;  %v676_v29 = vmul.f32 %v674_v11, %v666_v28  ;;  %v682_v56 = vmul.f32 %v680_v31, %v666_v28  ;;  %v646_v58 = vadd.f32 %v644_v27, %v609_v20 }
 0x123   :  { %v669_v25 = vmul.f32 %v668_v59, %v665_v13  ;;  %v675_v32 = vmul.f32 %v674_v11, %v665_v13  ;;  %v653_v61 = vadd.f32 %v651_v9, %v616_v34  ;;  %v681_v2 = vmul.f32 %v680_v31, %v665_v13 }
 0x124   :  { %v687_v1 = vmul.f32 %v686_v55, %v665_v13  ;;  %v688_v46 = vmul.f32 %v686_v55, %v666_v28  ;;  %v705_v57 = vstv %s2710_s17  ;;  %v702_v59 = vsel %vm2659_vm3, %v701_v24, 0.0  ;;  %s2856_s17 = sld [smem:[#allocation9 + $0x17]] }
 0x125   :  { %v672_v53 = vadd.f32 %v670_v22, %v635_v35  ;;  %v678_v19 = vadd.f32 %v676_v29, %v641_v30  ;;  %v684_v10 = vadd.f32 %v682_v56, %v647_v60  ;;  %v711_v26 = vstv %s2712_s18  ;;  %s2858_s18 = sld [smem:[#allocation9 + $0x3b]] }
 0x126   :  { %v671_v33 = vadd.f32 %v669_v25, %v634_v45  ;;  %v677_v47 = vadd.f32 %v675_v32, %v640_v16  ;;  %v717_v28 = vstv %s2714_s19  ;;  %v683_v44 = vadd.f32 %v681_v2, %v646_v58  ;;  %s2860_s19 = sld [smem:[#allocation9 + $0x5f]] }
 0x127   :  { %v1377_v5 = vld.sshfl [vmem:[#allocation1] sm:$0xff pattern:$0x73625140]  ;;  %v1378_v40 = vld.sshfl [vmem:[#allocation1 + $0x8] sm:$0xff pattern:$0x73625140]  ;;  %v689_v14 = vadd.f32 %v687_v1, %v652_v23  ;;  %v690_v3 = vadd.f32 %v688_v46, %v653_v61  ;;  %v723_v20 = vstv %s2720_s20  ;;  %v706_v41 = vmul.f32 %v705_v57, %v702_v59 }
 0x128   :  { %1381 = vrot.lane.b32.xlu1 %v1377_v5, %s2033_s14  ;;  %1413 = vst [vmem:[#allocation1] ss:$4 sm:$0xff] %v2081_v4  ;;  %1383 = vrot.lane.b32.xlu2 %v1378_v40, %s2033_s14  ;;  %v700_v4 = vsel %vm583_vm1, %v697_v12, %v699_v21  ;;  %v712_v11 = vmul.f32 %v711_v26, %v702_v59  ;;  %v743_v40 = vstv %s2724_s21  ;;  %v749_v45 = vstv %s2730_s22  ;;  %s2862_s20 = sld [smem:[#allocation9 + $0x83]] }
 0x129   :  { %v703_v0 = vsel %vm2663_vm9, %v700_v4, 0.0  ;;  %v755_v27 = vstv %s2733_s25  ;;  %v718_v49 = vmul.f32 %v717_v28, %v702_v59  ;;  %v761_v31 = vstv %s2736_s26  ;;  %s2870_s21 = sld [smem:[#allocation9 + $0x20]] }
 0x12a   :  { %v707_v34 = vmul.f32 %v705_v57, %v703_v0  ;;  %v713_v5 = vmul.f32 %v711_v26, %v703_v0  ;;  %v774_v21 = vstv %s2742_s27  ;;  %v741_v12 = vsel %vm2760_vm12, %v2102_v37, 0.0  ;;  %s2880_s22 = sld [smem:[#allocation9 + $0x44]] }
 0x12b   :  { %v780_v35 = vstv %s2744_s28  ;;  %v719_v16 = vmul.f32 %v717_v28, %v703_v0  ;;  %v724_v9 = vmul.f32 %v723_v20, %v702_v59  ;;  %v725_v13 = vmul.f32 %v723_v20, %v703_v0  ;;  %s2895_s25 = sld [smem:[#allocation9 + $0x68]] }
 0x12c   :  { %v708_v30 = vadd.f32 %v706_v41, %v671_v33  ;;  %v709_v60 = vadd.f32 %v707_v34, %v672_v53  ;;  %v714_v55 = vadd.f32 %v712_v11, %v677_v47  ;;  %v715_v22 = vadd.f32 %v713_v5, %v678_v19  ;;  %s2899_s26 = sld [smem:[#allocation9 + $0x8c]] }
 0x12d   :  { %v720_v29 = vadd.f32 %v718_v49, %v683_v44  ;;  %v745_v56 = vmul.f32 %v743_v40, %v741_v12  ;;  %v751_v24 = vmul.f32 %v749_v45, %v741_v12  ;;  %v771_v23 = vsel %vm2748_vm10, %v2117_v38, 0.0  ;;  %s2904_s27 = sld [smem:[#allocation9 + $0x6]] }
 0x12e   :  { %v772_v25 = vsel %vm2760_vm12, %v2119_v39, 0.0  ;;  %v786_v61 = vstv %s2765_s0  ;;  %v792_v2 = vstv %s2771_s29  ;;  %v721_v1 = vadd.f32 %v719_v16, %v684_v10  ;;  %s2911_s28 = sld [smem:[#allocation9 + $0x2a]] }
 0x12f   :  { %v1415_v8 = vld.sshfl [vmem:[#allocation1 + $0x8] sm:$0xff pattern:$0x73625140]  ;;  %v1414_v15 = vld.sshfl [vmem:[#allocation1] sm:$0xff pattern:$0x73625140]  ;;  %v757_v46 = vmul.f32 %v755_v27, %v741_v12  ;;  %v726_v57 = vadd.f32 %v724_v9, %v689_v14  ;;  %v727_v59 = vadd.f32 %v725_v13, %v690_v3  ;;  %v763_v53 = vmul.f32 %v761_v31, %v741_v12 }
 0x130   :  { %1420 = vrot.lane.b32.xlu1 %v1415_v8, %s2033_s14  ;;  %1418 = vrot.lane.b32.xlu0 %v1414_v15, %s2033_s14  ;;  %1450 = vst [vmem:[#allocation1] ss:$4 sm:$0xff] %v2084_v7  ;;  %v740_v7 = vsel %vm2748_vm10, %v2100_v36, 0.0  ;;  %v747_v19 = vadd.f32 %v745_v56, %v709_v60  ;;  %v775_v39 = vmul.f32 %v774_v21, %v771_v23  ;;  %v802_v49 = vsel %vm2748_vm10, %v2136_v42, 0.0  ;;  %s2913_s0 = sld [smem:[#allocation9 + $0x4e]] }
 0x131   :  { %v744_v36 = vmul.f32 %v743_v40, %v740_v7  ;;  %v750_v4 = vmul.f32 %v749_v45, %v740_v7  ;;  %v756_v58 = vmul.f32 %v755_v27, %v740_v7  ;;  %v762_v0 = vmul.f32 %v761_v31, %v740_v7  ;;  %s2919_s29 = sld [smem:[#allocation9 + $0x72]] }
 0x132   :  { %v776_v26 = vmul.f32 %v774_v21, %v772_v25  ;;  %v753_v15 = vadd.f32 %v751_v24, %v715_v22  ;;  %v781_v33 = vmul.f32 %v780_v35, %v771_v23  ;;  %v759_v47 = vadd.f32 %v757_v46, %v721_v1 }
 0x133   :  { %v746_v38 = vadd.f32 %v744_v36, %v708_v30  ;;  %v752_v8 = vadd.f32 %v750_v4, %v714_v55  ;;  %v758_v10 = vadd.f32 %v756_v58, %v720_v29  ;;  %v782_v28 = vmul.f32 %v780_v35, %v772_v25  ;;  %v867_v55 = vpop.permute.xlu2 %866 }
 0x134   :  { %v787_v44 = vmul.f32 %v786_v61, %v771_v23  ;;  %v788_v14 = vmul.f32 %v786_v61, %v772_v25  ;;  %v764_v3 = vadd.f32 %v762_v0, %v726_v57  ;;  %v765_v20 = vadd.f32 %v763_v53, %v727_v59  ;;  %v869_v57 = vpop.permute.xlu0 %868 }
 0x135   :  { %v793_v41 = vmul.f32 %v792_v2, %v771_v23  ;;  %v794_v34 = vmul.f32 %v792_v2, %v772_v25  ;;  %v777_v11 = vadd.f32 %v775_v39, %v746_v38  ;;  %v778_v5 = vadd.f32 %v776_v26, %v747_v19 }
 0x136   :  { %v805_v40 = vstv %s2785_s30  ;;  %v783_v45 = vadd.f32 %v781_v33, %v752_v8  ;;  %v811_v27 = vstv %s2787_s1  ;;  %v803_v31 = vsel %vm2760_vm12, %v2138_v43, 0.0  ;;  %s2927_s30 = sld [smem:[#allocation9 + $0xf]] }
 0x137   :  { %v1452_v37 = vld.sshfl [vmem:[#allocation1 + $0x8] sm:$0xff pattern:$0x73625140]  ;;  %v1451_v32 = vld.sshfl [vmem:[#allocation1] sm:$0xff pattern:$0x73625140]  ;;  %v784_v54 = vadd.f32 %v782_v28, %v753_v15  ;;  %v789_v21 = vadd.f32 %v787_v44, %v758_v10  ;;  %v790_v7 = vadd.f32 %v788_v14, %v759_v47  ;;  %v817_v12 = vstv %s2789_s5 }
 0x138   :  { %1457 = vrot.lane.b32.xlu0 %v1452_v37, %s2033_s14  ;;  %1455 = vrot.lane.b32.xlu2 %v1451_v32, %s2033_s14  ;;  %v795_v35 = vadd.f32 %v793_v41, %v764_v3  ;;  %v796_v16 = vadd.f32 %v794_v34, %v765_v20  ;;  %v823_v9 = vstv %s2800_s6  ;;  %v836_v13 = vstv %s2803_s2  ;;  %s2840_s14 = sld [smem:[#allocation9 + $0x32]] }
 0x139   :  { %v842_v42 = vstv %s2805_s3  ;;  %v806_v43 = vmul.f32 %v805_v40, %v802_v49  ;;  %v807_v30 = vmul.f32 %v805_v40, %v803_v31  ;;  %v812_v60 = vmul.f32 %v811_v27, %v802_v49  ;;  %s2929_s1 = sld [smem:[#allocation9 + $0x33]] }
 0x13a   :  { %v813_v22 = vmul.f32 %v811_v27, %v803_v31  ;;  %v818_v29 = vmul.f32 %v817_v12, %v802_v49  ;;  %v819_v36 = vmul.f32 %v817_v12, %v803_v31  ;;  %v873_v56 = vsel %vm860_vm14, 1, %v3689_v6  ;;  %v910_v15 = vpop.permute.xlu1 %909  ;;  %s2943_s5 = sld [smem:[#allocation9 + $0x57]] }
 0x13b   :  { %v848_v4 = vstv %s2807_s7  ;;  %v854_v37 = vstv %s2809_s8  ;;  %v824_v24 = vmul.f32 %v823_v9, %v802_v49  ;;  %v881_v58 = vstv %s2811_s9  ;;  %s2948_s6 = sld [smem:[#allocation9 + $0x7b]] }
 0x13c   :  { %v825_v23 = vmul.f32 %v823_v9, %v803_v31  ;;  %v833_v25 = vsel %vm2748_vm10, %v2182_v62, 0.0  ;;  %v834_v32 = vsel %vm2760_vm12, %v2184_v63, 0.0  ;;  %v808_v61 = vadd.f32 %v806_v43, %v777_v11  ;;  %v912_v31 = vpop.permute.xlu2 %911  ;;  %s2951_s2 = sld [smem:[#allocation9 + $0x18]] }
 0x13d   :  { %v809_v2 = vadd.f32 %v807_v30, %v778_v5  ;;  %v814_v1 = vadd.f32 %v812_v60, %v783_v45  ;;  %v874_v46 = vperm.slane %v873_v56, 0  ;;  %v815_v59 = vadd.f32 %v813_v22, %v784_v54  ;;  %s2967_s3 = sld [smem:[#allocation9 + $0x3c]] }
 0x13e   :  { %v820_v0 = vadd.f32 %v818_v29, %v789_v21  ;;  %v821_v53 = vadd.f32 %v819_v36, %v790_v7  ;;  %v875_v38 = vperm.slane %v873_v56, 1  ;;  %v826_v62 = vadd.f32 %v824_v24, %v795_v35  ;;  %s2973_s7 = sld [smem:[#allocation9 + $0x60]] }
 0x13f   :  { %v837_v50 = vmul.f32 %v836_v13, %v833_v25  ;;  %v838_v63 = vmul.f32 %v836_v13, %v834_v32  ;;  %v843_v17 = vmul.f32 %v842_v42, %v833_v25  ;;  %v827_v19 = vadd.f32 %v825_v23, %v796_v16  ;;  %v1912_v13 = vld [vmem:[#allocation7] ss:$2 sm:$0x3]  ;;  %s2983_s8 = sld [smem:[#allocation9 + $0x84]] }
 0x140   :  { %v844_v39 = vmul.f32 %v842_v42, %v834_v32  ;;  %v849_v26 = vmul.f32 %v848_v4, %v833_v25  ;;  %v850_v8 = vmul.f32 %v848_v4, %v834_v32  ;;  %v855_v10 = vmul.f32 %v854_v37, %v833_v25  ;;  %s2992_s9 = sld [smem:[#allocation9 + $0x21]] }
 0x141   :  { %v856_v33 = vmul.f32 %v854_v37, %v834_v32  ;;  %v871_v47 = vsel %vm870_vm0, %v867_v55, %v869_v57  ;;  %vm2866_vm1 = vcmp.eq.s32.totalorder %v874_v46, 1  ;;  %v887_v44 = vstv %s2819_s10  ;;  %s2995_s10 = sld [smem:[#allocation9 + $0x45]] }
 0x142   :  { %v893_v14 = vstv %s2828_s11  ;;  %v872_v3 = vsel %vm870_vm0, %v869_v57, %v867_v55  ;;  %vm2876_vm7 = vcmp.eq.s32.totalorder %v875_v38, 1  ;;  %v899_v41 = vstv %s2834_s12  ;;  %v947_v4 = vpop.permute.xlu0 %946  ;;  %s3001_s11 = sld [smem:[#allocation9 + $0x69]] }
 0x143   :  { %v839_v34 = vadd.f32 %v837_v50, %v808_v61  ;;  %v840_v11 = vadd.f32 %v838_v63, %v809_v2  ;;  %v845_v5 = vadd.f32 %v843_v17, %v814_v1  ;;  %v846_v40 = vadd.f32 %v844_v39, %v815_v59  ;;  %v949_v61 = vpop.permute.xlu1 %948  ;;  %s3003_s12 = sld [smem:[#allocation9 + $0x8d]] }
 0x144   :  { %v851_v45 = vadd.f32 %v849_v26, %v820_v0  ;;  %v852_v27 = vadd.f32 %v850_v8, %v821_v53  ;;  %v878_v49 = vsel %vm2866_vm1, %v871_v47, 0.0  ;;  %v857_v54 = vadd.f32 %v855_v10, %v826_v62 }
 0x145   :  { %v858_v21 = vadd.f32 %v856_v33, %v827_v19  ;;  %v879_v7 = vsel %vm2876_vm7, %v872_v3, 0.0  ;;  %v918_v12 = vstv %s2837_s13  ;;  %v924_v35 = vstv %s2840_s14  ;;  %s3008_s13 = sld [smem:[#allocation9 + $0x7]] }
 0x146   :  { %v930_v16 = vstv %s2845_s15  ;;  %v936_v9 = vstv %s2854_s16  ;;  %v1015_v42 = vadd.s32 1, %v1912_v13  ;;  %v882_v43 = vmul.f32 %v881_v58, %v878_v49  ;;  %s3017_s14 = sld [smem:[#allocation9 + $0x2b]] }
 0x147   :  { %v913_v30 = vsel %vm870_vm0, %v910_v15, %v912_v31  ;;  %v955_v60 = vstv %s2856_s17  ;;  %v961_v55 = vstv %s2858_s18  ;;  %v883_v22 = vmul.f32 %v881_v58, %v879_v7  ;;  %s3023_s15 = sld [smem:[#allocation9 + $0x4f]] }
 0x148   :  { %v888_v29 = vmul.f32 %v887_v44, %v878_v49  ;;  %v889_v36 = vmul.f32 %v887_v44, %v879_v7  ;;  %v914_v56 = vsel %vm870_vm0, %v912_v31, %v910_v15  ;;  %v894_v37 = vmul.f32 %v893_v14, %v878_v49  ;;  %s3041_s16 = sld [smem:[#allocation9 + $0x73]] }
 0x149   :  { %v967_v24 = vstv %s2860_s19  ;;  %v973_v23 = vstv %s2862_s20  ;;  %v992_v25 = vstv %s2870_s21  ;;  %v915_v32 = vsel %vm2866_vm1, %v913_v30, 0.0  ;;  %s3057_s17 = sld [smem:[#allocation9 + $0x10]] }
 0x14a   :  { %v998_v2 = vstv %s2880_s22  ;;  %vm1016_vm8 = vcmp.ge.s32.totalorder %v1015_v42, 0  ;;  %vm1017_vm3 = vcmp.lt.s32.totalorder %v1015_v42, 16  ;;  %v895_v58 = vmul.f32 %v893_v14, %v879_v7  ;;  %s3062_s18 = sld [smem:[#allocation9 + $0x34]] }
 0x14b   :  { %v900_v1 = vmul.f32 %v899_v41, %v878_v49  ;;  %v901_v46 = vmul.f32 %v899_v41, %v879_v7  ;;  %v916_v57 = vsel %vm2876_vm7, %v914_v56, 0.0  ;;  %v884_v59 = vadd.f32 %v882_v43, %v839_v34  ;;  %vm2923_vm9 = vmand %vm1016_vm8, %vm1017_vm3  ;;  %s3072_s19 = sld [smem:[#allocation9 + $0x58]] }
 0x14c   :  { %v885_v0 = vadd.f32 %v883_v22, %v840_v11  ;;  %v890_v53 = vadd.f32 %v888_v29, %v845_v5  ;;  %v891_v38 = vadd.f32 %v889_v36, %v846_v40  ;;  %v896_v62 = vadd.f32 %v894_v37, %v851_v45  ;;  %v984_v11 = vpop.permute.xlu2 %983  ;;  %vm2939_vm10 = vmand %vm2923_vm9, %vm88_vm4  ;;  %s3082_s20 = sld [smem:[#allocation9 + $0x7c]] }
 0x14d   :  { %v919_v50 = vmul.f32 %v918_v12, %v915_v32  ;;  %v950_v63 = vsel %vm870_vm0, %v947_v4, %v949_v61  ;;  %v951_v17 = vsel %vm870_vm0, %v949_v61, %v947_v4  ;;  %v920_v39 = vmul.f32 %v918_v12, %v916_v57  ;;  %v986_v12 = vpop.permute.xlu0 %985  ;;  %vm2963_vm12 = vmand %vm2939_vm10, %vm90_vm5  ;;  %s3096_s21 = sld [smem:[#allocation9 + $0x19]] }
 0x14e   :  { %v925_v26 = vmul.f32 %v924_v35, %v915_v32  ;;  %v926_v8 = vmul.f32 %v924_v35, %v916_v57  ;;  %v931_v15 = vmul.f32 %v930_v16, %v915_v32  ;;  %v897_v10 = vadd.f32 %v895_v58, %v852_v27  ;;  %vm1175_vm5 = vmand %vm2923_vm9, %vm252_vm11  ;;  %s3098_s22 = sld [smem:[#allocation9 + $0x3d]] }
 0x14f   :  { %v902_v33 = vadd.f32 %v900_v1, %v857_v54  ;;  %v903_v47 = vadd.f32 %v901_v46, %v858_v21  ;;  %v932_v44 = vmul.f32 %v930_v16, %v916_v57  ;;  %v937_v14 = vmul.f32 %v936_v9, %v915_v32  ;;  %vm1176_vm11 = vmand %vm1175_vm5, %vm254_vm13 }
 0x150   :  { %v938_v3 = vmul.f32 %v936_v9, %v916_v57  ;;  %v952_v41 = vsel %vm2866_vm1, %v950_v63, 0.0  ;;  %v953_v34 = vsel %vm2876_vm7, %v951_v17, 0.0  ;;  %v921_v40 = vadd.f32 %v919_v50, %v884_v59 }
 0x151   :  { %v1004_v45 = vstv %s2895_s25  ;;  %v1010_v27 = vstv %s2899_s26  ;;  %v1041_v49 = vstv %s2904_s27  ;;  %v922_v31 = vadd.f32 %v920_v39, %v885_v0  ;;  %s3108_s25 = sld [smem:[#allocation9 + $0x61]] }
 0x152   :  { %v927_v54 = vadd.f32 %v925_v26, %v890_v53  ;;  %v928_v21 = vadd.f32 %v926_v8, %v891_v38  ;;  %v933_v7 = vadd.f32 %v931_v15, %v896_v62  ;;  %vm1030_vm4 = vcmp.lt.s32.totalorder %v2148_v51, 113  ;;  %v1027_v32 = vpop.permute.xlu1 %1026  ;;  %s3119_s26 = sld [smem:[#allocation9 + $0x85]] }
 0x153   :  { %v934_v35 = vadd.f32 %v932_v44, %v897_v10  ;;  %v956_v16 = vmul.f32 %v955_v60, %v952_v41  ;;  %v957_v9 = vmul.f32 %v955_v60, %v953_v34  ;;  %v962_v13 = vmul.f32 %v961_v55, %v952_v41  ;;  %s3141_s27 = sld [smem:[#allocation9 + $0x22]] }
 0x154   :  { %v939_v43 = vadd.f32 %v937_v14, %v902_v33  ;;  %v940_v30 = vadd.f32 %v938_v3, %v903_v47  ;;  %v963_v22 = vmul.f32 %v961_v55, %v953_v34  ;;  %v968_v29 = vmul.f32 %v967_v24, %v952_v41  ;;  %v1029_v17 = vpop.permute.xlu2 %1028 }
 0x155   :  { %v969_v60 = vmul.f32 %v967_v24, %v953_v34  ;;  %v974_v52 = vmul.f32 %v973_v23, %v952_v41  ;;  %v987_v36 = vsel %vm870_vm0, %v984_v11, %v986_v12  ;;  %v988_v56 = vsel %vm870_vm0, %v986_v12, %v984_v11 }
 0x156   :  { %v975_v4 = vmul.f32 %v973_v23, %v953_v34  ;;  %v1047_v55 = vstv %s2911_s28  ;;  %v1053_v37 = vstv %s2913_s0  ;;  %v1033_v61 = vsel %vm2963_vm12, 1, %v3689_v6  ;;  %s3151_s28 = sld [smem:[#allocation9 + $0x46]] }
 0x157   :  { %v958_v24 = vadd.f32 %v956_v16, %v921_v40  ;;  %v959_v58 = vadd.f32 %v957_v9, %v922_v31  ;;  %v964_v1 = vadd.f32 %v962_v13, %v927_v54  ;;  %v1059_v46 = vstv %s2919_s29  ;;  %s3161_s0 = sld [smem:[#allocation9 + $0x6a]] }
 0x158   :  { %v965_v57 = vadd.f32 %v963_v22, %v928_v21  ;;  %v970_v23 = vadd.f32 %v968_v29, %v933_v7  ;;  %v989_v59 = vsel %vm2866_vm1, %v987_v36, 0.0  ;;  %v990_v0 = vsel %vm2876_vm7, %v988_v56, 0.0  ;;  %s3165_s29 = sld [smem:[#allocation9 + $0x8e]]  ;;  %vm3214_vm7 = vmand %vm2923_vm9, %vm411_vm2 }
 0x159   :  { %v971_v53 = vadd.f32 %v969_v60, %v934_v35  ;;  %v976_v38 = vadd.f32 %v974_v52, %v939_v43  ;;  %v1034_v62 = vperm.slane %v1033_v61, 0  ;;  %v1035_v50 = vperm.slane %v1033_v61, 1  ;;  %vm3233_vm2 = vmand %vm3214_vm7, %vm413_vm6 }
 0x15a   :  { %v977_v63 = vadd.f32 %v975_v4, %v940_v30  ;;  %v1078_v28 = vstv %s2927_s30  ;;  %v1084_v39 = vstv %s2929_s1  ;;  %v1090_v26 = vstv %s2943_s5  ;;  %v1070_v3 = vpop.permute.xlu0 %1069  ;;  %v1072_v9 = vpop.permute.xlu1 %1071  ;;  %s3177_s30 = sld [smem:[#allocation9 + $0x8]] }
 0x15b   :  { %v993_v20 = vmul.f32 %v992_v25, %v989_v59  ;;  %v994_v8 = vmul.f32 %v992_v25, %v990_v0  ;;  %v999_v15 = vmul.f32 %v998_v2, %v989_v59  ;;  %v1096_v10 = vstv %s2948_s6  ;;  %s3179_s1 = sld [smem:[#allocation9 + $0x2c]] }
 0x15c   :  { %v1000_v33 = vmul.f32 %v998_v2, %v990_v0  ;;  %v1005_v47 = vmul.f32 %v1004_v45, %v989_v59  ;;  %v1006_v44 = vmul.f32 %v1004_v45, %v990_v0  ;;  %v1011_v14 = vmul.f32 %v1010_v27, %v989_v59  ;;  %v1107_v22 = vpop.permute.xlu2 %1106  ;;  %s3189_s5 = sld [smem:[#allocation9 + $0x50]] }
 0x15d   :  { %v1031_v25 = vsel %vm1030_vm4, %v1027_v32, %v1029_v17  ;;  %v1032_v2 = vsel %vm1030_vm4, %v1029_v17, %v1027_v32  ;;  %vm3033_vm15 = vcmp.eq.s32.totalorder %v1034_v62, 1  ;;  %vm3037_vm14 = vcmp.eq.s32.totalorder %v1035_v50, 1  ;;  %s3199_s6 = sld [smem:[#allocation9 + $0x74]] }
 0x15e   :  { %v1012_v11 = vmul.f32 %v1010_v27, %v990_v0  ;;  %v1115_v5 = vstv %s2951_s2  ;;  %v1121_v40 = vstv %s2967_s3  ;;  %v1127_v45 = vstv %s2973_s7  ;;  %s3221_s2 = sld [smem:[#allocation9 + $0x11]] }
 0x15f   :  { %v995_v31 = vadd.f32 %v993_v20, %v958_v24  ;;  %v1133_v54 = vstv %s2983_s8  ;;  %v1152_v21 = vstv %s2992_s9  ;;  %v1158_v7 = vstv %s2995_s10  ;;  %s3237_s3 = sld [smem:[#allocation9 + $0x35]] }
 0x160   :  { %v996_v12 = vadd.f32 %v994_v8, %v959_v58  ;;  %v1001_v35 = vadd.f32 %v999_v15, %v964_v1  ;;  %v1038_v16 = vsel %vm3033_vm15, %v1031_v25, 0.0  ;;  %v1039_v27 = vsel %vm3037_vm14, %v1032_v2, 0.0  ;;  %s3247_s7 = sld [smem:[#allocation9 + $0x59]] }
 0x161   :  { %v1002_v13 = vadd.f32 %v1000_v33, %v965_v57  ;;  %v1007_v42 = vadd.f32 %v1005_v47, %v970_v23  ;;  %v1008_v43 = vadd.f32 %v1006_v44, %v971_v53  ;;  %v1013_v30 = vadd.f32 %v1011_v14, %v976_v38  ;;  %s3253_s8 = sld [smem:[#allocation9 + $0x7d]] }
 0x162   :  { %v1014_v48 = vadd.f32 %v1012_v11, %v977_v63  ;;  %v1164_v29 = vstv %s3001_s11  ;;  %v1170_v60 = vstv %s3003_s12  ;;  %v1189_v52 = vsel %vm1176_vm11, 1, %v3689_v6  ;;  %s3270_s9 = sld [smem:[#allocation9 + $0x1a]] }
 0x163   :  { %v1042_v36 = vmul.f32 %v1041_v49, %v1038_v16  ;;  %v1043_v56 = vmul.f32 %v1041_v49, %v1039_v27  ;;  %v1073_v4 = vsel %vm1030_vm4, %v1070_v3, %v1072_v9  ;;  %v1074_v32 = vsel %vm1030_vm4, %v1072_v9, %v1070_v3  ;;  %s3280_s10 = sld [smem:[#allocation9 + $0x3e]] }
 0x164   :  { %v1048_v61 = vmul.f32 %v1047_v55, %v1038_v16  ;;  %v1049_v24 = vmul.f32 %v1047_v55, %v1039_v27  ;;  %v1054_v58 = vmul.f32 %v1053_v37, %v1038_v16  ;;  %v1055_v1 = vmul.f32 %v1053_v37, %v1039_v27  ;;  %v1109_v55 = vpop.permute.xlu0 %1108  ;;  %v1146_v9 = vpop.permute.xlu2 %1145  ;;  %s3289_s11 = sld [smem:[#allocation9 + $0x62]] }
 0x165   :  { %v1197_v49 = vstv %s3008_s13  ;;  %v1203_v57 = vstv %s3017_s14  ;;  %v1209_v23 = vstv %s3023_s15  ;;  %v1215_v59 = vstv %s3041_s16  ;;  %s3294_s12 = sld [smem:[#allocation9 + $0x86]] }
 0x166   :  { %v1075_v0 = vsel %vm3033_vm15, %v1073_v4, 0.0  ;;  %v1076_v53 = vsel %vm3037_vm14, %v1074_v32, 0.0  ;;  %v1190_v38 = vperm.slane %v1189_v52, 0  ;;  %v1191_v62 = vperm.slane %v1189_v52, 1  ;;  %s3313_s13 = sld [smem:[#allocation9 + $0x23]] }
 0x167   :  { %v1044_v50 = vadd.f32 %v1042_v36, %v995_v31  ;;  %v1045_v37 = vadd.f32 %v1043_v56, %v996_v12  ;;  %v1060_v63 = vmul.f32 %v1059_v46, %v1038_v16  ;;  %v1061_v17 = vmul.f32 %v1059_v46, %v1039_v27  ;;  %s3317_s14 = sld [smem:[#allocation9 + $0x47]] }
 0x168   :  { %v1050_v20 = vadd.f32 %v1048_v61, %v1001_v35  ;;  %v1051_v8 = vadd.f32 %v1049_v24, %v1002_v13  ;;  %v1056_v15 = vadd.f32 %v1054_v58, %v1007_v42  ;;  %v1057_v33 = vadd.f32 %v1055_v1, %v1008_v43  ;;  %s3327_s15 = sld [smem:[#allocation9 + $0x6b]] }
 0x169   :  { %v1079_v44 = vmul.f32 %v1078_v28, %v1075_v0  ;;  %v1080_v14 = vmul.f32 %v1078_v28, %v1076_v53  ;;  %v1110_v3 = vsel %vm1030_vm4, %v1107_v22, %v1109_v55  ;;  %v1111_v46 = vsel %vm1030_vm4, %v1109_v55, %v1107_v22  ;;  %s3339_s16 = sld [smem:[#allocation9 + $0x8f]] }
 0x16a   :  { %v1144_v47 = vpop.permute.xlu1 %1143  ;;  %v1085_v25 = vmul.f32 %v1084_v39, %v1075_v0  ;;  %v1086_v2 = vmul.f32 %v1084_v39, %v1076_v53  ;;  %v1091_v11 = vmul.f32 %v1090_v26, %v1075_v0  ;;  %v1092_v28 = vmul.f32 %v1090_v26, %v1076_v53 }
 0x16b   :  { %vm1186_vm13 = vcmp.lt.s32.totalorder %v2148_v51, 112  ;;  %v1062_v31 = vadd.f32 %v1060_v63, %v1013_v30  ;;  %v1063_v12 = vadd.f32 %v1061_v17, %v1014_v48  ;;  %v1234_v35 = vstv %s3057_s17  ;;  %s3349_s17 = sld [smem:[#allocation10]] }
 0x16c   :  { %v1240_v16 = vstv %s3062_s18  ;;  %v1112_v27 = vsel %vm3033_vm15, %v1110_v3, 0.0  ;;  %v1113_v39 = vsel %vm3037_vm14, %v1111_v46, 0.0  ;;  %v1246_v13 = vstv %s3072_s19  ;;  %v1226_v3 = vpop.permute.xlu2 %1225  ;;  %s3353_s18 = sld [smem:[#allocation10 + $0x1]] }
 0x16d   :  { %v1252_v42 = vstv %s3082_s20  ;;  %v1081_v26 = vadd.f32 %v1079_v44, %v1044_v50  ;;  %v1082_v43 = vadd.f32 %v1080_v14, %v1045_v37  ;;  %v1097_v22 = vmul.f32 %v1096_v10, %v1075_v0  ;;  %s3363_s19 = sld [smem:[#allocation10 + $0x2]] }
 0x16e   :  { %v1098_v30 = vmul.f32 %v1096_v10, %v1076_v53  ;;  %vm3133_vm0 = vcmp.eq.s32.totalorder %v1190_v38, 1  ;;  %vm3137_vm1 = vcmp.eq.s32.totalorder %v1191_v62, 1  ;;  %v1087_v36 = vadd.f32 %v1085_v25, %v1050_v20  ;;  %s3458_s20 = sld [smem:[#allocation10 + $0x3]] }
 0x16f   :  { %v1088_v56 = vadd.f32 %v1086_v2, %v1051_v8  ;;  %v1093_v4 = vadd.f32 %v1091_v11, %v1056_v15  ;;  %v1094_v32 = vadd.f32 %v1092_v28, %v1057_v33  ;;  %v1116_v10 = vmul.f32 %v1115_v5, %v1112_v27 }
 0x170   :  { %v1117_v24 = vmul.f32 %v1115_v5, %v1113_v39  ;;  %v1147_v58 = vsel %vm1030_vm4, %v1144_v47, %v1146_v9  ;;  %v1148_v1 = vsel %vm1030_vm4, %v1146_v9, %v1144_v47  ;;  %v1122_v0 = vmul.f32 %v1121_v40, %v1112_v27 }
 0x171   :  { %v1123_v53 = vmul.f32 %v1121_v40, %v1113_v39  ;;  %v1128_v55 = vmul.f32 %v1127_v45, %v1112_v27  ;;  %v1129_v5 = vmul.f32 %v1127_v45, %v1113_v39  ;;  %v1099_v38 = vadd.f32 %v1097_v22, %v1062_v31 }
 0x172   :  { %v1183_v61 = vpop.permute.xlu0 %1182  ;;  %v1100_v62 = vadd.f32 %v1098_v30, %v1063_v12  ;;  %v1271_v50 = vstv %s3096_s21  ;;  %v1277_v37 = vstv %s3098_s22  ;;  %v1149_v63 = vsel %vm3033_vm15, %v1147_v58, 0.0  ;;  %v1185_v17 = vpop.permute.xlu1 %1184  ;;  %s2034_s21 = smov [#allocation11]  }
 0x173   :  { %v1150_v40 = vsel %vm3037_vm14, %v1148_v1, 0.0  ;;  %v1283_v20 = vstv %s3108_s25  ;;  %v1289_v8 = vstv %s3119_s26  ;;  %v1118_v45 = vadd.f32 %v1116_v10, %v1081_v26  ;;  %s1692_s22 = sshll.u32 %s2034_s21, 4  ;;  %s1693_s22 = int_to_ptr.vmem [resolvable:$true] %s1692_s22 }
 0x174   :  { %v1119_v15 = vadd.f32 %v1117_v24, %v1082_v43  ;;  %v1134_v33 = vmul.f32 %v1133_v54, %v1112_v27  ;;  %v1135_v47 = vmul.f32 %v1133_v54, %v1113_v39  ;;  %v1124_v41 = vadd.f32 %v1122_v0, %v1087_v36 }
 0x175   :  { %v1125_v34 = vadd.f32 %v1123_v53, %v1088_v56  ;;  %v1130_v44 = vadd.f32 %v1128_v55, %v1093_v4  ;;  %v1131_v14 = vadd.f32 %v1129_v5, %v1094_v32  ;;  %v1153_v46 = vmul.f32 %v1152_v21, %v1149_v63 }
 0x176   :  { %v1154_v25 = vmul.f32 %v1152_v21, %v1150_v40  ;;  %v1187_v54 = vsel %vm1186_vm13, %v1183_v61, %v1185_v17  ;;  %v1188_v2 = vsel %vm1186_vm13, %v1185_v17, %v1183_v61  ;;  %v1159_v11 = vmul.f32 %v1158_v7, %v1149_v63 }
 0x177   :  { %v1160_v28 = vmul.f32 %v1158_v7, %v1150_v40  ;;  %v1165_v31 = vmul.f32 %v1164_v29, %v1149_v63  ;;  %v1166_v21 = vmul.f32 %v1164_v29, %v1150_v40  ;;  %v1136_v12 = vadd.f32 %v1134_v33, %v1099_v38 }
 0x178   :  { %v1137_v27 = vadd.f32 %v1135_v47, %v1100_v62  ;;  %v1171_v39 = vmul.f32 %v1170_v60, %v1149_v63  ;;  %v1308_v9 = vstv %s3141_s27  ;;  %v1194_v26 = vsel %vm3133_vm0, %v1187_v54, 0.0  ;;  %s1694_s27 = sshll.u32 %s3676_s4, 4  ;;  %s1695_s27 = int_to_ptr.hbm [resolvable:$true] %s1694_s27 }
 0x179   :  { %v1195_v43 = vsel %vm3137_vm1, %v1188_v2, 0.0  ;;  %v1314_v22 = vstv %s3151_s28  ;;  %v1320_v30 = vstv %s3161_s0  ;;  %v1155_v36 = vadd.f32 %v1153_v46, %v1118_v45 }
 0x17a   :  { %v1228_v7 = vpop.permute.xlu0 %1227  ;;  %v1156_v56 = vadd.f32 %v1154_v25, %v1119_v15  ;;  %v1172_v4 = vmul.f32 %v1170_v60, %v1150_v40  ;;  %v1326_v32 = vstv %s3165_s29  ;;  %v1161_v61 = vadd.f32 %v1159_v11, %v1124_v41 }
 0x17b   :  { %v1162_v10 = vadd.f32 %v1160_v28, %v1125_v34  ;;  %v1167_v24 = vadd.f32 %v1165_v31, %v1130_v44  ;;  %v1168_v58 = vadd.f32 %v1166_v21, %v1131_v14  ;;  %v1173_v19 = vadd.f32 %v1171_v39, %v1136_v12 }
 0x17c   :  { %v1198_v0 = vmul.f32 %v1197_v49, %v1194_v26  ;;  %v1199_v53 = vmul.f32 %v1197_v49, %v1195_v43  ;;  %v1229_v60 = vsel %vm1186_vm13, %v1226_v3, %v1228_v7  ;;  %v1204_v5 = vmul.f32 %v1203_v57, %v1194_v26 }
 0x17d   :  { %v1205_v49 = vmul.f32 %v1203_v57, %v1195_v43  ;;  %v1210_v38 = vmul.f32 %v1209_v23, %v1194_v26  ;;  %v1230_v18 = vsel %vm1186_vm13, %v1228_v7, %v1226_v3  ;;  %v1174_v62 = vadd.f32 %v1172_v4, %v1137_v27  ;;  %v1265_v57 = vpop.permute.xlu2 %1264 }
 0x17e   :  { %v1211_v63 = vmul.f32 %v1209_v23, %v1195_v43  ;;  %v1353_v40 = vstv %s3177_s30  ;;  %v1359_v17 = vstv %s3179_s1  ;;  %v1231_v45 = vsel %vm3133_vm0, %v1229_v60, 0.0 }
 0x17f   :  { %v1365_v15 = vstv %s3189_s5  ;;  %v1371_v33 = vstv %s3199_s6  ;;  %v1345_v47 = vsel %vm3233_vm2, 1, %v3689_v6  ;;  %v1200_v41 = vadd.f32 %v1198_v0, %v1155_v36 }
 0x180   :  { %v1216_v23 = vmul.f32 %v1215_v59, %v1194_v26  ;;  %v1217_v34 = vmul.f32 %v1215_v59, %v1195_v43  ;;  %v1232_v44 = vsel %vm3137_vm1, %v1230_v18, 0.0  ;;  %v1201_v14 = vadd.f32 %v1199_v53, %v1156_v56 }
 0x181   :  { %v1206_v3 = vadd.f32 %v1204_v5, %v1161_v61  ;;  %v1207_v46 = vadd.f32 %v1205_v49, %v1162_v10  ;;  %v1212_v25 = vadd.f32 %v1210_v38, %v1167_v24  ;;  %v1213_v54 = vadd.f32 %v1211_v63, %v1168_v58 }
 0x182   :  { %v1263_v1 = vpop.permute.xlu1 %1262  ;;  %v1235_v2 = vmul.f32 %v1234_v35, %v1231_v45  ;;  %v1346_v11 = vperm.slane %v1345_v47, 0  ;;  %v1347_v28 = vperm.slane %v1345_v47, 1  ;;  %v1236_v59 = vmul.f32 %v1234_v35, %v1232_v44 }
 0x183   :  { %v1241_v31 = vmul.f32 %v1240_v16, %v1231_v45  ;;  %v1266_v21 = vsel %vm1186_vm13, %v1263_v1, %v1265_v57  ;;  %v1267_v12 = vsel %vm1186_vm13, %v1265_v57, %v1263_v1  ;;  %v1218_v27 = vadd.f32 %v1216_v23, %v1173_v19 }
 0x184   :  { %v1242_v39 = vmul.f32 %v1240_v16, %v1232_v44  ;;  %v1247_v26 = vmul.f32 %v1246_v13, %v1231_v45  ;;  %v1248_v43 = vmul.f32 %v1246_v13, %v1232_v44  ;;  %vm1342_vm6 = vcmp.lt.s32.totalorder %v2148_v51, 111 }
 0x185   :  { %v1219_v35 = vadd.f32 %v1217_v34, %v1174_v62  ;;  %v1390_v29 = vstv %s3221_s2  ;;  %v1396_v36 = vstv %s3237_s3  ;;  %v1402_v56 = vstv %s3247_s7  ;;  %v1339_v19 = vpop.permute.xlu2 %1338 }
 0x186   :  { %v1253_v4 = vmul.f32 %v1252_v42, %v1231_v45  ;;  %v1268_v16 = vsel %vm3133_vm0, %v1266_v21, 0.0  ;;  %v1269_v13 = vsel %vm3137_vm1, %v1267_v12, 0.0  ;;  %v1408_v61 = vstv %s3253_s8 }
 0x187   :  { %v1237_v10 = vadd.f32 %v1235_v2, %v1200_v41  ;;  %v1238_v24 = vadd.f32 %v1236_v59, %v1201_v14  ;;  %v1243_v58 = vadd.f32 %v1241_v31, %v1206_v3  ;;  %v1254_v1 = vmul.f32 %v1252_v42, %v1232_v44 }
 0x188   :  { %vm3305_vm8 = vcmp.eq.s32.totalorder %v1346_v11, 1  ;;  %vm3309_vm3 = vcmp.eq.s32.totalorder %v1347_v28, 1  ;;  %v1244_v60 = vadd.f32 %v1242_v39, %v1207_v46  ;;  %v1249_v55 = vadd.f32 %v1247_v26, %v1212_v25 }
 0x189   :  { %v1250_v5 = vadd.f32 %v1248_v43, %v1213_v54  ;;  %v1272_v49 = vmul.f32 %v1271_v50, %v1268_v16  ;;  %v1273_v38 = vmul.f32 %v1271_v50, %v1269_v13  ;;  %v1278_v18 = vmul.f32 %v1277_v37, %v1268_v16 }
 0x18a   :  { %v1300_v6 = vpop.permute.xlu0 %1299  ;;  %v1302_v7 = vpop.permute.xlu1 %1301  ;;  %v1255_v63 = vadd.f32 %v1253_v4, %v1218_v27  ;;  %v1279_v45 = vmul.f32 %v1277_v37, %v1269_v13  ;;  %v1284_v57 = vmul.f32 %v1283_v20, %v1268_v16  ;;  %v1285_v47 = vmul.f32 %v1283_v20, %v1269_v13 }
 0x18b   :  { %v1303_v42 = vsel %vm1186_vm13, %v1300_v6, %v1302_v7  ;;  %v1304_v62 = vsel %vm1186_vm13, %v1302_v7, %v1300_v6  ;;  %v1256_v41 = vadd.f32 %v1254_v1, %v1219_v35  ;;  %v1427_v23 = vstv %s3270_s9 }
 0x18c   :  { %v1305_v50 = vsel %vm3133_vm0, %v1303_v42, 0.0  ;;  %v1433_v34 = vstv %s3280_s10  ;;  %v1290_v44 = vmul.f32 %v1289_v8, %v1268_v16  ;;  %v1291_v37 = vmul.f32 %v1289_v8, %v1269_v13 }
 0x18d   :  { %v1306_v14 = vsel %vm3137_vm1, %v1304_v62, 0.0  ;;  %v1439_v20 = vstv %s3289_s11  ;;  %v1274_v46 = vadd.f32 %v1272_v49, %v1237_v10  ;;  %v1275_v25 = vadd.f32 %v1273_v38, %v1238_v24  ;;  %v1384_v26 = vpop.permute.xlu2 %1383 }
 0x18e   :  { %v1280_v48 = vadd.f32 %v1278_v18, %v1243_v58  ;;  %v1445_v54 = vstv %s3294_s12  ;;  %v1281_v2 = vadd.f32 %v1279_v45, %v1244_v60  ;;  %v1286_v6 = vadd.f32 %v1284_v57, %v1249_v55 }
 0x18f   :  { %v1287_v11 = vadd.f32 %v1285_v47, %v1250_v5  ;;  %v1309_v8 = vmul.f32 %v1308_v9, %v1305_v50  ;;  %v1310_v52 = vmul.f32 %v1308_v9, %v1306_v14  ;;  %v1315_v28 = vmul.f32 %v1314_v22, %v1305_v50 }
 0x190   :  { %v1292_v21 = vadd.f32 %v1290_v44, %v1255_v63  ;;  %v1293_v12 = vadd.f32 %v1291_v37, %v1256_v41  ;;  %v1316_v27 = vmul.f32 %v1314_v22, %v1306_v14  ;;  %v1321_v39 = vmul.f32 %v1320_v30, %v1305_v50 }
 0x191   :  { %v1322_v9 = vmul.f32 %v1320_v30, %v1306_v14  ;;  %v1464_v35 = vstv %s3313_s13  ;;  %v1470_v7 = vstv %s3317_s14  ;;  %v1476_v4 = vstv %s3327_s15 }
 0x192   :  { %v1341_v3 = vpop.permute.xlu0 %1340  ;;  %v1327_v16 = vmul.f32 %v1326_v32, %v1305_v50  ;;  %v1328_v13 = vmul.f32 %v1326_v32, %v1306_v14  ;;  %v1311_v30 = vadd.f32 %v1309_v8, %v1274_v46  ;;  %v1312_v24 = vadd.f32 %v1310_v52, %v1275_v25 }
 0x193   :  { %v1343_v59 = vsel %vm1342_vm6, %v1339_v19, %v1341_v3  ;;  %v1344_v31 = vsel %vm1342_vm6, %v1341_v3, %v1339_v19  ;;  %v1317_v58 = vadd.f32 %v1315_v28, %v1280_v48  ;;  %v1482_v1 = vstv %s3339_s16 }
 0x194   :  { %v1350_v22 = vsel %vm3305_vm8, %v1343_v59, 0.0  ;;  %v1351_v10 = vsel %vm3309_vm3, %v1344_v31, 0.0  ;;  %v1318_v19 = vadd.f32 %v1316_v27, %v1281_v2  ;;  %v1323_v60 = vadd.f32 %v1321_v39, %v1286_v6 }
 0x195   :  { %v1354_v5 = vmul.f32 %v1353_v40, %v1350_v22  ;;  %v1355_v42 = vmul.f32 %v1353_v40, %v1351_v10  ;;  %v1360_v49 = vmul.f32 %v1359_v17, %v1350_v22  ;;  %v1361_v38 = vmul.f32 %v1359_v17, %v1351_v10 }
 0x196   :  { %v1324_v18 = vadd.f32 %v1322_v9, %v1287_v11  ;;  %v1329_v62 = vadd.f32 %v1327_v16, %v1292_v21  ;;  %v1330_v63 = vadd.f32 %v1328_v13, %v1293_v12  ;;  %v1488_v45 = vstv %s3349_s17 }
 0x197   :  { %v1532_v41 = vstv %s3353_s18  ;;  %v1576_v50 = vstv %s3363_s19  ;;  %v1366_v40 = vmul.f32 %v1365_v15, %v1350_v22  ;;  %v1367_v17 = vmul.f32 %v1365_v15, %v1351_v10 }
 0x198   :  { %v1372_v44 = vmul.f32 %v1371_v33, %v1350_v22  ;;  %v1373_v37 = vmul.f32 %v1371_v33, %v1351_v10  ;;  %v1356_v14 = vadd.f32 %v1354_v5, %v1311_v30  ;;  %v1357_v3 = vadd.f32 %v1355_v42, %v1312_v24  ;;  %v1456_v30 = vpop.permute.xlu2 %1455 }
 0x199   :  { %v1362_v46 = vadd.f32 %v1360_v49, %v1317_v58  ;;  %v1363_v25 = vadd.f32 %v1361_v38, %v1318_v19  ;;  %v1368_v27 = vadd.f32 %v1366_v40, %v1323_v60  ;;  %v1369_v39 = vadd.f32 %v1367_v17, %v1324_v18 }
 0x19a   :  { %v1382_v43 = vpop.permute.xlu1 %1381  ;;  %v1375_v9 = vadd.f32 %v1373_v37, %v1330_v63 }
 0x19b   :  { %v1385_v32 = vsel %vm1342_vm6, %v1382_v43, %v1384_v26  ;;  %v1386_v55 = vsel %vm1342_vm6, %v1384_v26, %v1382_v43 }
 0x19c   :  { %v1387_v57 = vsel %vm3305_vm8, %v1385_v32, 0.0  ;;  %v1388_v47 = vsel %vm3309_vm3, %v1386_v55, 0.0 }
 0x19d   :  { %v1391_v6 = vmul.f32 %v1390_v29, %v1387_v57  ;;  %v1392_v11 = vmul.f32 %v1390_v29, %v1388_v47  ;;  %v1397_v8 = vmul.f32 %v1396_v36, %v1387_v57  ;;  %v1398_v52 = vmul.f32 %v1396_v36, %v1388_v47 }
 0x19e   :  { %v1403_v29 = vmul.f32 %v1402_v56, %v1387_v57  ;;  %v1404_v31 = vmul.f32 %v1402_v56, %v1388_v47  ;;  %v1409_v21 = vmul.f32 %v1408_v61, %v1387_v57  ;;  %v1410_v12 = vmul.f32 %v1408_v61, %v1388_v47 }
 0x19f   :  { %v1374_v36 = vadd.f32 %v1372_v44, %v1329_v62  ;;  %v1393_v26 = vadd.f32 %v1391_v6, %v1356_v14  ;;  %v1394_v43 = vadd.f32 %v1392_v11, %v1357_v3  ;;  %v1399_v22 = vadd.f32 %v1397_v8, %v1362_v46 }
 0x1a0   :  { %v1400_v56 = vadd.f32 %v1398_v52, %v1363_v25  ;;  %v1405_v24 = vadd.f32 %v1403_v29, %v1368_v27  ;;  %v1406_v58 = vadd.f32 %v1404_v31, %v1369_v39  ;;  %v1412_v60 = vadd.f32 %v1410_v12, %v1375_v9 }
 0x1a1   :  { %v1411_v19 = vadd.f32 %v1409_v21, %v1374_v36  ;;  %v1620_v31 = vstv %s3458_s20 }
 0x1a2   :  { %v1421_v48 = vpop.permute.xlu1 %1420  ;;  %v1419_v2 = vpop.permute.xlu0 %1418 }
 0x1a3   :  { %v1422_v15 = vsel %vm1342_vm6, %v1419_v2, %v1421_v48  ;;  %v1423_v33 = vsel %vm1342_vm6, %v1421_v48, %v1419_v2 }
 0x1a4   :  { %v1424_v28 = vsel %vm3305_vm8, %v1422_v15, 0.0  ;;  %v1425_v59 = vsel %vm3309_vm3, %v1423_v33, 0.0 }
 0x1a5   :  { %v1428_v16 = vmul.f32 %v1427_v23, %v1424_v28  ;;  %v1429_v13 = vmul.f32 %v1427_v23, %v1425_v59  ;;  %v1434_v10 = vmul.f32 %v1433_v34, %v1424_v28  ;;  %v1435_v61 = vmul.f32 %v1433_v34, %v1425_v59 }
 0x1a6   :  { %v1440_v32 = vmul.f32 %v1439_v20, %v1424_v28  ;;  %v1441_v55 = vmul.f32 %v1439_v20, %v1425_v59  ;;  %v1446_v23 = vmul.f32 %v1445_v54, %v1424_v28  ;;  %v1447_v5 = vmul.f32 %v1445_v54, %v1425_v59 }
 0x1a7   :  { %v1430_v34 = vadd.f32 %v1428_v16, %v1393_v26  ;;  %v1431_v49 = vadd.f32 %v1429_v13, %v1394_v43  ;;  %v1436_v62 = vadd.f32 %v1434_v10, %v1399_v22  ;;  %v1437_v63 = vadd.f32 %v1435_v61, %v1400_v56 }
 0x1a8   :  { %v1442_v0 = vadd.f32 %v1440_v32, %v1405_v24  ;;  %v1443_v17 = vadd.f32 %v1441_v55, %v1406_v58  ;;  %v1448_v15 = vadd.f32 %v1446_v23, %v1411_v19 }
 0x1aa   :  { %v1458_v42 = vpop.permute.xlu0 %1457 }
 0x1ab   :  { %v1459_v38 = vsel %vm1342_vm6, %v1456_v30, %v1458_v42  ;;  %v1460_v18 = vsel %vm1342_vm6, %v1458_v42, %v1456_v30 }
 0x1ac   :  { %v1461_v20 = vsel %vm3305_vm8, %v1459_v38, 0.0  ;;  %v1462_v57 = vsel %vm3309_vm3, %v1460_v18, 0.0 }
 0x1ad   :  { %v1465_v54 = vmul.f32 %v1464_v35, %v1461_v20  ;;  %v1466_v47 = vmul.f32 %v1464_v35, %v1462_v57  ;;  %v1471_v51 = vmul.f32 %v1470_v7, %v1461_v20  ;;  %v1472_v40 = vmul.f32 %v1470_v7, %v1462_v57 }
 0x1ae   :  { %v1477_v53 = vmul.f32 %v1476_v4, %v1461_v20  ;;  %v1478_v44 = vmul.f32 %v1476_v4, %v1462_v57  ;;  %v1483_v48 = vmul.f32 %v1482_v1, %v1461_v20  ;;  %v1484_v7 = vmul.f32 %v1482_v1, %v1462_v57 }
 0x1af   :  { %v1467_v37 = vadd.f32 %v1465_v54, %v1430_v34  ;;  %v1468_v14 = vadd.f32 %v1466_v47, %v1431_v49  ;;  %v1473_v3 = vadd.f32 %v1471_v51, %v1436_v62  ;;  %v1474_v46 = vadd.f32 %v1472_v40, %v1437_v63 }
 0x1b0   :  { %v1479_v35 = vadd.f32 %v1477_v53, %v1442_v0  ;;  %v1480_v25 = vadd.f32 %v1478_v44, %v1443_v17  ;;  %v1449_v1 = vadd.f32 %v1447_v5, %v1412_v60  ;;  %v1485_v59 = vadd.f32 %v1483_v48, %v1448_v15 }
 0x1b1   :  { %v3478_v2 = vadd.f32 %v1488_v45, %v1467_v37  ;;  %v3482_v6 = vadd.f32 %v1488_v45, %v1468_v14  ;;  %v3486_v11 = vadd.f32 %v1532_v41, %v1473_v3  ;;  %v3490_v4 = vadd.f32 %v1532_v41, %v1474_v46 }
 0x1b2   :  { %v3494_v33 = vadd.f32 %v1576_v50, %v1479_v35  ;;  %v3498_v8 = vadd.f32 %v1576_v50, %v1480_v25  ;;  %v1486_v41 = vadd.f32 %v1484_v7, %v1449_v1  ;;  %v3507_v50 = vadd.f32 %v1620_v31, %v1485_v59 }
 0x1b3   :  { %v1853_v52 = vmul.f32 -1.442695, %v3478_v2  ;;  %v1854_v28 = vmul.f32 -1.442695, %v3482_v6  ;;  %v1856_v45 = vmul.f32 -1.442695, %v3486_v11 }
 0x1b4   :  { %v1857_v29 = vmul.f32 -1.442695, %v3490_v4  ;;  %v1859_v21 = vmul.f32 -1.442695, %v3494_v33  ;;  %v1860_v12 = vmul.f32 -1.442695, %v3498_v8  ;;  %v3509_v27 = vadd.f32 %v1620_v31, %v1486_v41 }
 0x1b5   :  { %1880 = vpow2.f32 %v1853_v52  ;;  %v1862_v26 = vmul.f32 -1.442695, %v3507_v50 }
 0x1b6   :  { %1882 = vpow2.f32 %v1854_v28  ;;  %v1863_v13 = vmul.f32 -1.442695, %v3509_v27 }
 0x1b7   :  { %1884 = vpow2.f32 %v1856_v45 }
 0x1b8   :  { %1886 = vpow2.f32 %v1857_v29 }
 0x1b9   :  { %1888 = vpow2.f32 %v1859_v21 }
 0x1ba   :  { %1890 = vpow2.f32 %v1860_v12 }
 0x1bb   :  { %v1881_v39 = vpop.eup %1880 }
 0x1bc   :  { %v1883_v36 = vpop.eup %1882  ;;  %v3511_v9 = vadd.f32 1.0, %v1881_v39 }
 0x1bd   :  { %v1885_v43 = vpop.eup %1884  ;;  %v3514_v16 = vadd.f32 1.0, %v1883_v36 }
 0x1be   :  { %v1887_v22 = vpop.eup %1886  ;;  %1892 = vrcp.f32 %v3511_v9  ;;  %v3519_v61 = vadd.f32 1.0, %v1885_v43  ;;  %v1510_v58 = vand.u32 2147483648, %v3511_v9  ;;  %v1508_v42 = vand.u32 2147483647, %v3511_v9 }
 0x1bf   :  { %v1889_v56 = vpop.eup %1888  ;;  %1894 = vrcp.f32 %v3514_v16  ;;  %v3521_v30 = vadd.f32 1.0, %v1887_v22  ;;  %v1523_v19 = vand.u32 2147483647, %v3514_v16  ;;  %v1525_v55 = vand.u32 2147483648, %v3514_v16 }
 0x1c0   :  { %v1891_v10 = vpop.eup %1890  ;;  %1896 = vpow2.f32 %v1862_v26  ;;  %v3523_v24 = vadd.f32 1.0, %v1889_v56  ;;  %vm1519_vm9 = vweird.f32 %v3514_v16  ;;  %v1554_v34 = vand.u32 2147483648, %v3519_v61 }
 0x1c1   :  { %1898 = vpow2.f32 %v1863_v13  ;;  %v3529_v60 = vadd.f32 1.0, %v1891_v10  ;;  %vm1504_vm10 = vweird.f32 %v3511_v9  ;;  %v3541_v38 = vor.u32 1.1754944e-38, %v1510_v58 }
 0x1c2   :  { %1900 = vrcp.f32 %v3519_v61  ;;  %v1567_v62 = vand.u32 2147483647, %v3521_v30  ;;  %v1569_v63 = vand.u32 2147483648, %v3521_v30  ;;  %vm3546_vm4 = vcmp.eq.f32.partialorder %v1523_v19, 8.507059e+37 }
 0x1c3   :  { %1902 = vrcp.f32 %v3521_v30  ;;  %v1552_v47 = vand.u32 2147483647, %v3519_v61  ;;  %v1526_v0 = vor.u32 1.1754944e-38, %v1525_v55  ;;  %vm1548_vm12 = vweird.f32 %v3519_v61 }
 0x1c4   :  { %v3531_v32 = vpop.eup %1892  ;;  %1904 = vrcp.f32 %v3523_v24  ;;  %vm1563_vm5 = vweird.f32 %v3521_v30  ;;  %v1555_v37 = vor.u32 1.1754944e-38, %v1554_v34  ;;  %vm3562_vm14 = vcmp.eq.f32.partialorder %v1508_v42, 8.507059e+37 }
 0x1c5   :  { %v1895_v23 = vpop.eup %1894  ;;  %v1500_v5 = vmul.f32 %v3531_v32, %v3511_v9  ;;  %1906 = vrcp.f32 %v3529_v60  ;;  %vm1505_vm15 = vweird.f32 %v3531_v32  ;;  %vm3567_vm13 = vcmp.eq.f32.partialorder %v1567_v62, 8.507059e+37 }
 0x1c6   :  { %v1897_v49 = vpop.eup %1896  ;;  %v1515_v18 = vmul.f32 %v1895_v23, %v3514_v16  ;;  %vm1520_vm11 = vweird.f32 %v1895_v23  ;;  %v1570_v48 = vor.u32 1.1754944e-38, %v1569_v63  ;;  %vm1592_vm0 = vweird.f32 %v3523_v24  ;;  %vm3594_vm8 = vmor %vm1504_vm10, %vm1505_vm15 }
 0x1c7   :  { %v1899_v20 = vpop.eup %1898  ;;  %v1501_v57 = vsub.f32 1.0, %v1500_v5  ;;  %vm3572_vm1 = vcmp.eq.f32.partialorder %v1552_v47, 8.507059e+37  ;;  %v1596_v52 = vand.u32 2147483647, %v3523_v24  ;;  %v1598_v28 = vand.u32 2147483648, %v3523_v24  ;;  %vm1521_vm7 = vmor %vm1519_vm9, %vm1520_vm11 }
 0x1c8   :  { %v3552_v51 = vpop.eup %1900  ;;  %v1516_v40 = vsub.f32 1.0, %v1515_v18  ;;  %v1611_v31 = vand.u32 2147483647, %v3529_v60  ;;  %v3587_v39 = vadd.f32 1.0, %v1897_v49  ;;  %v1613_v10 = vand.u32 2147483648, %v3529_v60 }
 0x1c9   :  { %v1903_v17 = vpop.eup %1902  ;;  %v1502_v53 = vmul.f32 %v3531_v32, %v1501_v57  ;;  %v1544_v44 = vmul.f32 %v3552_v51, %v3519_v61  ;;  %vm1549_vm2 = vweird.f32 %v3552_v51  ;;  %vm1607_vm15 = vweird.f32 %v3529_v60 }
 0x1ca   :  { %v3560_v14 = vpop.eup %1904  ;;  %v1517_v46 = vmul.f32 %v1895_v23, %v1516_v40  ;;  %v1559_v35 = vmul.f32 %v1903_v17, %v3521_v30  ;;  %vm1564_vm6 = vweird.f32 %v1903_v17  ;;  %vm3608_vm3 = vmor %vm1548_vm12, %vm1549_vm2  ;;  %1908 = vrcp.f32 %v3587_v39 }
 0x1cb   :  { %v1545_v7 = vsub.f32 1.0, %v1544_v44  ;;  %v1588_v1 = vmul.f32 %v3560_v14, %v3523_v24  ;;  %v1503_v45 = vadd.f32 %v3531_v32, %v1502_v53  ;;  %v1907_v41 = vpop.eup %1906  ;;  %vm1593_vm9 = vweird.f32 %v3560_v14  ;;  %vm1565_vm10 = vmor %vm1563_vm5, %vm1564_vm6 }
 0x1cc   :  { %v1518_v59 = vadd.f32 %v1895_v23, %v1517_v46  ;;  %v1560_v29 = vsub.f32 1.0, %v1559_v35  ;;  %v1603_v43 = vmul.f32 %v1907_v41, %v3529_v60  ;;  %vm3630_vm12 = vmor %vm1592_vm0, %vm1593_vm9  ;;  %vm3634_vm5 = vcmp.eq.f32.partialorder %v1596_v52, 8.507059e+37 }
 0x1cd   :  { %v1546_v21 = vmul.f32 %v3552_v51, %v1545_v7  ;;  %v1589_v12 = vsub.f32 1.0, %v1588_v1  ;;  %v1507_v58 = vsel %vm3594_vm8, %v3531_v32, %v1503_v45  ;;  %v3619_v32 = vadd.f32 1.0, %v1899_v20 }
 0x1ce   :  { %v1522_v36 = vsel %vm1521_vm7, %v1895_v23, %v1518_v59  ;;  %v1561_v26 = vmul.f32 %v1903_v17, %v1560_v29  ;;  %v1604_v55 = vsub.f32 1.0, %v1603_v43  ;;  %v1512_v49 = vsel %vm3562_vm14, %v3541_v38, %v1507_v58 }
 0x1cf   :  { %v1527_v16 = vsel %vm3546_vm4, %v1526_v0, %v1522_v36  ;;  %v1547_v22 = vadd.f32 %v3552_v51, %v1546_v21  ;;  %v1590_v56 = vmul.f32 %v3560_v14, %v1589_v12  ;;  %vm1608_vm4 = vweird.f32 %v1907_v41 }
 0x1d0   :  { %v1562_v19 = vadd.f32 %v1903_v17, %v1561_v26  ;;  %v1530_v61 = vmul.f32 %v1527_v16, %v3482_v6  ;;  %v1605_v34 = vmul.f32 %v1907_v41, %v1604_v55  ;;  %v1599_v20 = vor.u32 1.1754944e-38, %v1598_v28  ;;  %vm1609_vm14 = vmor %vm1607_vm15, %vm1608_vm4 }
 0x1d1   :  { %v1551_v23 = vsel %vm3608_vm3, %v3552_v51, %v1547_v22  ;;  %v1591_v5 = vadd.f32 %v3560_v14, %v1590_v56  ;;  %vm1612_vm11 = vcmp.eq.f32.partialorder %v1611_v31, 8.507059e+37  ;;  %v1614_v57 = vor.u32 1.1754944e-38, %v1613_v10  ;;  %v1909_v51 = vpop.eup %1908 }
 0x1d2   :  { %v1566_v42 = vsel %vm1565_vm10, %v1903_v17, %v1562_v19  ;;  %v1556_v6 = vsel %vm3572_vm1, %v1555_v37, %v1551_v23  ;;  %v1606_v24 = vadd.f32 %v1907_v41, %v1605_v34  ;;  %1910 = vrcp.f32 %v3619_v32 }
 0x1d3   :  { %v1571_v18 = vsel %vm3567_vm13, %v1570_v48, %v1566_v42  ;;  %v1595_v63 = vsel %vm3630_vm12, %v3560_v14, %v1591_v5  ;;  %v1529_v54 = vmul.f32 %v1512_v49, %v3478_v2  ;;  %v1671_v60 = vrot.slane %v1530_v61, 6 }
 0x1d4   :  { %v1574_v38 = vmul.f32 %v1571_v18, %v3490_v4  ;;  %v1610_v47 = vsel %vm1609_vm14, %v1907_v41, %v1606_v24  ;;  %vm1675_vm13 = vcmask 1041408   ;;  %v1573_v40 = vmul.f32 %v1556_v6, %v3486_v11 }
 0x1d5   :  { %v1600_v4 = vsel %vm3634_vm5, %v1599_v20, %v1595_v63  ;;  %v1615_v0 = vsel %vm1612_vm11, %v1614_v57, %v1610_v47  ;;  %v1632_v44 = vmul.f32 %v1909_v51, %v3587_v39  ;;  %v1676_v37 = vsel %vm1675_vm13, %v1529_v54, %v1671_v60 }
 0x1d6   :  { %v1672_v17 = vrot.slane %v1574_v38, 6  ;;  %v1618_v53 = vmul.f32 %v1615_v0, %v3498_v8  ;;  %v1617_v2 = vmul.f32 %v1600_v4, %v3494_v33  ;;  %1684 = vst [vmem:[#allocation11] sm:$0xf] %v1676_v37  ;;  %vm1637_vm0 = vweird.f32 %v1909_v51 }
 0x1d7   :  { %v1633_v3 = vsub.f32 1.0, %v1632_v44  ;;  %vm1636_vm1 = vweird.f32 %v3587_v39  ;;  %v1642_v15 = vand.u32 2147483648, %v3587_v39  ;;  %v1657_v33 = vand.u32 2147483648, %v3619_v32 }
 0x1d8   :  { %v1677_v14 = vsel %vm1675_vm13, %v1573_v40, %v1672_v17  ;;  %v1673_v46 = vrot.slane %v1618_v53, 6  ;;  %v1911_v35 = vpop.eup %1910  ;;  %v1640_v1 = vand.u32 2147483647, %v3587_v39  ;;  %v1655_v28 = vand.u32 2147483647, %v3619_v32  ;;  %vm1638_vm2 = vmor %vm1636_vm1, %vm1637_vm0 }
 0x1d9   :  { %1685 = vst [vmem:[#allocation11 + $0x4] sm:$0xf] %v1677_v14  ;;  %v1634_v11 = vmul.f32 %v1909_v51, %v1633_v3  ;;  %v1647_v25 = vmul.f32 %v1911_v35, %v3619_v32  ;;  %vm1652_vm7 = vweird.f32 %v1911_v35  ;;  %vm1651_vm6 = vweird.f32 %v3619_v32 }
 0x1da   :  { %v1678_v48 = vsel %vm1675_vm13, %v1617_v2, %v1673_v46  ;;  %v1643_v29 = vor.u32 1.1754944e-38, %v1642_v15  ;;  %vm1653_vm8 = vmor %vm1651_vm6, %vm1652_vm7  ;;  %v1658_v31 = vor.u32 1.1754944e-38, %v1657_v33  ;;  %vm1641_vm3 = vcmp.eq.f32.partialorder %v1640_v1, 8.507059e+37 }
 0x1db   :  { %1686 = vst [vmem:[#allocation11 + $0x8] sm:$0xf] %v1678_v48  ;;  %v1635_v8 = vadd.f32 %v1909_v51, %v1634_v11  ;;  %v1648_v7 = vsub.f32 1.0, %v1647_v25  ;;  %vm1656_vm9 = vcmp.eq.f32.partialorder %v1655_v28, 8.507059e+37 }
 0x1dd   :  { %v1649_v52 = vmul.f32 %v1911_v35, %v1648_v7  ;;  %v1639_v45 = vsel %vm1638_vm2, %v1909_v51, %v1635_v8 }
 0x1de   :  { %v1644_v21 = vsel %vm1641_vm3, %v1643_v29, %v1639_v45 }
 0x1df   :  { %v1650_v59 = vadd.f32 %v1911_v35, %v1649_v52  ;;  %v1661_v39 = vmul.f32 %v1644_v21, %v3507_v50 }
 0x1e1   :  { %v1654_v41 = vsel %vm1653_vm8, %v1911_v35, %v1650_v59 }
 0x1e2   :  { %v1659_v12 = vsel %vm1656_vm9, %v1658_v31, %v1654_v41 }
 0x1e3   :  { %v1662_v36 = vmul.f32 %v1659_v12, %v3509_v27 }
 0x1e5   :  { %v1674_v26 = vrot.slane %v1662_v36, 6 }
 0x1e7   :  { %v1679_v43 = vsel %vm1675_vm13, %v1661_v39, %v1674_v26 }
 0x1e8   :  { %1687 = vst [vmem:[#allocation11 + $0xc] sm:$0xf] %v1679_v43 }
 0x1e9   :  { %1700 = dma.vmem_to_hbm [thread:$0]  %s1693_s22, 256, %s1695_s27, [#allocation4], %s2020_s23, %s2020_s23, %s2021_s24  }
 0x1ea   :  { %2017 = dma.done.wait [#allocation4], 256  }
 0x1eb   :  { %2018 = vsyncadd [#allocation4], 4294967040 }
 0x1ec   :  { %1705 = vsyncpa [#allocation3], 1 }
 0x1ed   :  { %1706 = vsyncpa [#allocation8], 1 }
 0x1ee   :  { %1707 = vsyncpa [#allocation4], 1 }
 0x1ef   :  { %1708 = vsyncpa [#allocation5], 1 }
 0x1f0   :  { %1709 = vsyncpa [#allocation6], 1 }

</bundles_post_ra>
